<compile_context>
chip_gen: v5e
topology: v5e:2x2
jax: 0.10.0
libtpu: 0.0.40
codegen_flags: <defaults>
</compile_context>

<pallas_src>
import functools

import jax
import jax.numpy as jnp
from jax.experimental import pallas as pl
from jax.experimental.pallas import tpu as pltpu


def _pick_tile(n, target, multiple=16):
    """Largest tile <= target that divides n and is a multiple of `multiple`.

    Falls back to n (single tile) if n <= target or no such divisor exists.
    """
    if n <= target:
        return n
    t = (min(target, n) // multiple) * multiple
    while t >= multiple:
        if n % t == 0:
            return t
        t -= multiple
    return n


def _vmem_capacity_bytes(default_bytes=64 * 1024 * 1024):
    try:
        info = pltpu.get_tpu_info()
        return int(getattr(info, "vmem_capacity_bytes", default_bytes))
    except Exception:
        return default_bytes


def _attention_kernel(x_ref, wq_ref, wkv_ref, wproj_ref, bproj_ref, o_ref,
                      k_scr, v_scr, *, C, num_heads, tq, tkv, nkv,
                      compute_dtype, approx_reciprocal):
    H = num_heads
    hd = C // H
    qi = pl.program_id(1)

    # ---- K/V projection for the whole sequence, ONCE per batch element -----------------
    # Chunked over rows so the f32 transient is only (tkv, 2C); results stored head-major
    # in resident VMEM scratch so the per-(q-tile, kv-chunk) hot loop does zero relayout.
    @pl.when(qi == 0)
    def _():
        w_kv = wkv_ref[...]                                                   # (C, 2C)
        for j in range(nkv):
            x_j = x_ref[j * tkv:(j + 1) * tkv, :].astype(compute_dtype)       # (tkv, C)
            kv_j = jnp.dot(x_j, w_kv, preferred_element_type=jnp.float32)     # (tkv, 2C)
            for h in range(H):
                # TODO(synk): replace the static-slice head split with a single fused
                # relayout (pltpu.einshape) once lane-splitting reshape lowering is robust.
                k_scr[j, h] = kv_j[:, h * hd:(h + 1) * hd].astype(compute_dtype)
                v_scr[j, h] = kv_j[:, C + h * hd:C + (h + 1) * hd].astype(compute_dtype)

    # ---- Q projection for this q tile (softmax scale already folded into w_q) ----------
    row0 = pl.multiple_of(qi * tq, tq)
    x_q = x_ref[pl.ds(row0, tq), :].astype(compute_dtype)                     # (tq, C)
    q = jnp.dot(x_q, wq_ref[...], preferred_element_type=jnp.float32)         # (tq, C) f32
    q_h = jnp.stack([q[:, h * hd:(h + 1) * hd] for h in range(H)],
                    axis=0).astype(compute_dtype)                             # (H, tq, hd)

    # ---- online-softmax attention over KV chunks ---------------------------------------
    def kv_step(j, carry):
        m_i, l_i, acc = carry
        k_c = k_scr[j]                                                        # (H, tkv, hd)
        v_c = v_scr[j]                                                        # (H, tkv, hd)
        s = jnp.einsum("hqd,hkd->hqk", q_h, k_c,
                       preferred_element_type=jnp.float32)                    # (H, tq, tkv)
        m_new = jnp.maximum(m_i, s.max(axis=-1, keepdims=True))
        alpha = jnp.exp(m_i - m_new)
        p = jnp.exp(s - m_new)
        l_new = alpha * l_i + p.sum(axis=-1, keepdims=True)
        pv = jnp.einsum("hqk,hkd->hqd", p.astype(compute_dtype), v_c,
                        preferred_element_type=jnp.float32)                   # (H, tq, hd)
        acc_new = alpha * acc + pv
        return m_new, l_new, acc_new

    m0 = jnp.full((H, tq, 1), -jnp.inf, dtype=jnp.float32)
    l0 = jnp.zeros((H, tq, 1), dtype=jnp.float32)
    a0 = jnp.zeros((H, tq, hd), dtype=jnp.float32)
    m_i, l_i, acc = jax.lax.fori_loop(0, nkv, kv_step, (m0, l0, a0),
                                      unroll=(nkv <= 8))

    # Deferred softmax normalization: touches (H, tq, hd), not (H, tq, N).
    o = acc * pl.reciprocal(l_i, approx=approx_reciprocal)                    # (H, tq, hd)

    # ---- merge heads + output projection + bias (lane-dense (tq, C) store) -------------
    attn_out = jnp.concatenate([o[h] for h in range(H)],
                               axis=-1).astype(compute_dtype)                 # (tq, C)
    y = jnp.dot(attn_out, wproj_ref[...], preferred_element_type=jnp.float32)
    y = y + bproj_ref[...]
    o_ref[...] = y.astype(o_ref.dtype)


def attention_pallas(x, w_qkv_t, w_proj_t, b_proj, *, num_heads,
                     compute_dtype=jnp.bfloat16, approx_reciprocal=True,
                     q_tile=256, kv_tile=512):
    """Fused multi-head self-attention forward.

    x: (B, N, C); w_qkv_t: (C, 3C) (= qkv.weight.T); w_proj_t: (C, C) (= proj.weight.T);
    b_proj: (1, C).
    compute_dtype: dtype fed to the MXU matmuls (softmax / accumulation stay f32);
                   bf16 is the default inference path on every TPU generation.
    """
    B, N, C = x.shape
    assert C % num_heads == 0, "dim must be divisible by num_heads"
    head_dim = C // num_heads
    scale = head_dim ** (-0.5)

    compute_dtype = jnp.dtype(compute_dtype)

    tq = _pick_tile(N, q_tile)
    tkv = _pick_tile(N, kv_tile)
    nq = N // tq
    nkv = N // tkv

    # Fold the softmax scale into the q-columns of the qkv weight (free at kernel runtime)
    # and split the weight so the K/V projection runs once per batch element.
    w_q = (w_qkv_t[:, :C] * scale).astype(compute_dtype)       # (C, C)
    w_kv = w_qkv_t[:, C:].astype(compute_dtype)                # (C, 2C)
    w_proj_c = w_proj_t.astype(compute_dtype)                  # (C, C)
    b_proj_f32 = b_proj.astype(jnp.float32)                    # (1, C)

    kernel = functools.partial(
        _attention_kernel, C=C, num_heads=num_heads, tq=tq, tkv=tkv, nkv=nkv,
        compute_dtype=compute_dtype, approx_reciprocal=approx_reciprocal)

    # ---- advisory cost estimate ---------------------------------------------------------
    flops = int(B * (2 * N * C * 3 * C            # qkv projection
                     + 4 * N * N * C              # q@k^T and p@v over all heads
                     + 2 * N * C * C))            # output projection
    transcendentals = int(B * num_heads * N * N)
    bytes_accessed = int(2 * x.size * x.dtype.itemsize
                         + (w_q.size + w_kv.size + w_proj_c.size) * compute_dtype.itemsize
                         + b_proj_f32.size * 4)

    # ---- generation-aware VMEM budget ---------------------------------------------------
    # x/out blocks are double-buffered by the pipeline; weights have constant index_maps
    # and stay resident (single buffer).  K/V scratch is head-major -> lane dim (head_dim)
    # is padded to 128.
    cdb = compute_dtype.itemsize
    xb = x.dtype.itemsize
    pad_hd = -(-head_dim // 128) * 128
    pad_tkv = -(-tkv // 128) * 128
    block_bytes = (2 * N * C * xb                       # x block (double-buffered)
                   + 2 * tq * C * xb                    # out block (double-buffered)
                   + (C * C + C * 2 * C + C * C) * cdb  # weights (resident, single buffer)
                   + C * 4)                             # bias
    scratch_bytes = 2 * num_heads * N * pad_hd * cdb    # head-major K/V scratch
    interm_bytes = 4 * (tkv * 2 * C                     # per-chunk KV projection (f32)
                        + 2 * tq * C                    # q tile / attn_out
                        + 3 * num_heads * tq * pad_hd   # q_h, acc, o
                        + 2 * num_heads * tq * pad_tkv  # s, p
                        + tq * C)                       # y
    need = block_bytes + scratch_bytes + interm_bytes
    vmem_cap = _vmem_capacity_bytes()
    vmem_limit = int(min(max(int(1.25 * need), 32 * 1024 * 1024),
                         vmem_cap - 8 * 1024 * 1024))
    vmem_limit = max(vmem_limit, 16 * 1024 * 1024)
    # TODO(synk): if `need` still exceeds the budget (very large N on v7x), also shrink
    # kv_tile / q_tile or move the K/V scratch to HBM with manual double-buffered DMA.

    return pl.pallas_call(
        kernel,
        out_shape=jax.ShapeDtypeStruct((B, N, C), x.dtype),
        grid_spec=pltpu.PrefetchScalarGridSpec(
            num_scalar_prefetch=0,
            grid=(B, nq),
            in_specs=[
                pl.BlockSpec((None, N, C), lambda b, q: (b, 0, 0)),   # x: full seq per batch
                pl.BlockSpec((C, C), lambda b, q: (0, 0)),            # w_q (scale folded)
                pl.BlockSpec((C, 2 * C), lambda b, q: (0, 0)),        # w_kv
                pl.BlockSpec((C, C), lambda b, q: (0, 0)),            # w_proj
                pl.BlockSpec((1, C), lambda b, q: (0, 0)),            # proj bias
            ],
            out_specs=pl.BlockSpec((None, tq, C), lambda b, q: (b, q, 0)),
            scratch_shapes=[
                pltpu.VMEM((nkv, num_heads, tkv, head_dim), compute_dtype),  # K head-major
                pltpu.VMEM((nkv, num_heads, tkv, head_dim), compute_dtype),  # V head-major
            ],
        ),
        compiler_params=pltpu.CompilerParams(
            dimension_semantics=("parallel", "arbitrary"),
            vmem_limit_bytes=vmem_limit,
        ),
        cost_estimate=pl.CostEstimate(
            flops=flops, transcendentals=transcendentals, bytes_accessed=bytes_accessed),
    )(x, w_q, w_kv, w_proj_c, b_proj_f32)


def attention_reference(x, w_qkv_t, w_proj_t, b_proj, *, num_heads):
    """Pure-JAX reference mirroring the PyTorch forward."""
    B, N, C = x.shape
    head_dim = C // num_heads
    scale = head_dim ** (-0.5)

    qkv = x @ w_qkv_t                                             # (B, N, 3C)
    qkv = qkv.reshape(B, N, 3, num_heads, head_dim)
    qkv = jnp.transpose(qkv, (2, 0, 3, 1, 4))                     # (3, B, H, N, hd)
    q, k, v = qkv[0], qkv[1], qkv[2]
    attn = jnp.einsum("bhnd,bhmd->bhnm", q, k) * scale
    attn = jax.nn.softmax(attn, axis=-1)
    out = jnp.einsum("bhnm,bhmd->bhnd", attn, v)                  # (B, H, N, hd)
    out = jnp.transpose(out, (0, 2, 1, 3)).reshape(B, N, C)
    return out @ w_proj_t + b_proj[0]


if __name__ == "__main__":
    B, N, C = 2, 64, 64
    num_heads = 8            # head_dim = 8

    key = jax.random.PRNGKey(0)
    kx, kw1, kw2, kb = jax.random.split(key, 4)

    x = jax.random.normal(kx, (B, N, C), dtype=jnp.float32)

    # nn.Linear(dim, dim*3, bias=False): weight (3C, C); we pass its transpose (C, 3C).
    w_qkv = jax.random.normal(kw1, (3 * C, C), dtype=jnp.float32) * (1.0 / C ** 0.5)
    # nn.Linear(dim, dim): weight (C, C) + bias (C,); we pass transposed weight (C, C).
    w_proj = jax.random.normal(kw2, (C, C), dtype=jnp.float32) * (1.0 / C ** 0.5)
    b_proj = jax.random.normal(kb, (C,), dtype=jnp.float32) * 0.01

    w_qkv_t = w_qkv.T                     # (C, 3C)
    w_proj_t = w_proj.T                   # (C, C)
    b_proj_2d = b_proj.reshape(1, C)      # (1, C)

    ref = attention_reference(x, w_qkv_t, w_proj_t, b_proj_2d, num_heads=num_heads)

    # f32 path, exact reciprocal; small tiles so the q-tile grid axis, the KV-chunk online
    # softmax loop and the resident K/V-scratch reuse are all exercised (nq = nkv = 2).
    out = attention_pallas(x, w_qkv_t, w_proj_t, b_proj_2d, num_heads=num_heads,
                           compute_dtype=jnp.float32, approx_reciprocal=False,
                           q_tile=32, kv_tile=32)
    out = jax.block_until_ready(out)
    assert out.shape == (B, N, C)
    assert jnp.allclose(out, ref, atol=2e-3, rtol=2e-3), "f32 Pallas output mismatch vs reference"

    # Default inference path: bf16 MXU inputs, f32 softmax/accumulation, approx EUP
    # reciprocal.  Loose check only.
    out_bf16 = attention_pallas(x, w_qkv_t, w_proj_t, b_proj_2d, num_heads=num_heads,
                                q_tile=32, kv_tile=32)
    out_bf16 = jax.block_until_ready(out_bf16)
    assert out_bf16.shape == (B, N, C)
    assert jnp.allclose(out_bf16, ref, atol=1e-1, rtol=1e-1), "bf16 Pallas output mismatch vs reference"

    print("KERNEL_OK")
</pallas_src>

<mosaic_0001>
module attributes {stable_mosaic.version = 11 : i64} {
  func.func @_attention_kernel(%arg0: i32, %arg1: i32, %arg2: memref<1x64x64xf32, #tpu.memory_space<vmem>>, %arg3: memref<64x64xf32, #tpu.memory_space<vmem>>, %arg4: memref<64x128xf32, #tpu.memory_space<vmem>>, %arg5: memref<64x64xf32, #tpu.memory_space<vmem>>, %arg6: memref<1x64xf32, #tpu.memory_space<vmem>>, %arg7: memref<1x32x64xf32, #tpu.memory_space<vmem>>, %arg8: memref<2x8x32x8xf32, #tpu.memory_space<vmem>>, %arg9: memref<2x8x32x8xf32, #tpu.memory_space<vmem>>) attributes {dimension_semantics = [#tpu.dimension_semantics<parallel>, #tpu.dimension_semantics<arbitrary>], iteration_bounds = array<i64: 2, 2>, scalar_prefetch = 0 : i64, scratch_operands = 2 : i64, tpu.core_type = #tpu.core_type<tc>, window_params = [{transform_indices = @transform_0, window_bounds = array<i64: 1, 64, 64>}, {pipeline_mode = #tpu.pipeline_mode<synchronous>, transform_indices = @transform_1, window_bounds = array<i64: 64, 64>}, {pipeline_mode = #tpu.pipeline_mode<synchronous>, transform_indices = @transform_2, window_bounds = array<i64: 64, 128>}, {pipeline_mode = #tpu.pipeline_mode<synchronous>, transform_indices = @transform_3, window_bounds = array<i64: 64, 64>}, {pipeline_mode = #tpu.pipeline_mode<synchronous>, transform_indices = @transform_4, window_bounds = array<i64: 1, 64>}, {transform_indices = @transform_5, window_bounds = array<i64: 1, 32, 64>}]} {
    %c0_i32 = arith.constant 0 : i32
    %0 = arith.cmpi eq, %arg1, %c0_i32 : i32
    %1 = arith.extui %0 : i1 to i32
    %c0_i32_0 = arith.constant 0 : i32
    %2 = arith.cmpi ne, %1, %c0_i32_0 : i32
    scf.if %2 {
      %c0_36 = arith.constant 0 : index
      %c0_37 = arith.constant 0 : index
      %104 = vector.load %arg4[%c0_36, %c0_37] : memref<64x128xf32, #tpu.memory_space<vmem>>, vector<64x128xf32>
      %c0_38 = arith.constant 0 : index
      %c0_39 = arith.constant 0 : index
      %c0_40 = arith.constant 0 : index
      %105 = vector.load %arg2[%c0_38, %c0_39, %c0_40] : memref<1x64x64xf32, #tpu.memory_space<vmem>>, vector<1x32x64xf32>
      %106 = vector.shape_cast %105 : vector<1x32x64xf32> to vector<32x64xf32>
      %cst_41 = arith.constant dense<0.000000e+00> : vector<32x128xf32>
      %107 = tpu.matmul %106, %104, %cst_41 {dimension_numbers = #tpu.dot_dimension_numbers<[1], [0], [0], [1], [0, 0, 1, 1], [], []>} : vector<32x64xf32>, vector<64x128xf32>, vector<32x128xf32> -> vector<32x128xf32>
      %108 = vector.extract_strided_slice %107 {offsets = [0, 0], sizes = [32, 8], strides = [1, 1]} : vector<32x128xf32> to vector<32x8xf32>
      %c0_42 = arith.constant 0 : index
      %c0_43 = arith.constant 0 : index
      %c0_44 = arith.constant 0 : index
      %c0_45 = arith.constant 0 : index
      %109 = vector.load %arg8[%c0_42, %c0_43, %c0_44, %c0_45] : memref<2x8x32x8xf32, #tpu.memory_space<vmem>>, vector<1x1x32x8xf32>
      %110 = vector.shape_cast %109 : vector<1x1x32x8xf32> to vector<32x8xf32>
      %111 = vector.shape_cast %108 : vector<32x8xf32> to vector<1x1x32x8xf32>
      tpu.vector_store %arg8[%c0_42, %c0_43, %c0_44, %c0_45], %111 {strides = array<i32>} : memref<2x8x32x8xf32, #tpu.memory_space<vmem>>, vector<1x1x32x8xf32>,
      %112 = vector.extract_strided_slice %107 {offsets = [0, 64], sizes = [32, 8], strides = [1, 1]} : vector<32x128xf32> to vector<32x8xf32>
      %c0_46 = arith.constant 0 : index
      %c0_47 = arith.constant 0 : index
      %c0_48 = arith.constant 0 : index
      %c0_49 = arith.constant 0 : index
      %113 = vector.load %arg9[%c0_46, %c0_47, %c0_48, %c0_49] : memref<2x8x32x8xf32, #tpu.memory_space<vmem>>, vector<1x1x32x8xf32>
      %114 = vector.shape_cast %113 : vector<1x1x32x8xf32> to vector<32x8xf32>
      %115 = vector.shape_cast %112 : vector<32x8xf32> to vector<1x1x32x8xf32>
      tpu.vector_store %arg9[%c0_46, %c0_47, %c0_48, %c0_49], %115 {strides = array<i32>} : memref<2x8x32x8xf32, #tpu.memory_space<vmem>>, vector<1x1x32x8xf32>,
      %116 = vector.extract_strided_slice %107 {offsets = [0, 8], sizes = [32, 8], strides = [1, 1]} : vector<32x128xf32> to vector<32x8xf32>
      %c0_50 = arith.constant 0 : index
      %c1 = arith.constant 1 : index
      %c0_51 = arith.constant 0 : index
      %c0_52 = arith.constant 0 : index
      %117 = vector.load %arg8[%c0_50, %c1, %c0_51, %c0_52] : memref<2x8x32x8xf32, #tpu.memory_space<vmem>>, vector<1x1x32x8xf32>
      %118 = vector.shape_cast %117 : vector<1x1x32x8xf32> to vector<32x8xf32>
      %119 = vector.shape_cast %116 : vector<32x8xf32> to vector<1x1x32x8xf32>
      tpu.vector_store %arg8[%c0_50, %c1, %c0_51, %c0_52], %119 {strides = array<i32>} : memref<2x8x32x8xf32, #tpu.memory_space<vmem>>, vector<1x1x32x8xf32>,
      %120 = vector.extract_strided_slice %107 {offsets = [0, 72], sizes = [32, 8], strides = [1, 1]} : vector<32x128xf32> to vector<32x8xf32>
      %c0_53 = arith.constant 0 : index
      %c1_54 = arith.constant 1 : index
      %c0_55 = arith.constant 0 : index
      %c0_56 = arith.constant 0 : index
      %121 = vector.load %arg9[%c0_53, %c1_54, %c0_55, %c0_56] : memref<2x8x32x8xf32, #tpu.memory_space<vmem>>, vector<1x1x32x8xf32>
      %122 = vector.shape_cast %121 : vector<1x1x32x8xf32> to vector<32x8xf32>
      %123 = vector.shape_cast %120 : vector<32x8xf32> to vector<1x1x32x8xf32>
      tpu.vector_store %arg9[%c0_53, %c1_54, %c0_55, %c0_56], %123 {strides = array<i32>} : memref<2x8x32x8xf32, #tpu.memory_space<vmem>>, vector<1x1x32x8xf32>,
      %124 = vector.extract_strided_slice %107 {offsets = [0, 16], sizes = [32, 8], strides = [1, 1]} : vector<32x128xf32> to vector<32x8xf32>
      %c0_57 = arith.constant 0 : index
      %c2 = arith.constant 2 : index
      %c0_58 = arith.constant 0 : index
      %c0_59 = arith.constant 0 : index
      %125 = vector.load %arg8[%c0_57, %c2, %c0_58, %c0_59] : memref<2x8x32x8xf32, #tpu.memory_space<vmem>>, vector<1x1x32x8xf32>
      %126 = vector.shape_cast %125 : vector<1x1x32x8xf32> to vector<32x8xf32>
      %127 = vector.shape_cast %124 : vector<32x8xf32> to vector<1x1x32x8xf32>
      tpu.vector_store %arg8[%c0_57, %c2, %c0_58, %c0_59], %127 {strides = array<i32>} : memref<2x8x32x8xf32, #tpu.memory_space<vmem>>, vector<1x1x32x8xf32>,
      %128 = vector.extract_strided_slice %107 {offsets = [0, 80], sizes = [32, 8], strides = [1, 1]} : vector<32x128xf32> to vector<32x8xf32>
      %c0_60 = arith.constant 0 : index
      %c2_61 = arith.constant 2 : index
      %c0_62 = arith.constant 0 : index
      %c0_63 = arith.constant 0 : index
      %129 = vector.load %arg9[%c0_60, %c2_61, %c0_62, %c0_63] : memref<2x8x32x8xf32, #tpu.memory_space<vmem>>, vector<1x1x32x8xf32>
      %130 = vector.shape_cast %129 : vector<1x1x32x8xf32> to vector<32x8xf32>
      %131 = vector.shape_cast %128 : vector<32x8xf32> to vector<1x1x32x8xf32>
      tpu.vector_store %arg9[%c0_60, %c2_61, %c0_62, %c0_63], %131 {strides = array<i32>} : memref<2x8x32x8xf32, #tpu.memory_space<vmem>>, vector<1x1x32x8xf32>,
      %132 = vector.extract_strided_slice %107 {offsets = [0, 24], sizes = [32, 8], strides = [1, 1]} : vector<32x128xf32> to vector<32x8xf32>
      %c0_64 = arith.constant 0 : index
      %c3 = arith.constant 3 : index
      %c0_65 = arith.constant 0 : index
      %c0_66 = arith.constant 0 : index
      %133 = vector.load %arg8[%c0_64, %c3, %c0_65, %c0_66] : memref<2x8x32x8xf32, #tpu.memory_space<vmem>>, vector<1x1x32x8xf32>
      %134 = vector.shape_cast %133 : vector<1x1x32x8xf32> to vector<32x8xf32>
      %135 = vector.shape_cast %132 : vector<32x8xf32> to vector<1x1x32x8xf32>
      tpu.vector_store %arg8[%c0_64, %c3, %c0_65, %c0_66], %135 {strides = array<i32>} : memref<2x8x32x8xf32, #tpu.memory_space<vmem>>, vector<1x1x32x8xf32>,
      %136 = vector.extract_strided_slice %107 {offsets = [0, 88], sizes = [32, 8], strides = [1, 1]} : vector<32x128xf32> to vector<32x8xf32>
      %c0_67 = arith.constant 0 : index
      %c3_68 = arith.constant 3 : index
      %c0_69 = arith.constant 0 : index
      %c0_70 = arith.constant 0 : index
      %137 = vector.load %arg9[%c0_67, %c3_68, %c0_69, %c0_70] : memref<2x8x32x8xf32, #tpu.memory_space<vmem>>, vector<1x1x32x8xf32>
      %138 = vector.shape_cast %137 : vector<1x1x32x8xf32> to vector<32x8xf32>
      %139 = vector.shape_cast %136 : vector<32x8xf32> to vector<1x1x32x8xf32>
      tpu.vector_store %arg9[%c0_67, %c3_68, %c0_69, %c0_70], %139 {strides = array<i32>} : memref<2x8x32x8xf32, #tpu.memory_space<vmem>>, vector<1x1x32x8xf32>,
      %140 = vector.extract_strided_slice %107 {offsets = [0, 32], sizes = [32, 8], strides = [1, 1]} : vector<32x128xf32> to vector<32x8xf32>
      %c0_71 = arith.constant 0 : index
      %c4 = arith.constant 4 : index
      %c0_72 = arith.constant 0 : index
      %c0_73 = arith.constant 0 : index
      %141 = vector.load %arg8[%c0_71, %c4, %c0_72, %c0_73] : memref<2x8x32x8xf32, #tpu.memory_space<vmem>>, vector<1x1x32x8xf32>
      %142 = vector.shape_cast %141 : vector<1x1x32x8xf32> to vector<32x8xf32>
      %143 = vector.shape_cast %140 : vector<32x8xf32> to vector<1x1x32x8xf32>
      tpu.vector_store %arg8[%c0_71, %c4, %c0_72, %c0_73], %143 {strides = array<i32>} : memref<2x8x32x8xf32, #tpu.memory_space<vmem>>, vector<1x1x32x8xf32>,
      %144 = vector.extract_strided_slice %107 {offsets = [0, 96], sizes = [32, 8], strides = [1, 1]} : vector<32x128xf32> to vector<32x8xf32>
      %c0_74 = arith.constant 0 : index
      %c4_75 = arith.constant 4 : index
      %c0_76 = arith.constant 0 : index
      %c0_77 = arith.constant 0 : index
      %145 = vector.load %arg9[%c0_74, %c4_75, %c0_76, %c0_77] : memref<2x8x32x8xf32, #tpu.memory_space<vmem>>, vector<1x1x32x8xf32>
      %146 = vector.shape_cast %145 : vector<1x1x32x8xf32> to vector<32x8xf32>
      %147 = vector.shape_cast %144 : vector<32x8xf32> to vector<1x1x32x8xf32>
      tpu.vector_store %arg9[%c0_74, %c4_75, %c0_76, %c0_77], %147 {strides = array<i32>} : memref<2x8x32x8xf32, #tpu.memory_space<vmem>>, vector<1x1x32x8xf32>,
      %148 = vector.extract_strided_slice %107 {offsets = [0, 40], sizes = [32, 8], strides = [1, 1]} : vector<32x128xf32> to vector<32x8xf32>
      %c0_78 = arith.constant 0 : index
      %c5 = arith.constant 5 : index
      %c0_79 = arith.constant 0 : index
      %c0_80 = arith.constant 0 : index
      %149 = vector.load %arg8[%c0_78, %c5, %c0_79, %c0_80] : memref<2x8x32x8xf32, #tpu.memory_space<vmem>>, vector<1x1x32x8xf32>
      %150 = vector.shape_cast %149 : vector<1x1x32x8xf32> to vector<32x8xf32>
      %151 = vector.shape_cast %148 : vector<32x8xf32> to vector<1x1x32x8xf32>
      tpu.vector_store %arg8[%c0_78, %c5, %c0_79, %c0_80], %151 {strides = array<i32>} : memref<2x8x32x8xf32, #tpu.memory_space<vmem>>, vector<1x1x32x8xf32>,
      %152 = vector.extract_strided_slice %107 {offsets = [0, 104], sizes = [32, 8], strides = [1, 1]} : vector<32x128xf32> to vector<32x8xf32>
      %c0_81 = arith.constant 0 : index
      %c5_82 = arith.constant 5 : index
      %c0_83 = arith.constant 0 : index
      %c0_84 = arith.constant 0 : index
      %153 = vector.load %arg9[%c0_81, %c5_82, %c0_83, %c0_84] : memref<2x8x32x8xf32, #tpu.memory_space<vmem>>, vector<1x1x32x8xf32>
      %154 = vector.shape_cast %153 : vector<1x1x32x8xf32> to vector<32x8xf32>
      %155 = vector.shape_cast %152 : vector<32x8xf32> to vector<1x1x32x8xf32>
      tpu.vector_store %arg9[%c0_81, %c5_82, %c0_83, %c0_84], %155 {strides = array<i32>} : memref<2x8x32x8xf32, #tpu.memory_space<vmem>>, vector<1x1x32x8xf32>,
      %156 = vector.extract_strided_slice %107 {offsets = [0, 48], sizes = [32, 8], strides = [1, 1]} : vector<32x128xf32> to vector<32x8xf32>
      %c0_85 = arith.constant 0 : index
      %c6 = arith.constant 6 : index
      %c0_86 = arith.constant 0 : index
      %c0_87 = arith.constant 0 : index
      %157 = vector.load %arg8[%c0_85, %c6, %c0_86, %c0_87] : memref<2x8x32x8xf32, #tpu.memory_space<vmem>>, vector<1x1x32x8xf32>
      %158 = vector.shape_cast %157 : vector<1x1x32x8xf32> to vector<32x8xf32>
      %159 = vector.shape_cast %156 : vector<32x8xf32> to vector<1x1x32x8xf32>
      tpu.vector_store %arg8[%c0_85, %c6, %c0_86, %c0_87], %159 {strides = array<i32>} : memref<2x8x32x8xf32, #tpu.memory_space<vmem>>, vector<1x1x32x8xf32>,
      %160 = vector.extract_strided_slice %107 {offsets = [0, 112], sizes = [32, 8], strides = [1, 1]} : vector<32x128xf32> to vector<32x8xf32>
      %c0_88 = arith.constant 0 : index
      %c6_89 = arith.constant 6 : index
      %c0_90 = arith.constant 0 : index
      %c0_91 = arith.constant 0 : index
      %161 = vector.load %arg9[%c0_88, %c6_89, %c0_90, %c0_91] : memref<2x8x32x8xf32, #tpu.memory_space<vmem>>, vector<1x1x32x8xf32>
      %162 = vector.shape_cast %161 : vector<1x1x32x8xf32> to vector<32x8xf32>
      %163 = vector.shape_cast %160 : vector<32x8xf32> to vector<1x1x32x8xf32>
      tpu.vector_store %arg9[%c0_88, %c6_89, %c0_90, %c0_91], %163 {strides = array<i32>} : memref<2x8x32x8xf32, #tpu.memory_space<vmem>>, vector<1x1x32x8xf32>,
      %164 = vector.extract_strided_slice %107 {offsets = [0, 56], sizes = [32, 8], strides = [1, 1]} : vector<32x128xf32> to vector<32x8xf32>
      %c0_92 = arith.constant 0 : index
      %c7 = arith.constant 7 : index
      %c0_93 = arith.constant 0 : index
      %c0_94 = arith.constant 0 : index
      %165 = vector.load %arg8[%c0_92, %c7, %c0_93, %c0_94] : memref<2x8x32x8xf32, #tpu.memory_space<vmem>>, vector<1x1x32x8xf32>
      %166 = vector.shape_cast %165 : vector<1x1x32x8xf32> to vector<32x8xf32>
      %167 = vector.shape_cast %164 : vector<32x8xf32> to vector<1x1x32x8xf32>
      tpu.vector_store %arg8[%c0_92, %c7, %c0_93, %c0_94], %167 {strides = array<i32>} : memref<2x8x32x8xf32, #tpu.memory_space<vmem>>, vector<1x1x32x8xf32>,
      %168 = vector.extract_strided_slice %107 {offsets = [0, 120], sizes = [32, 8], strides = [1, 1]} : vector<32x128xf32> to vector<32x8xf32>
      %c0_95 = arith.constant 0 : index
      %c7_96 = arith.constant 7 : index
      %c0_97 = arith.constant 0 : index
      %c0_98 = arith.constant 0 : index
      %169 = vector.load %arg9[%c0_95, %c7_96, %c0_97, %c0_98] : memref<2x8x32x8xf32, #tpu.memory_space<vmem>>, vector<1x1x32x8xf32>
      %170 = vector.shape_cast %169 : vector<1x1x32x8xf32> to vector<32x8xf32>
      %171 = vector.shape_cast %168 : vector<32x8xf32> to vector<1x1x32x8xf32>
      tpu.vector_store %arg9[%c0_95, %c7_96, %c0_97, %c0_98], %171 {strides = array<i32>} : memref<2x8x32x8xf32, #tpu.memory_space<vmem>>, vector<1x1x32x8xf32>,
      %c0_99 = arith.constant 0 : index
      %c32 = arith.constant 32 : index
      %c0_100 = arith.constant 0 : index
      %172 = vector.load %arg2[%c0_99, %c32, %c0_100] : memref<1x64x64xf32, #tpu.memory_space<vmem>>, vector<1x32x64xf32>
      %173 = vector.shape_cast %172 : vector<1x32x64xf32> to vector<32x64xf32>
      %cst_101 = arith.constant dense<0.000000e+00> : vector<32x128xf32>
      %174 = tpu.matmul %173, %104, %cst_101 {dimension_numbers = #tpu.dot_dimension_numbers<[1], [0], [0], [1], [0, 0, 1, 1], [], []>} : vector<32x64xf32>, vector<64x128xf32>, vector<32x128xf32> -> vector<32x128xf32>
      %175 = vector.extract_strided_slice %174 {offsets = [0, 0], sizes = [32, 8], strides = [1, 1]} : vector<32x128xf32> to vector<32x8xf32>
      %c1_102 = arith.constant 1 : index
      %c0_103 = arith.constant 0 : index
      %c0_104 = arith.constant 0 : index
      %c0_105 = arith.constant 0 : index
      %176 = vector.load %arg8[%c1_102, %c0_103, %c0_104, %c0_105] : memref<2x8x32x8xf32, #tpu.memory_space<vmem>>, vector<1x1x32x8xf32>
      %177 = vector.shape_cast %176 : vector<1x1x32x8xf32> to vector<32x8xf32>
      %178 = vector.shape_cast %175 : vector<32x8xf32> to vector<1x1x32x8xf32>
      tpu.vector_store %arg8[%c1_102, %c0_103, %c0_104, %c0_105], %178 {strides = array<i32>} : memref<2x8x32x8xf32, #tpu.memory_space<vmem>>, vector<1x1x32x8xf32>,
      %179 = vector.extract_strided_slice %174 {offsets = [0, 64], sizes = [32, 8], strides = [1, 1]} : vector<32x128xf32> to vector<32x8xf32>
      %c1_106 = arith.constant 1 : index
      %c0_107 = arith.constant 0 : index
      %c0_108 = arith.constant 0 : index
      %c0_109 = arith.constant 0 : index
      %180 = vector.load %arg9[%c1_106, %c0_107, %c0_108, %c0_109] : memref<2x8x32x8xf32, #tpu.memory_space<vmem>>, vector<1x1x32x8xf32>
      %181 = vector.shape_cast %180 : vector<1x1x32x8xf32> to vector<32x8xf32>
      %182 = vector.shape_cast %179 : vector<32x8xf32> to vector<1x1x32x8xf32>
      tpu.vector_store %arg9[%c1_106, %c0_107, %c0_108, %c0_109], %182 {strides = array<i32>} : memref<2x8x32x8xf32, #tpu.memory_space<vmem>>, vector<1x1x32x8xf32>,
      %183 = vector.extract_strided_slice %174 {offsets = [0, 8], sizes = [32, 8], strides = [1, 1]} : vector<32x128xf32> to vector<32x8xf32>
      %c1_110 = arith.constant 1 : index
      %c1_111 = arith.constant 1 : index
      %c0_112 = arith.constant 0 : index
      %c0_113 = arith.constant 0 : index
      %184 = vector.load %arg8[%c1_110, %c1_111, %c0_112, %c0_113] : memref<2x8x32x8xf32, #tpu.memory_space<vmem>>, vector<1x1x32x8xf32>
      %185 = vector.shape_cast %184 : vector<1x1x32x8xf32> to vector<32x8xf32>
      %186 = vector.shape_cast %183 : vector<32x8xf32> to vector<1x1x32x8xf32>
      tpu.vector_store %arg8[%c1_110, %c1_111, %c0_112, %c0_113], %186 {strides = array<i32>} : memref<2x8x32x8xf32, #tpu.memory_space<vmem>>, vector<1x1x32x8xf32>,
      %187 = vector.extract_strided_slice %174 {offsets = [0, 72], sizes = [32, 8], strides = [1, 1]} : vector<32x128xf32> to vector<32x8xf32>
      %c1_114 = arith.constant 1 : index
      %c1_115 = arith.constant 1 : index
      %c0_116 = arith.constant 0 : index
      %c0_117 = arith.constant 0 : index
      %188 = vector.load %arg9[%c1_114, %c1_115, %c0_116, %c0_117] : memref<2x8x32x8xf32, #tpu.memory_space<vmem>>, vector<1x1x32x8xf32>
      %189 = vector.shape_cast %188 : vector<1x1x32x8xf32> to vector<32x8xf32>
      %190 = vector.shape_cast %187 : vector<32x8xf32> to vector<1x1x32x8xf32>
      tpu.vector_store %arg9[%c1_114, %c1_115, %c0_116, %c0_117], %190 {strides = array<i32>} : memref<2x8x32x8xf32, #tpu.memory_space<vmem>>, vector<1x1x32x8xf32>,
      %191 = vector.extract_strided_slice %174 {offsets = [0, 16], sizes = [32, 8], strides = [1, 1]} : vector<32x128xf32> to vector<32x8xf32>
      %c1_118 = arith.constant 1 : index
      %c2_119 = arith.constant 2 : index
      %c0_120 = arith.constant 0 : index
      %c0_121 = arith.constant 0 : index
      %192 = vector.load %arg8[%c1_118, %c2_119, %c0_120, %c0_121] : memref<2x8x32x8xf32, #tpu.memory_space<vmem>>, vector<1x1x32x8xf32>
      %193 = vector.shape_cast %192 : vector<1x1x32x8xf32> to vector<32x8xf32>
      %194 = vector.shape_cast %191 : vector<32x8xf32> to vector<1x1x32x8xf32>
      tpu.vector_store %arg8[%c1_118, %c2_119, %c0_120, %c0_121], %194 {strides = array<i32>} : memref<2x8x32x8xf32, #tpu.memory_space<vmem>>, vector<1x1x32x8xf32>,
      %195 = vector.extract_strided_slice %174 {offsets = [0, 80], sizes = [32, 8], strides = [1, 1]} : vector<32x128xf32> to vector<32x8xf32>
      %c1_122 = arith.constant 1 : index
      %c2_123 = arith.constant 2 : index
      %c0_124 = arith.constant 0 : index
      %c0_125 = arith.constant 0 : index
      %196 = vector.load %arg9[%c1_122, %c2_123, %c0_124, %c0_125] : memref<2x8x32x8xf32, #tpu.memory_space<vmem>>, vector<1x1x32x8xf32>
      %197 = vector.shape_cast %196 : vector<1x1x32x8xf32> to vector<32x8xf32>
      %198 = vector.shape_cast %195 : vector<32x8xf32> to vector<1x1x32x8xf32>
      tpu.vector_store %arg9[%c1_122, %c2_123, %c0_124, %c0_125], %198 {strides = array<i32>} : memref<2x8x32x8xf32, #tpu.memory_space<vmem>>, vector<1x1x32x8xf32>,
      %199 = vector.extract_strided_slice %174 {offsets = [0, 24], sizes = [32, 8], strides = [1, 1]} : vector<32x128xf32> to vector<32x8xf32>
      %c1_126 = arith.constant 1 : index
      %c3_127 = arith.constant 3 : index
      %c0_128 = arith.constant 0 : index
      %c0_129 = arith.constant 0 : index
      %200 = vector.load %arg8[%c1_126, %c3_127, %c0_128, %c0_129] : memref<2x8x32x8xf32, #tpu.memory_space<vmem>>, vector<1x1x32x8xf32>
      %201 = vector.shape_cast %200 : vector<1x1x32x8xf32> to vector<32x8xf32>
      %202 = vector.shape_cast %199 : vector<32x8xf32> to vector<1x1x32x8xf32>
      tpu.vector_store %arg8[%c1_126, %c3_127, %c0_128, %c0_129], %202 {strides = array<i32>} : memref<2x8x32x8xf32, #tpu.memory_space<vmem>>, vector<1x1x32x8xf32>,
      %203 = vector.extract_strided_slice %174 {offsets = [0, 88], sizes = [32, 8], strides = [1, 1]} : vector<32x128xf32> to vector<32x8xf32>
      %c1_130 = arith.constant 1 : index
      %c3_131 = arith.constant 3 : index
      %c0_132 = arith.constant 0 : index
      %c0_133 = arith.constant 0 : index
      %204 = vector.load %arg9[%c1_130, %c3_131, %c0_132, %c0_133] : memref<2x8x32x8xf32, #tpu.memory_space<vmem>>, vector<1x1x32x8xf32>
      %205 = vector.shape_cast %204 : vector<1x1x32x8xf32> to vector<32x8xf32>
      %206 = vector.shape_cast %203 : vector<32x8xf32> to vector<1x1x32x8xf32>
      tpu.vector_store %arg9[%c1_130, %c3_131, %c0_132, %c0_133], %206 {strides = array<i32>} : memref<2x8x32x8xf32, #tpu.memory_space<vmem>>, vector<1x1x32x8xf32>,
      %207 = vector.extract_strided_slice %174 {offsets = [0, 32], sizes = [32, 8], strides = [1, 1]} : vector<32x128xf32> to vector<32x8xf32>
      %c1_134 = arith.constant 1 : index
      %c4_135 = arith.constant 4 : index
      %c0_136 = arith.constant 0 : index
      %c0_137 = arith.constant 0 : index
      %208 = vector.load %arg8[%c1_134, %c4_135, %c0_136, %c0_137] : memref<2x8x32x8xf32, #tpu.memory_space<vmem>>, vector<1x1x32x8xf32>
      %209 = vector.shape_cast %208 : vector<1x1x32x8xf32> to vector<32x8xf32>
      %210 = vector.shape_cast %207 : vector<32x8xf32> to vector<1x1x32x8xf32>
      tpu.vector_store %arg8[%c1_134, %c4_135, %c0_136, %c0_137], %210 {strides = array<i32>} : memref<2x8x32x8xf32, #tpu.memory_space<vmem>>, vector<1x1x32x8xf32>,
      %211 = vector.extract_strided_slice %174 {offsets = [0, 96], sizes = [32, 8], strides = [1, 1]} : vector<32x128xf32> to vector<32x8xf32>
      %c1_138 = arith.constant 1 : index
      %c4_139 = arith.constant 4 : index
      %c0_140 = arith.constant 0 : index
      %c0_141 = arith.constant 0 : index
      %212 = vector.load %arg9[%c1_138, %c4_139, %c0_140, %c0_141] : memref<2x8x32x8xf32, #tpu.memory_space<vmem>>, vector<1x1x32x8xf32>
      %213 = vector.shape_cast %212 : vector<1x1x32x8xf32> to vector<32x8xf32>
      %214 = vector.shape_cast %211 : vector<32x8xf32> to vector<1x1x32x8xf32>
      tpu.vector_store %arg9[%c1_138, %c4_139, %c0_140, %c0_141], %214 {strides = array<i32>} : memref<2x8x32x8xf32, #tpu.memory_space<vmem>>, vector<1x1x32x8xf32>,
      %215 = vector.extract_strided_slice %174 {offsets = [0, 40], sizes = [32, 8], strides = [1, 1]} : vector<32x128xf32> to vector<32x8xf32>
      %c1_142 = arith.constant 1 : index
      %c5_143 = arith.constant 5 : index
      %c0_144 = arith.constant 0 : index
      %c0_145 = arith.constant 0 : index
      %216 = vector.load %arg8[%c1_142, %c5_143, %c0_144, %c0_145] : memref<2x8x32x8xf32, #tpu.memory_space<vmem>>, vector<1x1x32x8xf32>
      %217 = vector.shape_cast %216 : vector<1x1x32x8xf32> to vector<32x8xf32>
      %218 = vector.shape_cast %215 : vector<32x8xf32> to vector<1x1x32x8xf32>
      tpu.vector_store %arg8[%c1_142, %c5_143, %c0_144, %c0_145], %218 {strides = array<i32>} : memref<2x8x32x8xf32, #tpu.memory_space<vmem>>, vector<1x1x32x8xf32>,
      %219 = vector.extract_strided_slice %174 {offsets = [0, 104], sizes = [32, 8], strides = [1, 1]} : vector<32x128xf32> to vector<32x8xf32>
      %c1_146 = arith.constant 1 : index
      %c5_147 = arith.constant 5 : index
      %c0_148 = arith.constant 0 : index
      %c0_149 = arith.constant 0 : index
      %220 = vector.load %arg9[%c1_146, %c5_147, %c0_148, %c0_149] : memref<2x8x32x8xf32, #tpu.memory_space<vmem>>, vector<1x1x32x8xf32>
      %221 = vector.shape_cast %220 : vector<1x1x32x8xf32> to vector<32x8xf32>
      %222 = vector.shape_cast %219 : vector<32x8xf32> to vector<1x1x32x8xf32>
      tpu.vector_store %arg9[%c1_146, %c5_147, %c0_148, %c0_149], %222 {strides = array<i32>} : memref<2x8x32x8xf32, #tpu.memory_space<vmem>>, vector<1x1x32x8xf32>,
      %223 = vector.extract_strided_slice %174 {offsets = [0, 48], sizes = [32, 8], strides = [1, 1]} : vector<32x128xf32> to vector<32x8xf32>
      %c1_150 = arith.constant 1 : index
      %c6_151 = arith.constant 6 : index
      %c0_152 = arith.constant 0 : index
      %c0_153 = arith.constant 0 : index
      %224 = vector.load %arg8[%c1_150, %c6_151, %c0_152, %c0_153] : memref<2x8x32x8xf32, #tpu.memory_space<vmem>>, vector<1x1x32x8xf32>
      %225 = vector.shape_cast %224 : vector<1x1x32x8xf32> to vector<32x8xf32>
      %226 = vector.shape_cast %223 : vector<32x8xf32> to vector<1x1x32x8xf32>
      tpu.vector_store %arg8[%c1_150, %c6_151, %c0_152, %c0_153], %226 {strides = array<i32>} : memref<2x8x32x8xf32, #tpu.memory_space<vmem>>, vector<1x1x32x8xf32>,
      %227 = vector.extract_strided_slice %174 {offsets = [0, 112], sizes = [32, 8], strides = [1, 1]} : vector<32x128xf32> to vector<32x8xf32>
      %c1_154 = arith.constant 1 : index
      %c6_155 = arith.constant 6 : index
      %c0_156 = arith.constant 0 : index
      %c0_157 = arith.constant 0 : index
      %228 = vector.load %arg9[%c1_154, %c6_155, %c0_156, %c0_157] : memref<2x8x32x8xf32, #tpu.memory_space<vmem>>, vector<1x1x32x8xf32>
      %229 = vector.shape_cast %228 : vector<1x1x32x8xf32> to vector<32x8xf32>
      %230 = vector.shape_cast %227 : vector<32x8xf32> to vector<1x1x32x8xf32>
      tpu.vector_store %arg9[%c1_154, %c6_155, %c0_156, %c0_157], %230 {strides = array<i32>} : memref<2x8x32x8xf32, #tpu.memory_space<vmem>>, vector<1x1x32x8xf32>,
      %231 = vector.extract_strided_slice %174 {offsets = [0, 56], sizes = [32, 8], strides = [1, 1]} : vector<32x128xf32> to vector<32x8xf32>
      %c1_158 = arith.constant 1 : index
      %c7_159 = arith.constant 7 : index
      %c0_160 = arith.constant 0 : index
      %c0_161 = arith.constant 0 : index
      %232 = vector.load %arg8[%c1_158, %c7_159, %c0_160, %c0_161] : memref<2x8x32x8xf32, #tpu.memory_space<vmem>>, vector<1x1x32x8xf32>
      %233 = vector.shape_cast %232 : vector<1x1x32x8xf32> to vector<32x8xf32>
      %234 = vector.shape_cast %231 : vector<32x8xf32> to vector<1x1x32x8xf32>
      tpu.vector_store %arg8[%c1_158, %c7_159, %c0_160, %c0_161], %234 {strides = array<i32>} : memref<2x8x32x8xf32, #tpu.memory_space<vmem>>, vector<1x1x32x8xf32>,
      %235 = vector.extract_strided_slice %174 {offsets = [0, 120], sizes = [32, 8], strides = [1, 1]} : vector<32x128xf32> to vector<32x8xf32>
      %c1_162 = arith.constant 1 : index
      %c7_163 = arith.constant 7 : index
      %c0_164 = arith.constant 0 : index
      %c0_165 = arith.constant 0 : index
      %236 = vector.load %arg9[%c1_162, %c7_163, %c0_164, %c0_165] : memref<2x8x32x8xf32, #tpu.memory_space<vmem>>, vector<1x1x32x8xf32>
      %237 = vector.shape_cast %236 : vector<1x1x32x8xf32> to vector<32x8xf32>
      %238 = vector.shape_cast %235 : vector<32x8xf32> to vector<1x1x32x8xf32>
      tpu.vector_store %arg9[%c1_162, %c7_163, %c0_164, %c0_165], %238 {strides = array<i32>} : memref<2x8x32x8xf32, #tpu.memory_space<vmem>>, vector<1x1x32x8xf32>,
    } else {
    }
    %c32_i32 = arith.constant 32 : i32
    %3 = arith.muli %arg1, %c32_i32 : i32
    %4 = tpu.assume_multiple %3, 32 : i32
    %c0 = arith.constant 0 : index
    %5 = arith.index_cast %4 : i32 to index
    %c0_1 = arith.constant 0 : index
    %6 = vector.load %arg2[%c0, %5, %c0_1] : memref<1x64x64xf32, #tpu.memory_space<vmem>>, vector<1x32x64xf32>
    %7 = vector.shape_cast %6 : vector<1x32x64xf32> to vector<32x64xf32>
    %c0_2 = arith.constant 0 : index
    %c0_3 = arith.constant 0 : index
    %8 = vector.load %arg3[%c0_2, %c0_3] : memref<64x64xf32, #tpu.memory_space<vmem>>, vector<64x64xf32>
    %cst = arith.constant dense<0.000000e+00> : vector<32x64xf32>
    %9 = tpu.matmul %7, %8, %cst {dimension_numbers = #tpu.dot_dimension_numbers<[1], [0], [0], [1], [0, 0, 1, 1], [], []>} : vector<32x64xf32>, vector<64x64xf32>, vector<32x64xf32> -> vector<32x64xf32>
    %10 = vector.extract_strided_slice %9 {offsets = [0, 0], sizes = [32, 8], strides = [1, 1]} : vector<32x64xf32> to vector<32x8xf32>
    %11 = vector.extract_strided_slice %9 {offsets = [0, 8], sizes = [32, 8], strides = [1, 1]} : vector<32x64xf32> to vector<32x8xf32>
    %12 = vector.extract_strided_slice %9 {offsets = [0, 16], sizes = [32, 8], strides = [1, 1]} : vector<32x64xf32> to vector<32x8xf32>
    %13 = vector.extract_strided_slice %9 {offsets = [0, 24], sizes = [32, 8], strides = [1, 1]} : vector<32x64xf32> to vector<32x8xf32>
    %14 = vector.extract_strided_slice %9 {offsets = [0, 32], sizes = [32, 8], strides = [1, 1]} : vector<32x64xf32> to vector<32x8xf32>
    %15 = vector.extract_strided_slice %9 {offsets = [0, 40], sizes = [32, 8], strides = [1, 1]} : vector<32x64xf32> to vector<32x8xf32>
    %16 = vector.extract_strided_slice %9 {offsets = [0, 48], sizes = [32, 8], strides = [1, 1]} : vector<32x64xf32> to vector<32x8xf32>
    %17 = vector.extract_strided_slice %9 {offsets = [0, 56], sizes = [32, 8], strides = [1, 1]} : vector<32x64xf32> to vector<32x8xf32>
    %18 = vector.shape_cast %10 : vector<32x8xf32> to vector<1x32x8xf32>
    %19 = vector.shape_cast %11 : vector<32x8xf32> to vector<1x32x8xf32>
    %20 = vector.shape_cast %12 : vector<32x8xf32> to vector<1x32x8xf32>
    %21 = vector.shape_cast %13 : vector<32x8xf32> to vector<1x32x8xf32>
    %22 = vector.shape_cast %14 : vector<32x8xf32> to vector<1x32x8xf32>
    %23 = vector.shape_cast %15 : vector<32x8xf32> to vector<1x32x8xf32>
    %24 = vector.shape_cast %16 : vector<32x8xf32> to vector<1x32x8xf32>
    %25 = vector.shape_cast %17 : vector<32x8xf32> to vector<1x32x8xf32>
    %26 = tpu.concatenate %18, %19, %20, %21, %22, %23, %24, %25 in 0 : vector<1x32x8xf32>, vector<1x32x8xf32>, vector<1x32x8xf32>, vector<1x32x8xf32>, vector<1x32x8xf32>, vector<1x32x8xf32>, vector<1x32x8xf32>, vector<1x32x8xf32> -> vector<8x32x8xf32>
    %cst_4 = arith.constant 0xFF800000 : f32
    %27 = vector.broadcast %cst_4 : f32 to vector<8x32x1xf32>
    %cst_5 = arith.constant 0.000000e+00 : f32
    %28 = vector.broadcast %cst_5 : f32 to vector<8x32x1xf32>
    %cst_6 = arith.constant 0.000000e+00 : f32
    %29 = vector.broadcast %cst_6 : f32 to vector<8x32x8xf32>
    %c0_i32_7 = arith.constant 0 : i32
    %30 = arith.index_cast %c0_i32_7 : i32 to index
    %c0_8 = arith.constant 0 : index
    %c0_9 = arith.constant 0 : index
    %c0_10 = arith.constant 0 : index
    %31 = vector.load %arg8[%30, %c0_8, %c0_9, %c0_10] : memref<2x8x32x8xf32, #tpu.memory_space<vmem>>, vector<1x8x32x8xf32>
    %32 = vector.shape_cast %31 : vector<1x8x32x8xf32> to vector<8x32x8xf32>
    %33 = arith.index_cast %c0_i32_7 : i32 to index
    %c0_11 = arith.constant 0 : index
    %c0_12 = arith.constant 0 : index
    %c0_13 = arith.constant 0 : index
    %34 = vector.load %arg9[%33, %c0_11, %c0_12, %c0_13] : memref<2x8x32x8xf32, #tpu.memory_space<vmem>>, vector<1x8x32x8xf32>
    %35 = vector.shape_cast %34 : vector<1x8x32x8xf32> to vector<8x32x8xf32>
    "tpu.trace_start"() <{level = 10 : i32, message = "hqd,hkd->hqk"}> : () -> ()
    %cst_14 = arith.constant dense<0.000000e+00> : vector<8x32x32xf32>
    %36 = tpu.matmul %26, %32, %cst_14 {dimension_numbers = #tpu.dot_dimension_numbers<[2], [2], [1], [1], [0, 0, 0, 1, 1, 1], [0], [0]>} : vector<8x32x8xf32>, vector<8x32x8xf32>, vector<8x32x32xf32> -> vector<8x32x32xf32>
    "tpu.trace_stop"() : () -> ()
    %cst_15 = arith.constant dense<0xFF800000> : vector<8x32xf32>
    %37 = vector.multi_reduction <maximumf>, %36, %cst_15 [2] : vector<8x32x32xf32> to vector<8x32xf32>
    %38 = vector.shape_cast %37 : vector<8x32xf32> to vector<8x32x1xf32>
    %39 = arith.maximumf %27, %38 : vector<8x32x1xf32>
    %40 = arith.subf %27, %39 : vector<8x32x1xf32>
    %41 = math.exp %40 : vector<8x32x1xf32>
    %42 = vector.broadcast %39 : vector<8x32x1xf32> to vector<8x32x32xf32>
    %43 = arith.subf %36, %42 : vector<8x32x32xf32>
    %44 = math.exp %43 : vector<8x32x32xf32>
    %45 = arith.mulf %41, %28 : vector<8x32x1xf32>
    %cst_16 = arith.constant dense<0.000000e+00> : vector<8x32xf32>
    %46 = vector.multi_reduction <add>, %44, %cst_16 [2] : vector<8x32x32xf32> to vector<8x32xf32>
    %47 = vector.shape_cast %46 : vector<8x32xf32> to vector<8x32x1xf32>
    %48 = arith.addf %45, %47 : vector<8x32x1xf32>
    "tpu.trace_start"() <{level = 10 : i32, message = "hqk,hkd->hqd"}> : () -> ()
    %cst_17 = arith.constant dense<0.000000e+00> : vector<8x32x8xf32>
    %49 = tpu.matmul %44, %35, %cst_17 {dimension_numbers = #tpu.dot_dimension_numbers<[2], [1], [1], [2], [0, 0, 0, 1, 1, 2], [0], [0]>} : vector<8x32x32xf32>, vector<8x32x8xf32>, vector<8x32x8xf32> -> vector<8x32x8xf32>
    "tpu.trace_stop"() : () -> ()
    %50 = vector.broadcast %41 : vector<8x32x1xf32> to vector<8x32x8xf32>
    %51 = arith.mulf %50, %29 : vector<8x32x8xf32>
    %52 = arith.addf %51, %49 : vector<8x32x8xf32>
    %c1_i32 = arith.constant 1 : i32
    %53 = arith.index_cast %c1_i32 : i32 to index
    %c0_18 = arith.constant 0 : index
    %c0_19 = arith.constant 0 : index
    %c0_20 = arith.constant 0 : index
    %54 = vector.load %arg8[%53, %c0_18, %c0_19, %c0_20] : memref<2x8x32x8xf32, #tpu.memory_space<vmem>>, vector<1x8x32x8xf32>
    %55 = vector.shape_cast %54 : vector<1x8x32x8xf32> to vector<8x32x8xf32>
    %56 = arith.index_cast %c1_i32 : i32 to index
    %c0_21 = arith.constant 0 : index
    %c0_22 = arith.constant 0 : index
    %c0_23 = arith.constant 0 : index
    %57 = vector.load %arg9[%56, %c0_21, %c0_22, %c0_23] : memref<2x8x32x8xf32, #tpu.memory_space<vmem>>, vector<1x8x32x8xf32>
    %58 = vector.shape_cast %57 : vector<1x8x32x8xf32> to vector<8x32x8xf32>
    "tpu.trace_start"() <{level = 10 : i32, message = "hqd,hkd->hqk"}> : () -> ()
    %cst_24 = arith.constant dense<0.000000e+00> : vector<8x32x32xf32>
    %59 = tpu.matmul %26, %55, %cst_24 {dimension_numbers = #tpu.dot_dimension_numbers<[2], [2], [1], [1], [0, 0, 0, 1, 1, 1], [0], [0]>} : vector<8x32x8xf32>, vector<8x32x8xf32>, vector<8x32x32xf32> -> vector<8x32x32xf32>
    "tpu.trace_stop"() : () -> ()
    %cst_25 = arith.constant dense<0xFF800000> : vector<8x32xf32>
    %60 = vector.multi_reduction <maximumf>, %59, %cst_25 [2] : vector<8x32x32xf32> to vector<8x32xf32>
    %61 = vector.shape_cast %60 : vector<8x32xf32> to vector<8x32x1xf32>
    %62 = arith.maximumf %39, %61 : vector<8x32x1xf32>
    %63 = arith.subf %39, %62 : vector<8x32x1xf32>
    %64 = math.exp %63 : vector<8x32x1xf32>
    %65 = vector.broadcast %62 : vector<8x32x1xf32> to vector<8x32x32xf32>
    %66 = arith.subf %59, %65 : vector<8x32x32xf32>
    %67 = math.exp %66 : vector<8x32x32xf32>
    %68 = arith.mulf %64, %48 : vector<8x32x1xf32>
    %cst_26 = arith.constant dense<0.000000e+00> : vector<8x32xf32>
    %69 = vector.multi_reduction <add>, %67, %cst_26 [2] : vector<8x32x32xf32> to vector<8x32xf32>
    %70 = vector.shape_cast %69 : vector<8x32xf32> to vector<8x32x1xf32>
    %71 = arith.addf %68, %70 : vector<8x32x1xf32>
    "tpu.trace_start"() <{level = 10 : i32, message = "hqk,hkd->hqd"}> : () -> ()
    %cst_27 = arith.constant dense<0.000000e+00> : vector<8x32x8xf32>
    %72 = tpu.matmul %67, %58, %cst_27 {dimension_numbers = #tpu.dot_dimension_numbers<[2], [1], [1], [2], [0, 0, 0, 1, 1, 2], [0], [0]>} : vector<8x32x32xf32>, vector<8x32x8xf32>, vector<8x32x8xf32> -> vector<8x32x8xf32>
    "tpu.trace_stop"() : () -> ()
    %73 = vector.broadcast %64 : vector<8x32x1xf32> to vector<8x32x8xf32>
    %74 = arith.mulf %73, %52 : vector<8x32x8xf32>
    %75 = arith.addf %74, %72 : vector<8x32x8xf32>
    %c2_i32 = arith.constant 2 : i32
    %76 = tpu.reciprocal %71 : vector<8x32x1xf32> -> vector<8x32x1xf32>
    %77 = vector.broadcast %76 : vector<8x32x1xf32> to vector<8x32x8xf32>
    %78 = arith.mulf %75, %77 : vector<8x32x8xf32>
    %79 = vector.extract_strided_slice %78 {offsets = [0, 0, 0], sizes = [1, 32, 8], strides = [1, 1, 1]} : vector<8x32x8xf32> to vector<1x32x8xf32>
    %80 = vector.shape_cast %79 : vector<1x32x8xf32> to vector<32x8xf32>
    %81 = vector.extract_strided_slice %78 {offsets = [1, 0, 0], sizes = [1, 32, 8], strides = [1, 1, 1]} : vector<8x32x8xf32> to vector<1x32x8xf32>
    %82 = vector.shape_cast %81 : vector<1x32x8xf32> to vector<32x8xf32>
    %83 = vector.extract_strided_slice %78 {offsets = [2, 0, 0], sizes = [1, 32, 8], strides = [1, 1, 1]} : vector<8x32x8xf32> to vector<1x32x8xf32>
    %84 = vector.shape_cast %83 : vector<1x32x8xf32> to vector<32x8xf32>
    %85 = vector.extract_strided_slice %78 {offsets = [3, 0, 0], sizes = [1, 32, 8], strides = [1, 1, 1]} : vector<8x32x8xf32> to vector<1x32x8xf32>
    %86 = vector.shape_cast %85 : vector<1x32x8xf32> to vector<32x8xf32>
    %87 = vector.extract_strided_slice %78 {offsets = [4, 0, 0], sizes = [1, 32, 8], strides = [1, 1, 1]} : vector<8x32x8xf32> to vector<1x32x8xf32>
    %88 = vector.shape_cast %87 : vector<1x32x8xf32> to vector<32x8xf32>
    %89 = vector.extract_strided_slice %78 {offsets = [5, 0, 0], sizes = [1, 32, 8], strides = [1, 1, 1]} : vector<8x32x8xf32> to vector<1x32x8xf32>
    %90 = vector.shape_cast %89 : vector<1x32x8xf32> to vector<32x8xf32>
    %91 = vector.extract_strided_slice %78 {offsets = [6, 0, 0], sizes = [1, 32, 8], strides = [1, 1, 1]} : vector<8x32x8xf32> to vector<1x32x8xf32>
    %92 = vector.shape_cast %91 : vector<1x32x8xf32> to vector<32x8xf32>
    %93 = vector.extract_strided_slice %78 {offsets = [7, 0, 0], sizes = [1, 32, 8], strides = [1, 1, 1]} : vector<8x32x8xf32> to vector<1x32x8xf32>
    %94 = vector.shape_cast %93 : vector<1x32x8xf32> to vector<32x8xf32>
    %95 = tpu.concatenate %80, %82, %84, %86, %88, %90, %92, %94 in 1 : vector<32x8xf32>, vector<32x8xf32>, vector<32x8xf32>, vector<32x8xf32>, vector<32x8xf32>, vector<32x8xf32>, vector<32x8xf32>, vector<32x8xf32> -> vector<32x64xf32>
    %c0_28 = arith.constant 0 : index
    %c0_29 = arith.constant 0 : index
    %96 = vector.load %arg5[%c0_28, %c0_29] : memref<64x64xf32, #tpu.memory_space<vmem>>, vector<64x64xf32>
    %cst_30 = arith.constant dense<0.000000e+00> : vector<32x64xf32>
    %97 = tpu.matmul %95, %96, %cst_30 {dimension_numbers = #tpu.dot_dimension_numbers<[1], [0], [0], [1], [0, 0, 1, 1], [], []>} : vector<32x64xf32>, vector<64x64xf32>, vector<32x64xf32> -> vector<32x64xf32>
    %c0_31 = arith.constant 0 : index
    %c0_32 = arith.constant 0 : index
    %98 = vector.load %arg6[%c0_31, %c0_32] : memref<1x64xf32, #tpu.memory_space<vmem>>, vector<1x64xf32>
    %99 = vector.broadcast %98 : vector<1x64xf32> to vector<32x64xf32>
    %100 = arith.addf %97, %99 : vector<32x64xf32>
    %c0_33 = arith.constant 0 : index
    %c0_34 = arith.constant 0 : index
    %c0_35 = arith.constant 0 : index
    %101 = vector.load %arg7[%c0_33, %c0_34, %c0_35] : memref<1x32x64xf32, #tpu.memory_space<vmem>>, vector<1x32x64xf32>
    %102 = vector.shape_cast %101 : vector<1x32x64xf32> to vector<32x64xf32>
    %103 = vector.shape_cast %100 : vector<32x64xf32> to vector<1x32x64xf32>
    tpu.vector_store %arg7[%c0_33, %c0_34, %c0_35], %103 {strides = array<i32>} : memref<1x32x64xf32, #tpu.memory_space<vmem>>, vector<1x32x64xf32>,
    return
  }
  func.func @transform_0(%arg0: i32, %arg1: i32) -> (i32, i32, i32) {
    %c0_i32 = arith.constant 0 : i32
    %c0_i32_0 = arith.constant 0 : i32
    %c0_i32_1 = arith.constant 0 : i32
    return %arg0, %c0_i32, %c0_i32_0 : i32, i32, i32
  }
  func.func @transform_1(%arg0: i32, %arg1: i32) -> (i32, i32) {
    %c0_i32 = arith.constant 0 : i32
    %c0_i32_0 = arith.constant 0 : i32
    %c0_i32_1 = arith.constant 0 : i32
    return %c0_i32, %c0_i32_0 : i32, i32
  }
  func.func @transform_2(%arg0: i32, %arg1: i32) -> (i32, i32) {
    %c0_i32 = arith.constant 0 : i32
    %c0_i32_0 = arith.constant 0 : i32
    %c0_i32_1 = arith.constant 0 : i32
    return %c0_i32, %c0_i32_0 : i32, i32
  }
  func.func @transform_3(%arg0: i32, %arg1: i32) -> (i32, i32) {
    %c0_i32 = arith.constant 0 : i32
    %c0_i32_0 = arith.constant 0 : i32
    %c0_i32_1 = arith.constant 0 : i32
    return %c0_i32, %c0_i32_0 : i32, i32
  }
  func.func @transform_4(%arg0: i32, %arg1: i32) -> (i32, i32) {
    %c0_i32 = arith.constant 0 : i32
    %c0_i32_0 = arith.constant 0 : i32
    %c0_i32_1 = arith.constant 0 : i32
    return %c0_i32, %c0_i32_0 : i32, i32
  }
  func.func @transform_5(%arg0: i32, %arg1: i32) -> (i32, i32, i32) {
    %c0_i32 = arith.constant 0 : i32
    %c0_i32_0 = arith.constant 0 : i32
    return %arg0, %arg1, %c0_i32 : i32, i32, i32
  }
}

</mosaic_0001>

<bundles_post_ra>
// kernel: tpu_custom_call.1
= control target key start
LH: loop header
LB: loop body
LE: loop exit
PB: predicated region body
PF: predicated region fallthrough
CT: control target
= control target key end

     0   :  { %s8289_s0 = inlined_call_operand.hbm [shape: f32[2,64,64], index: 0, kind: input, shape index: {}]   ;;  %s8290_s1 = inlined_call_operand.hbm [shape: f32[64,64], index: 1, kind: input, shape index: {}]   ;;  %s8291_s2 = inlined_call_operand.hbm [shape: f32[64,128], index: 2, kind: input, shape index: {}]   ;;  %s8292_s3 = inlined_call_operand.hbm [shape: f32[64,64], index: 3, kind: input, shape index: {}]   ;;  %s8293_s4 = inlined_call_operand.vmem [shape: f32[1,64], index: 4, kind: input, shape index: {}]   ;;  %s8294_s5 = inlined_call_operand.hbm [shape: f32[2,64,64], index: 5, kind: output, shape index: {}]  }
   0x1   :  { %8382 = sst [smem:[#allocation113_spill]] %s8290_s1 }
   0x2   :  { %8383 = sst [smem:[#allocation114_spill]] %s8291_s2 }
   0x3   :  { %8384 = sst [smem:[#allocation115_spill]] %s8292_s3 }
   0x4   :  { %8385 = sst [smem:[#allocation116_spill]] %s8294_s5 }
   0x5   :  { %10 = vsyncpa [#allocation5], 0 }
   0x6   :  { %12 = vsyncpa [#allocation5 + $0x1], 0 }
   0x7   :  { %13 = vsyncpa [#allocation8], 0 }
   0x8   :  { %14 = vsyncpa [#allocation11], 0 }
   0x9   :  { %15 = vsyncpa [#allocation6], 0 }
   0xa   :  { %17 = vsyncpa [#allocation6 + $0x1], 0  ;;  %s5470_s18 = smov 0   ;;  %s5472_s19 = smov 0  }
   0xb   :  { %s5474_s20 = smov 0   ;;  %s5476_s21 = smov 0  }
   0xc   :  { %s5478_s22 = smov 0   ;;  %s5480_s23 = smov 0  }
   0xd   :  { %s5482_s24 = smov 0   ;;  %s5484_s25 = smov 0  }
   0xe   :  { %s5486_s26 = smov 0   ;;  %s5488_s27 = smov 0  }
   0xf   :  { %s5490_s28 = smov 0  }
  0x10 LB: > { %8386 = sst [smem:[#allocation17_spill]] %s5363_s18  ;;  %s4406_s29 = sadd.s32 4294967295, %s5403_s28   ;;  %s5403_s28 = sphi %s5490_s28, %s23_s28   ;;  %s5399_s27 = sphi %s5488_s27, %s8731_s27   ;;  %s5395_s26 = sphi %s5486_s26, %s8722_s26   ;;  %s5391_s25 = sphi %s5484_s25, %s8730_s25   ;;  %s5387_s24 = sphi %s5482_s24, %s8721_s24   ;;  %s5383_s23 = sphi %s5480_s23, %s8729_s23   ;;  %s5379_s22 = sphi %s5478_s22, %s8728_s22   ;;  %s5375_s21 = sphi %s5476_s21, %s8727_s21   ;;  %s5371_s20 = sphi %s5474_s20, %s8726_s20   ;;  %s5367_s19 = sphi %s5472_s19, %s8725_s19   ;;  %s5363_s18 = sphi %s5470_s18, %s8724_s18  }
  0x11   : > { %8387 = sst [smem:[#allocation18_spill]] %s5395_s26  ;;  %s4407_s30 = sadd.s32 4294967294, %s5403_s28  }
  0x12   : > { %p55_p0 = scmp.ne.s32.totalorder %s5379_s22, %s5375_s21  ;;  %p5526_p1 = scmp.eq.s32.totalorder %s4406_s29, 0 }
  0x13   : > { %p164_p2 = scmp.ne.s32.totalorder %s5371_s20, %s5367_s19  ;;  %p165_p3 = scmp.eq.s32.totalorder %s4406_s29, 3 }
  0x14   : > { %p5534_p4 = por %p5526_p1, %p55_p0  ;;  %p170_p5 = scmp.ne.s32.totalorder %s5367_s19, %s5363_s18 }
  0x15   : > { %p5540_p6 = por %p165_p3, %p164_p2  ;;  %p171_p7 = scmp.eq.s32.totalorder %s4407_s30, 3 }
  0x16   : > { %p4408_p8 = scmp.ge.s32.totalorder %s5403_s28, 1  ;;  %p178_p9 = scmp.lt.s32.totalorder %s5403_s28, 5 }
  0x17   : > { %s8390_s8 = scalar_select %p5540_p6, 1, 0 }
  0x18   : > { %p5546_p10 = por %p171_p7, %p170_p5  ;;  %p5550_p11 = pnand %p4408_p8, %p178_p9 }
  0x19   : > { %8391 = sst [smem:[#allocation19_spill]] %s8390_s8  ;;  %s5405_s14 = smov [#allocation7]  }
  0x1a   : > { %s8392_s9 = scalar_select %p5546_p10, 1, 0 }
  0x1b   : > { %s8395_s1 = sld [smem:[#allocation113_spill]]  ;;  %p4683_p12 = pneg %p5550_p11 }
  0x1c   : > { %8393 = sst [smem:[#allocation20_spill]] %s8392_s9  ;;  %s191_s15 = sshll.u32 %s5405_s14, 4  ;;  %s192_s15 = int_to_ptr.vmem [resolvable:$true] %s191_s15 }
  0x1d   : > { %p5561_p13 = pnand %p4683_p12, %p5526_p1  ;;  %s8397_s2 = sld [smem:[#allocation114_spill]] }
  0x1e   : > { %s8295_s30 = smov 128   ;;  %s8296_s11 = smov 8  }
  0x1f   : > { %s8398_s3 = sld [smem:[#allocation115_spill]]  ;;  %s5408_s21 = smov [#allocation9]  }
  0x20   : > { %s35_s12 = sadd.s32 1, %s5399_s27  ;;  %s42_s14 = sadd.s32 1, %s5383_s23 }
  0x21   : > { %s189_s13 = sshll.u32 %s8395_s1, 4  ;;  %s205_s1 = sshll.u32 %s5408_s21, 4  ;;  %s190_s13 = int_to_ptr.hbm [resolvable:$true] %s189_s13  ;;  %s206_s1 = int_to_ptr.vmem [resolvable:$true] %s205_s1 }
  0x22   : > { %4686 = dma.hbm_to_vmem [thread:$0]  (!%p5561_p13), %s190_s13, 1024, %s192_s15, [#allocation8], %s8295_s30, %s8295_s30, %s8296_s11  }
  0x23   : > { %s203_s29 = sshll.u32 %s8397_s2, 4  ;;  %s5409_s2 = smov [#allocation10]   ;;  %s204_s29 = int_to_ptr.hbm [resolvable:$true] %s203_s29 }
  0x24   : > { %4689 = dma.hbm_to_vmem [thread:$0]  (!%p5561_p13), %s204_s29, 1024, %s206_s1, [#allocation8], %s8295_s30, %s8295_s30, %s8296_s11  }
  0x25   : > { %s217_s17 = sshll.u32 %s8398_s3, 4  ;;  %s219_s13 = sshll.u32 %s5409_s2, 4  ;;  %s218_s17 = int_to_ptr.hbm [resolvable:$true] %s217_s17  ;;  %s220_s13 = int_to_ptr.vmem [resolvable:$true] %s219_s13 }
  0x26   : > { %4692 = dma.hbm_to_vmem [thread:$0]  (!%p5561_p13), %s218_s17, 1024, %s220_s13, [#allocation11], %s8295_s30, %s8295_s30, %s8296_s11  }
  0x27   : > { %s32_s15 = sadd.s32 1, %s5395_s26  ;;  %p49_p2 = scmp.ne.s32.totalorder %s5383_s23, %s5379_s22 }
  0x28   : > { %p33_p0 = scmp.ge.s32.totalorder %s32_s15, 2  ;;  %p50_p3 = scmp.eq.s32.totalorder %s5403_s28, 0 }
  0x29   : > { %s154_s16 = sadd.s32 1, %s5371_s20  ;;  %p4704_p8 = scmp.lt.s32.totalorder %s5403_s28, 4 }
  0x2a   : > { %s8733_s15 = smov (%p33_p0, %s32_s15), 0  ;;  %s8735_s12 = smov (!%p33_p0, %s35_s12), %s5399_s27 }
  0x2b   : > { %8399 = sst [smem:[#allocation21_spill]] %s8733_s15  ;;  %p5595_p5 = por %p50_p3, %p49_p2 }
  0x2c   : > { %s150_s2 = ssub.s32 %s5395_s26, %s8733_s15  ;;  %p37_p7 = scmp.ge.s32.totalorder %s8735_s12, 2 }
  0x2d   : > { %s236_s29 = sand.u32 1, %s5383_s23   ;;  %s4638_s30 = sshll.u32 %s5399_s27, 6 }
  0x2e   : > { %s8737_s12 = smov (%p37_p7, %s8735_s12), 0  ;;  %s4413_s17 = sshll.u32 %s236_s29, 6 }
  0x2f   : > { %8401 = sst [smem:[#allocation22_spill]] %s8737_s12  ;;  %s39_s21 = ssub.s32 %s5399_s27, %s8737_s12 }
  0x30   : > { %p40_p9 = scmp.eq.s32.totalorder %s39_s21, 0  ;;  %s151_s13 = sor.u32 %s150_s2, %s39_s21 }
  0x31   : > { %p152_p12 = scmp.eq.s32.totalorder %s151_s13, 0  ;;  %s245_s9 = scalar_lea.hbm %s8289_s0, %s4638_s30 }
  0x32   : > { %s5610_s11 = scalar_select %p40_p9, %s5383_s23, %s42_s14  }
  0x33   : > { %s5613_s3 = scalar_select %p152_p12, %s5371_s20, %s154_s16  }
  0x34   : > { %s240_s18 = scalar_lea.vmem [#allocation4], %s4413_s17  ;;  %s246_s8 = sshll.u32 %s245_s9, 4  ;;  %s247_s8 = int_to_ptr.hbm [resolvable:$true] %s246_s8 }
  0x35   : > { %s248_s5 = sshll.u32 %s240_s18, 4  ;;  %p4694_p13 = pnand %p4704_p8, %p5595_p5  ;;  %s249_s5 = int_to_ptr.vmem [resolvable:$true] %s248_s5 }
  0x36   : > { %s237_s12 = scalar_lea.sflag [#allocation5], %s236_s29  ;;  %s8402_s2 = smov 8  }
  0x37   : > { %s8403_s21 = smov 128   ;;  %260 = sbr.rel (%p5550_p11) target bundleno = 2059 (0x80b), region = 40 }
  0x38   : > { %4696 = dma.hbm_to_vmem [thread:$0]  (!%p4694_p13), %s247_s8, 1024, %s249_s5, %s237_s12, %s8403_s21, %s8403_s21, %s8402_s2  }
  0x3c   : > { %s262_s26 = sand.u32 1, %s5379_s22  }
  0x3d   : > { %s4417_s30 = sshll.u32 %s262_s26, 6  ;;  %s263_s15 = scalar_lea.sflag [#allocation5], %s262_s26 }
  0x3e   : > { %s5628_s18 = scalar_lea.vmem [#allocation4], %s4417_s30 }
  0x3f   : > { %5346 = dma.done.wait (%p5534_p4), %s263_s15, 1024  }
  0x40   : > { %5348 = vsyncadd (%p5534_p4), %s263_s15, 4294966272 }
  0x41   : > { %5350 = dma.done.wait (%p5526_p1), [#allocation8], 2048  }
  0x42   : > { %5352 = vsyncadd (%p5526_p1), [#allocation8], 4294965248 }
  0x43   : > { %5354 = dma.done.wait (%p5526_p1), [#allocation11], 1024  }
  0x44   : > { %5356 = vsyncadd (%p5526_p1), [#allocation11], 4294966272  ;;  %s306_s5 = sand.u32 1, %s5367_s19   ;;  %p4422_p4 = scmp.ne.s32.totalorder %s5387_s24, 0 }
  0x45   : > { %s4421_s8 = sshll.u32 %s306_s5, 5  ;;  %s5410_s6 = smov (!%p4422_p4), 48  }
  0x46   : > { %s5645_s9 = scalar_lea.vmem [#allocation12], %s4421_s8  ;;  %313 = sbr.rel (%p4422_p4) target bundleno = 646 (0x286), region = 60 }
  0x47   : > { %s5411_s7 = smov (!%p4422_p4), 120   ;;  %s5412_s10 = smov (!%p4422_p4), 64  }
  0x48   : > { %s5413_s12 = smov (!%p4422_p4), 96   ;;  %s5414_s14 = smov (!%p4422_p4), 56  }
  0x49   : > { %s5415_s1 = smov (!%p4422_p4), 112   ;;  %s5416_s16 = smov (!%p4422_p4), 24  }
  0x4a   : > { %s5417_s29 = smov (!%p4422_p4), 104   ;;  %s5418_s17 = smov (!%p4422_p4), 40  }
  0x4b   : > { %v321_v0 = vld [vmem:[#allocation9 + $0x38] sm:$0xff]  ;;  %v320_v1 = vld [vmem:[#allocation9 + $0x30] sm:$0xff]  ;;  %v319_v2 = vld [vmem:[#allocation9 + $0x28] sm:$0xff]  ;;  %vm326_vm0 = vcmask 523264   ;;  %vm368_vm1 = vcmask 64512   ;;  %s5419_s13 = smov 72  }
  0x4c   : > { %347 = vmatpush.msra.mxu0 %v321_v0  ;;  %4639 = vmatpush.msra.mxu2 %v321_v0  ;;  %v318_v3 = vld [vmem:[#allocation9 + $0x20] sm:$0xff]  ;;  %v317_v4 = vld [vmem:[#allocation9 + $0x18] sm:$0xff]  ;;  %v316_v5 = vld [vmem:[#allocation9 + $0x10] sm:$0xff]  ;;  %s5420_s2 = smov 32   ;;  %s5421_s21 = smov 88  }
  0x4d   : > { %655 = vmatpush.msra.mxu1 %v321_v0  ;;  %4647 = vmatpush.msra.mxu3 %v321_v0  ;;  %v315_v6 = vld [vmem:[#allocation9 + $0x8] sm:$0xff]  ;;  %v314_v7 = vld [vmem:[#allocation9] sm:$0xff]  ;;  %v324_v9 = vld [vmem:[%s5628_s18 + $0x10] sm:$0xff]  ;;  %s5422_s26 = smov 80   ;;  %s5423_s30 = smov 16  }
  0x4e   : > { %348 = vmatpush.msra.mxu0 %v320_v1  ;;  %4640 = vmatpush.msra.mxu2 %v320_v1  ;;  %v322_v8 = vld [vmem:[%s5628_s18] sm:$0xff]  ;;  %v323_v10 = vld [vmem:[%s5628_s18 + $0x8] sm:$0xff]  ;;  %v325_v11 = vld [vmem:[%s5628_s18 + $0x18] sm:$0xff]  ;;  %s5424_s15 = smov 8  }
  0x4f   : > { %656 = vmatpush.msra.mxu1 %v320_v1  ;;  %4648 = vmatpush.msra.mxu3 %v320_v1  ;;  %v631_v12 = vld [vmem:[%s5628_s18 + $0x20] sm:$0xff]  ;;  %v633_v13 = vld [vmem:[%s5628_s18 + $0x30] sm:$0xff]  ;;  %v632_v15 = vld [vmem:[%s5628_s18 + $0x28] sm:$0xff] }
  0x50   : > { %349 = vmatpush.msra.mxu0 %v319_v2  ;;  %4641 = vmatpush.msra.mxu2 %v319_v2  ;;  %v634_v16 = vld [vmem:[%s5628_s18 + $0x38] sm:$0xff] }
  0x51   : > { %657 = vmatpush.msra.mxu1 %v319_v2  ;;  %4649 = vmatpush.msra.mxu3 %v319_v2 }
  0x52   : > { %350 = vmatpush.msra.mxu0 %v318_v3  ;;  %4642 = vmatpush.msra.mxu2 %v318_v3 }
  0x53   : > { %658 = vmatpush.msra.mxu1 %v318_v3  ;;  %4650 = vmatpush.msra.mxu3 %v318_v3 }
  0x54   : > { %351 = vmatpush.msra.mxu0 %v317_v4  ;;  %4643 = vmatpush.msra.mxu2 %v317_v4 }
  0x55   : > { %659 = vmatpush.msra.mxu1 %v317_v4  ;;  %4651 = vmatpush.msra.mxu3 %v317_v4 }
  0x56   : > { %352 = vmatpush.msra.mxu0 %v316_v5  ;;  %4644 = vmatpush.msra.mxu2 %v316_v5 }
  0x57   : > { %660 = vmatpush.msra.mxu1 %v316_v5  ;;  %4652 = vmatpush.msra.mxu3 %v316_v5 }
  0x58   : > { %353 = vmatpush.msra.mxu0 %v315_v6  ;;  %4645 = vmatpush.msra.mxu2 %v315_v6 }
  0x59   : > { %661 = vmatpush.msra.mxu1 %v315_v6  ;;  %4653 = vmatpush.msra.mxu3 %v315_v6 }
  0x5a   : > { %354 = vmatpush.msra.mxu0 %v314_v7  ;;  %4646 = vmatpush.msra.mxu2 %v314_v7 }
  0x5b   : > { %4423 = vmatmul.msk.f32.vlgmr.msra.gmra.mxu0 %vm326_vm0, %v322_v8  ;;  %4425 = vmatmul.msk.f32.vlgmr.msra.gmra.mxu2 %vm326_vm0, %v324_v9 }
  0x5c   : > { %662 = vmatpush.msra.mxu1 %v314_v7  ;;  %4654 = vmatpush.msra.mxu3 %v314_v7 }
  0x5d   : > { %4427 = vmatmul.msk.f32.vlgmr.msra.gmra.mxu1 %vm326_vm0, %v631_v12  ;;  %4429 = vmatmul.msk.f32.vlgmr.msra.gmra.mxu3 %vm326_vm0, %v633_v13 }
  0x63   : > { %4424 = vmatmul.msk.f32.gmra.mxu0 %vm326_vm0, %v323_v10  ;;  %4426 = vmatmul.msk.f32.gmra.mxu2 %vm326_vm0, %v325_v11 }
  0x65   : > { %4428 = vmatmul.msk.f32.gmra.mxu1 %vm326_vm0, %v632_v15  ;;  %4430 = vmatmul.msk.f32.gmra.mxu3 %vm326_vm0, %v634_v16 }
  0xd8   : > { %v356_v14 = vpop.f32.mrf.mxu0 }
  0xd9   : > { %369 = vst.msk [vmem:[#allocation2] sm:$0xff] %vm368_vm1, %v356_v14  ;;  %444 = vrot.lane.b32.xlu1 %v356_v14, %s5410_s6  ;;  %393 = vrot.lane.b32.xlu2 %v356_v14, %s5411_s7 }
  0xda   : > { %377 = vrot.lane.b32.xlu0 %v356_v14, %s5412_s10  ;;  %v5723_v26 = vpop.f32.mrf.mxu1 }
  0xdb   : > { %677 = vst.msk [vmem:[#allocation2 + $0x100] sm:$0xff] %vm368_vm1, %v5723_v26 }
  0xde   : > { %v362_v17 = vpop.f32.mrf.mxu2 }
  0xdf   : > { %371 = vst.msk [vmem:[#allocation2 + $0x10] sm:$0xff] %vm368_vm1, %v362_v17 }
  0xe0   : > { %v359_v18 = vpop.f32.mrf.mxu0  ;;  %v5735_v30 = vpop.f32.mrf.mxu3 }
  0xe1   : > { %495 = vrot.lane.b32.xlu1 %v356_v14, %s5413_s12  ;;  %410 = vrot.lane.b32.xlu2 %v356_v14, %s5414_s14  ;;  %370 = vst.msk [vmem:[#allocation2 + $0x8] sm:$0xff] %vm368_vm1, %v359_v18 }
  0xe2   : > { %427 = vrot.lane.b32.xlu0 %v356_v14, %s5415_s1  ;;  %679 = vst.msk [vmem:[#allocation2 + $0x110] sm:$0xff] %vm368_vm1, %v5735_v30  ;;  %v5739_v31 = vpop.f32.mrf.mxu1 }
  0xe3   : > { %678 = vst.msk [vmem:[#allocation2 + $0x108] sm:$0xff] %vm368_vm1, %v5739_v31 }
  0xe6   : > { %v5697_v19 = vpop.f32.mrf.mxu2 }
  0xe7   : > { %372 = vst.msk [vmem:[#allocation2 + $0x18] sm:$0xff] %vm368_vm1, %v5697_v19 }
  0xe8   : > { %v5752_v35 = vpop.f32.mrf.mxu3 }
  0xe9   : > { %546 = vrot.lane.b32.xlu1 %v356_v14, %s5416_s16  ;;  %461 = vrot.lane.b32.xlu2 %v356_v14, %s5417_s29  ;;  %680 = vst.msk [vmem:[#allocation2 + $0x118] sm:$0xff] %vm368_vm1, %v5752_v35 }
  0xea   : > { %478 = vrot.lane.b32.xlu0 %v356_v14, %s5418_s17 }
  0xf1   : > { %597 = vrot.lane.b32.xlu1 %v356_v14, %s5419_s13  ;;  %512 = vrot.lane.b32.xlu2 %v356_v14, %s5420_s2 }
  0xf2   : > { %529 = vrot.lane.b32.xlu0 %v356_v14, %s5421_s21 }
  0xf9   : > { %381 = vrot.lane.b32.xlu1 %v362_v17, %s5412_s10  ;;  %563 = vrot.lane.b32.xlu2 %v356_v14, %s5422_s26 }
  0xfa   : > { %580 = vrot.lane.b32.xlu0 %v356_v14, %s5423_s30 }
 0x101   : > { %414 = vrot.lane.b32.xlu1 %v362_v17, %s5414_s14  ;;  %614 = vrot.lane.b32.xlu2 %v356_v14, %s5424_s15 }
 0x102   : > { %397 = vrot.lane.b32.xlu0 %v362_v17, %s5411_s7 }
 0x109   : > { %465 = vrot.lane.b32.xlu1 %v362_v17, %s5417_s29  ;;  %431 = vrot.lane.b32.xlu2 %v362_v17, %s5415_s1 }
 0x10a   : > { %448 = vrot.lane.b32.xlu0 %v362_v17, %s5410_s6 }
 0x111   : > { %516 = vrot.lane.b32.xlu1 %v362_v17, %s5420_s2  ;;  %482 = vrot.lane.b32.xlu2 %v362_v17, %s5418_s17 }
 0x112   : > { %499 = vrot.lane.b32.xlu0 %v362_v17, %s5413_s12 }
 0x119   : > { %567 = vrot.lane.b32.xlu1 %v362_v17, %s5422_s26  ;;  %533 = vrot.lane.b32.xlu2 %v362_v17, %s5421_s21 }
 0x11a   : > { %550 = vrot.lane.b32.xlu0 %v362_v17, %s5416_s16 }
 0x121   : > { %618 = vrot.lane.b32.xlu1 %v362_v17, %s5424_s15  ;;  %584 = vrot.lane.b32.xlu2 %v362_v17, %s5423_s30 }
 0x122   : > { %601 = vrot.lane.b32.xlu0 %v362_v17, %s5419_s13 }
 0x129   : > { %429 = vrot.lane.b32.xlu1 %v359_v18, %s5415_s1  ;;  %395 = vrot.lane.b32.xlu2 %v359_v18, %s5411_s7 }
 0x12a   : > { %379 = vrot.lane.b32.xlu0 %v359_v18, %s5412_s10 }
 0x131   : > { %480 = vrot.lane.b32.xlu1 %v359_v18, %s5418_s17  ;;  %446 = vrot.lane.b32.xlu2 %v359_v18, %s5410_s6 }
 0x132   : > { %412 = vrot.lane.b32.xlu0 %v359_v18, %s5414_s14 }
 0x133   : > { %v394_v20 = vpop.permute.xlu2 %393 }
 0x134   : > { %406 = vst.msk [vmem:[#allocation2 + $0x20] sm:$0xff] %vm368_vm1, %v394_v20 }
 0x139   : > { %531 = vrot.lane.b32.xlu1 %v359_v18, %s5421_s21  ;;  %497 = vrot.lane.b32.xlu2 %v359_v18, %s5413_s12 }
 0x13a   : > { %463 = vrot.lane.b32.xlu0 %v359_v18, %s5417_s29 }
 0x13b   : > { %v411_v21 = vpop.permute.xlu2 %410 }
 0x13c   : > { %423 = vst.msk [vmem:[#allocation3 + $0x20] sm:$0xff] %vm368_vm1, %v411_v21 }
 0x141   : > { %582 = vrot.lane.b32.xlu1 %v359_v18, %s5423_s30  ;;  %548 = vrot.lane.b32.xlu2 %v359_v18, %s5416_s16 }
 0x142   : > { %514 = vrot.lane.b32.xlu0 %v359_v18, %s5420_s2 }
 0x143   : > { %v462_v22 = vpop.permute.xlu2 %461 }
 0x144   : > { %474 = vst.msk [vmem:[#allocation2 + $0x60] sm:$0xff] %vm368_vm1, %v462_v22 }
 0x149   : > { %383 = vrot.lane.b32.xlu1 %v5697_v19, %s5412_s10  ;;  %599 = vrot.lane.b32.xlu2 %v359_v18, %s5419_s13 }
 0x14a   : > { %565 = vrot.lane.b32.xlu0 %v359_v18, %s5422_s26 }
 0x14b   : > { %v445_v23 = vpop.permute.xlu1 %444  ;;  %v513_v24 = vpop.permute.xlu2 %512 }
 0x14c   : > { %457 = vst.msk [vmem:[#allocation3 + $0x40] sm:$0xff] %vm368_vm1, %v445_v23  ;;  %v378_v25 = vpop.permute.xlu0 %377 }
 0x14d   : > { %525 = vst.msk [vmem:[#allocation3 + $0x80] sm:$0xff] %vm368_vm1, %v513_v24 }
 0x14e   : > { %389 = vst.msk [vmem:[#allocation3] sm:$0xff] %vm368_vm1, %v378_v25 }
 0x151   : > { %399 = vrot.lane.b32.xlu1 %v5697_v19, %s5411_s7  ;;  %416 = vrot.lane.b32.xlu2 %v5697_v19, %s5414_s14 }
 0x152   : > { %616 = vrot.lane.b32.xlu0 %v359_v18, %s5424_s15 }
 0x153   : > { %v496_v27 = vpop.permute.xlu1 %495  ;;  %v564_v28 = vpop.permute.xlu2 %563 }
 0x154   : > { %508 = vst.msk [vmem:[#allocation2 + $0x80] sm:$0xff] %vm368_vm1, %v496_v27  ;;  %v428_v29 = vpop.permute.xlu0 %427 }
 0x155   : > { %576 = vst.msk [vmem:[#allocation2 + $0xc0] sm:$0xff] %vm368_vm1, %v564_v28 }
 0x156   : > { %440 = vst.msk [vmem:[#allocation2 + $0x40] sm:$0xff] %vm368_vm1, %v428_v29 }
 0x159   : > { %450 = vrot.lane.b32.xlu1 %v5697_v19, %s5410_s6  ;;  %467 = vrot.lane.b32.xlu2 %v5697_v19, %s5417_s29 }
 0x15a   : > { %433 = vrot.lane.b32.xlu0 %v5697_v19, %s5415_s1 }
 0x15b   : > { %v547_v32 = vpop.permute.xlu1 %546  ;;  %v615_v33 = vpop.permute.xlu2 %614 }
 0x15c   : > { %559 = vst.msk [vmem:[#allocation3 + $0xa0] sm:$0xff] %vm368_vm1, %v547_v32  ;;  %v479_v34 = vpop.permute.xlu0 %478 }
 0x15d   : > { %627 = vst.msk [vmem:[#allocation3 + $0xe0] sm:$0xff] %vm368_vm1, %v615_v33 }
 0x15e   : > { %491 = vst.msk [vmem:[#allocation3 + $0x60] sm:$0xff] %vm368_vm1, %v479_v34 }
 0x161   : > { %501 = vrot.lane.b32.xlu1 %v5697_v19, %s5413_s12  ;;  %518 = vrot.lane.b32.xlu2 %v5697_v19, %s5420_s2 }
 0x162   : > { %484 = vrot.lane.b32.xlu0 %v5697_v19, %s5418_s17 }
 0x163   : > { %v598_v36 = vpop.permute.xlu1 %597  ;;  %v432_v37 = vpop.permute.xlu2 %431 }
 0x164   : > { %610 = vst.msk [vmem:[#allocation2 + $0xe0] sm:$0xff] %vm368_vm1, %v598_v36  ;;  %v530_v38 = vpop.permute.xlu0 %529 }
 0x165   : > { %442 = vst.msk [vmem:[#allocation2 + $0x50] sm:$0xff] %vm368_vm1, %v432_v37 }
 0x166   : > { %542 = vst.msk [vmem:[#allocation2 + $0xa0] sm:$0xff] %vm368_vm1, %v530_v38 }
 0x169   : > { %552 = vrot.lane.b32.xlu1 %v5697_v19, %s5416_s16  ;;  %569 = vrot.lane.b32.xlu2 %v5697_v19, %s5422_s26 }
 0x16a   : > { %535 = vrot.lane.b32.xlu0 %v5697_v19, %s5421_s21 }
 0x16b   : > { %v382_v39 = vpop.permute.xlu1 %381  ;;  %v483_v40 = vpop.permute.xlu2 %482 }
 0x16c   : > { %391 = vst.msk [vmem:[#allocation3 + $0x10] sm:$0xff] %vm368_vm1, %v382_v39  ;;  %v581_v41 = vpop.permute.xlu0 %580 }
 0x16d   : > { %493 = vst.msk [vmem:[#allocation3 + $0x70] sm:$0xff] %vm368_vm1, %v483_v40 }
 0x16e   : > { %593 = vst.msk [vmem:[#allocation3 + $0xc0] sm:$0xff] %vm368_vm1, %v581_v41 }
 0x171   : > { %603 = vrot.lane.b32.xlu1 %v5697_v19, %s5419_s13  ;;  %620 = vrot.lane.b32.xlu2 %v5697_v19, %s5424_s15 }
 0x172   : > { %586 = vrot.lane.b32.xlu0 %v5697_v19, %s5423_s30 }
 0x173   : > { %v415_v42 = vpop.permute.xlu1 %414  ;;  %v534_v43 = vpop.permute.xlu2 %533 }
 0x174   : > { %425 = vst.msk [vmem:[#allocation3 + $0x30] sm:$0xff] %vm368_vm1, %v415_v42  ;;  %v398_v44 = vpop.permute.xlu0 %397 }
 0x175   : > { %544 = vst.msk [vmem:[#allocation2 + $0xb0] sm:$0xff] %vm368_vm1, %v534_v43 }
 0x176   : > { %408 = vst.msk [vmem:[#allocation2 + $0x30] sm:$0xff] %vm368_vm1, %v398_v44 }
 0x179   : > { %687 = vrot.lane.b32.xlu1 %v5739_v31, %s5412_s10  ;;  %689 = vrot.lane.b32.xlu2 %v5735_v30, %s5412_s10 }
 0x17a   : > { %685 = vrot.lane.b32.xlu0 %v5723_v26, %s5412_s10 }
 0x17b   : > { %v466_v45 = vpop.permute.xlu1 %465  ;;  %v585_v46 = vpop.permute.xlu2 %584 }
 0x17c   : > { %476 = vst.msk [vmem:[#allocation2 + $0x70] sm:$0xff] %vm368_vm1, %v466_v45  ;;  %v449_v47 = vpop.permute.xlu0 %448 }
 0x17d   : > { %595 = vst.msk [vmem:[#allocation3 + $0xd0] sm:$0xff] %vm368_vm1, %v585_v46 }
 0x17e   : > { %459 = vst.msk [vmem:[#allocation3 + $0x50] sm:$0xff] %vm368_vm1, %v449_v47 }
 0x181   : > { %702 = vrot.lane.b32.xlu1 %v5723_v26, %s5411_s7  ;;  %704 = vrot.lane.b32.xlu2 %v5739_v31, %s5411_s7 }
 0x182   : > { %691 = vrot.lane.b32.xlu0 %v5752_v35, %s5412_s10 }
 0x183   : > { %v517_v48 = vpop.permute.xlu1 %516  ;;  %v396_v49 = vpop.permute.xlu2 %395 }
 0x184   : > { %527 = vst.msk [vmem:[#allocation3 + $0x90] sm:$0xff] %vm368_vm1, %v517_v48  ;;  %v500_v50 = vpop.permute.xlu0 %499 }
 0x185   : > { %510 = vst.msk [vmem:[#allocation2 + $0x90] sm:$0xff] %vm368_vm1, %v500_v50 }
 0x186   : > { %407 = vst.msk [vmem:[#allocation2 + $0x28] sm:$0xff] %vm368_vm1, %v396_v49 }
 0x189   : > { %708 = vrot.lane.b32.xlu1 %v5752_v35, %s5411_s7  ;;  %719 = vrot.lane.b32.xlu2 %v5723_v26, %s5414_s14 }
 0x18a   : > { %706 = vrot.lane.b32.xlu0 %v5735_v30, %s5411_s7 }
 0x18b   : > { %v568_v51 = vpop.permute.xlu1 %567  ;;  %v447_v52 = vpop.permute.xlu2 %446 }
 0x18c   : > { %578 = vst.msk [vmem:[#allocation2 + $0xd0] sm:$0xff] %vm368_vm1, %v568_v51  ;;  %v551_v53 = vpop.permute.xlu0 %550 }
 0x18d   : > { %561 = vst.msk [vmem:[#allocation3 + $0xb0] sm:$0xff] %vm368_vm1, %v551_v53 }
 0x18e   : > { %458 = vst.msk [vmem:[#allocation3 + $0x48] sm:$0xff] %vm368_vm1, %v447_v52 }
 0x191   : > { %723 = vrot.lane.b32.xlu1 %v5735_v30, %s5414_s14  ;;  %725 = vrot.lane.b32.xlu2 %v5752_v35, %s5414_s14 }
 0x192   : > { %721 = vrot.lane.b32.xlu0 %v5739_v31, %s5414_s14 }
 0x193   : > { %v619_v54 = vpop.permute.xlu1 %618  ;;  %v498_v55 = vpop.permute.xlu2 %497 }
 0x194   : > { %629 = vst.msk [vmem:[#allocation3 + $0xf0] sm:$0xff] %vm368_vm1, %v619_v54  ;;  %v602_v56 = vpop.permute.xlu0 %601 }
 0x195   : > { %612 = vst.msk [vmem:[#allocation2 + $0xf0] sm:$0xff] %vm368_vm1, %v602_v56 }
 0x196   : > { %509 = vst.msk [vmem:[#allocation2 + $0x88] sm:$0xff] %vm368_vm1, %v498_v55 }
 0x199   : > { %738 = vrot.lane.b32.xlu1 %v5739_v31, %s5415_s1  ;;  %740 = vrot.lane.b32.xlu2 %v5735_v30, %s5415_s1 }
 0x19a   : > { %736 = vrot.lane.b32.xlu0 %v5723_v26, %s5415_s1 }
 0x19b   : > { %v430_v57 = vpop.permute.xlu1 %429  ;;  %v549_v58 = vpop.permute.xlu2 %548 }
 0x19c   : > { %441 = vst.msk [vmem:[#allocation2 + $0x48] sm:$0xff] %vm368_vm1, %v430_v57  ;;  %v380_v59 = vpop.permute.xlu0 %379 }
 0x19d   : > { %560 = vst.msk [vmem:[#allocation3 + $0xa8] sm:$0xff] %vm368_vm1, %v549_v58 }
 0x19e   : > { %390 = vst.msk [vmem:[#allocation3 + $0x8] sm:$0xff] %vm368_vm1, %v380_v59 }
 0x1a1   : > { %753 = vrot.lane.b32.xlu1 %v5723_v26, %s5410_s6  ;;  %755 = vrot.lane.b32.xlu2 %v5739_v31, %s5410_s6 }
 0x1a2   : > { %742 = vrot.lane.b32.xlu0 %v5752_v35, %s5415_s1 }
 0x1a3   : > { %v481_v60 = vpop.permute.xlu1 %480  ;;  %v600_v61 = vpop.permute.xlu2 %599 }
 0x1a4   : > { %492 = vst.msk [vmem:[#allocation3 + $0x68] sm:$0xff] %vm368_vm1, %v481_v60  ;;  %v413_v62 = vpop.permute.xlu0 %412 }
 0x1a5   : > { %611 = vst.msk [vmem:[#allocation2 + $0xe8] sm:$0xff] %vm368_vm1, %v600_v61 }
 0x1a6   : > { %424 = vst.msk [vmem:[#allocation3 + $0x28] sm:$0xff] %vm368_vm1, %v413_v62 }
 0x1a9   : > { %759 = vrot.lane.b32.xlu1 %v5752_v35, %s5410_s6  ;;  %770 = vrot.lane.b32.xlu2 %v5723_v26, %s5417_s29 }
 0x1aa   : > { %757 = vrot.lane.b32.xlu0 %v5735_v30, %s5410_s6 }
 0x1ab   : > { %v532_v63 = vpop.permute.xlu1 %531  ;;  %v417_v0 = vpop.permute.xlu2 %416 }
 0x1ac   : > { %543 = vst.msk [vmem:[#allocation2 + $0xa8] sm:$0xff] %vm368_vm1, %v532_v63  ;;  %v464_v1 = vpop.permute.xlu0 %463 }
 0x1ad   : > { %426 = vst.msk [vmem:[#allocation3 + $0x38] sm:$0xff] %vm368_vm1, %v417_v0 }
 0x1ae   : > { %475 = vst.msk [vmem:[#allocation2 + $0x68] sm:$0xff] %vm368_vm1, %v464_v1 }
 0x1b1   : > { %774 = vrot.lane.b32.xlu1 %v5735_v30, %s5417_s29  ;;  %776 = vrot.lane.b32.xlu2 %v5752_v35, %s5417_s29 }
 0x1b2   : > { %772 = vrot.lane.b32.xlu0 %v5739_v31, %s5417_s29 }
 0x1b3   : > { %v583_v2 = vpop.permute.xlu1 %582  ;;  %v468_v3 = vpop.permute.xlu2 %467 }
 0x1b4   : > { %594 = vst.msk [vmem:[#allocation3 + $0xc8] sm:$0xff] %vm368_vm1, %v583_v2  ;;  %v515_v4 = vpop.permute.xlu0 %514 }
 0x1b5   : > { %477 = vst.msk [vmem:[#allocation2 + $0x78] sm:$0xff] %vm368_vm1, %v468_v3 }
 0x1b6   : > { %526 = vst.msk [vmem:[#allocation3 + $0x88] sm:$0xff] %vm368_vm1, %v515_v4 }
 0x1b9   : > { %789 = vrot.lane.b32.xlu1 %v5739_v31, %s5418_s17  ;;  %791 = vrot.lane.b32.xlu2 %v5735_v30, %s5418_s17 }
 0x1ba   : > { %787 = vrot.lane.b32.xlu0 %v5723_v26, %s5418_s17 }
 0x1bb   : > { %v384_v5 = vpop.permute.xlu1 %383  ;;  %v519_v6 = vpop.permute.xlu2 %518 }
 0x1bc   : > { %392 = vst.msk [vmem:[#allocation3 + $0x18] sm:$0xff] %vm368_vm1, %v384_v5  ;;  %v566_v7 = vpop.permute.xlu0 %565 }
 0x1bd   : > { %528 = vst.msk [vmem:[#allocation3 + $0x98] sm:$0xff] %vm368_vm1, %v519_v6 }
 0x1be   : > { %577 = vst.msk [vmem:[#allocation2 + $0xc8] sm:$0xff] %vm368_vm1, %v566_v7 }
 0x1c1   : > { %804 = vrot.lane.b32.xlu1 %v5723_v26, %s5413_s12  ;;  %806 = vrot.lane.b32.xlu2 %v5739_v31, %s5413_s12 }
 0x1c2   : > { %793 = vrot.lane.b32.xlu0 %v5752_v35, %s5418_s17 }
 0x1c3   : > { %v400_v8 = vpop.permute.xlu1 %399  ;;  %v570_v9 = vpop.permute.xlu2 %569 }
 0x1c4   : > { %409 = vst.msk [vmem:[#allocation2 + $0x38] sm:$0xff] %vm368_vm1, %v400_v8  ;;  %v617_v10 = vpop.permute.xlu0 %616 }
 0x1c5   : > { %579 = vst.msk [vmem:[#allocation2 + $0xd8] sm:$0xff] %vm368_vm1, %v570_v9 }
 0x1c6   : > { %628 = vst.msk [vmem:[#allocation3 + $0xe8] sm:$0xff] %vm368_vm1, %v617_v10 }
 0x1c9   : > { %810 = vrot.lane.b32.xlu1 %v5752_v35, %s5413_s12  ;;  %821 = vrot.lane.b32.xlu2 %v5723_v26, %s5420_s2 }
 0x1ca   : > { %808 = vrot.lane.b32.xlu0 %v5735_v30, %s5413_s12 }
 0x1cb   : > { %v451_v11 = vpop.permute.xlu1 %450  ;;  %v621_v12 = vpop.permute.xlu2 %620 }
 0x1cc   : > { %460 = vst.msk [vmem:[#allocation3 + $0x58] sm:$0xff] %vm368_vm1, %v451_v11  ;;  %v434_v13 = vpop.permute.xlu0 %433 }
 0x1cd   : > { %630 = vst.msk [vmem:[#allocation3 + $0xf8] sm:$0xff] %vm368_vm1, %v621_v12 }
 0x1ce   : > { %443 = vst.msk [vmem:[#allocation2 + $0x58] sm:$0xff] %vm368_vm1, %v434_v13 }
 0x1d1   : > { %825 = vrot.lane.b32.xlu1 %v5735_v30, %s5420_s2  ;;  %827 = vrot.lane.b32.xlu2 %v5752_v35, %s5420_s2 }
 0x1d2   : > { %823 = vrot.lane.b32.xlu0 %v5739_v31, %s5420_s2 }
 0x1d3   : > { %v502_v14 = vpop.permute.xlu1 %501  ;;  %v690_v15 = vpop.permute.xlu2 %689 }
 0x1d4   : > { %511 = vst.msk [vmem:[#allocation2 + $0x98] sm:$0xff] %vm368_vm1, %v502_v14  ;;  %v485_v16 = vpop.permute.xlu0 %484 }
 0x1d5   : > { %700 = vst.msk [vmem:[#allocation3 + $0x110] sm:$0xff] %vm368_vm1, %v690_v15 }
 0x1d6   : > { %494 = vst.msk [vmem:[#allocation3 + $0x78] sm:$0xff] %vm368_vm1, %v485_v16 }
 0x1d9   : > { %840 = vrot.lane.b32.xlu1 %v5739_v31, %s5421_s21  ;;  %842 = vrot.lane.b32.xlu2 %v5735_v30, %s5421_s21 }
 0x1da   : > { %838 = vrot.lane.b32.xlu0 %v5723_v26, %s5421_s21 }
 0x1db   : > { %v553_v17 = vpop.permute.xlu1 %552  ;;  %v705_v18 = vpop.permute.xlu2 %704 }
 0x1dc   : > { %562 = vst.msk [vmem:[#allocation3 + $0xb8] sm:$0xff] %vm368_vm1, %v553_v17  ;;  %v536_v19 = vpop.permute.xlu0 %535 }
 0x1dd   : > { %716 = vst.msk [vmem:[#allocation2 + $0x128] sm:$0xff] %vm368_vm1, %v705_v18 }
 0x1de   : > { %545 = vst.msk [vmem:[#allocation2 + $0xb8] sm:$0xff] %vm368_vm1, %v536_v19 }
 0x1e1   : > { %855 = vrot.lane.b32.xlu1 %v5723_v26, %s5416_s16  ;;  %857 = vrot.lane.b32.xlu2 %v5739_v31, %s5416_s16 }
 0x1e2   : > { %844 = vrot.lane.b32.xlu0 %v5752_v35, %s5421_s21 }
 0x1e3   : > { %v604_v20 = vpop.permute.xlu1 %603  ;;  %v720_v21 = vpop.permute.xlu2 %719 }
 0x1e4   : > { %613 = vst.msk [vmem:[#allocation2 + $0xf8] sm:$0xff] %vm368_vm1, %v604_v20  ;;  %v587_v22 = vpop.permute.xlu0 %586 }
 0x1e5   : > { %732 = vst.msk [vmem:[#allocation3 + $0x120] sm:$0xff] %vm368_vm1, %v720_v21 }
 0x1e6   : > { %596 = vst.msk [vmem:[#allocation3 + $0xd8] sm:$0xff] %vm368_vm1, %v587_v22 }
 0x1e9   : > { %861 = vrot.lane.b32.xlu1 %v5752_v35, %s5416_s16  ;;  %872 = vrot.lane.b32.xlu2 %v5723_v26, %s5422_s26 }
 0x1ea   : > { %859 = vrot.lane.b32.xlu0 %v5735_v30, %s5416_s16 }
 0x1eb   : > { %v688_v23 = vpop.permute.xlu1 %687  ;;  %v726_v24 = vpop.permute.xlu2 %725 }
 0x1ec   : > { %699 = vst.msk [vmem:[#allocation3 + $0x108] sm:$0xff] %vm368_vm1, %v688_v23  ;;  %v686_v25 = vpop.permute.xlu0 %685 }
 0x1ed   : > { %735 = vst.msk [vmem:[#allocation3 + $0x138] sm:$0xff] %vm368_vm1, %v726_v24 }
 0x1ee   : > { %698 = vst.msk [vmem:[#allocation3 + $0x100] sm:$0xff] %vm368_vm1, %v686_v25 }
 0x1f1   : > { %876 = vrot.lane.b32.xlu1 %v5735_v30, %s5422_s26  ;;  %878 = vrot.lane.b32.xlu2 %v5752_v35, %s5422_s26 }
 0x1f2   : > { %874 = vrot.lane.b32.xlu0 %v5739_v31, %s5422_s26 }
 0x1f3   : > { %v703_v27 = vpop.permute.xlu1 %702  ;;  %v741_v28 = vpop.permute.xlu2 %740 }
 0x1f4   : > { %715 = vst.msk [vmem:[#allocation2 + $0x120] sm:$0xff] %vm368_vm1, %v703_v27  ;;  %v692_v29 = vpop.permute.xlu0 %691 }
 0x1f5   : > { %751 = vst.msk [vmem:[#allocation2 + $0x150] sm:$0xff] %vm368_vm1, %v741_v28 }
 0x1f6   : > { %701 = vst.msk [vmem:[#allocation3 + $0x118] sm:$0xff] %vm368_vm1, %v692_v29 }
 0x1f9   : > { %891 = vrot.lane.b32.xlu1 %v5739_v31, %s5423_s30  ;;  %893 = vrot.lane.b32.xlu2 %v5735_v30, %s5423_s30 }
 0x1fa   : > { %889 = vrot.lane.b32.xlu0 %v5723_v26, %s5423_s30 }
 0x1fb   : > { %v709_v32 = vpop.permute.xlu1 %708  ;;  %v756_v33 = vpop.permute.xlu2 %755 }
 0x1fc   : > { %718 = vst.msk [vmem:[#allocation2 + $0x138] sm:$0xff] %vm368_vm1, %v709_v32  ;;  %v707_v34 = vpop.permute.xlu0 %706 }
 0x1fd   : > { %767 = vst.msk [vmem:[#allocation3 + $0x148] sm:$0xff] %vm368_vm1, %v756_v33 }
 0x1fe   : > { %717 = vst.msk [vmem:[#allocation2 + $0x130] sm:$0xff] %vm368_vm1, %v707_v34 }
 0x201   : > { %906 = vrot.lane.b32.xlu1 %v5723_v26, %s5419_s13  ;;  %908 = vrot.lane.b32.xlu2 %v5739_v31, %s5419_s13 }
 0x202   : > { %895 = vrot.lane.b32.xlu0 %v5752_v35, %s5423_s30 }
 0x203   : > { %v724_v36 = vpop.permute.xlu1 %723  ;;  %v771_v37 = vpop.permute.xlu2 %770 }
 0x204   : > { %734 = vst.msk [vmem:[#allocation3 + $0x130] sm:$0xff] %vm368_vm1, %v724_v36  ;;  %v722_v38 = vpop.permute.xlu0 %721 }
 0x205   : > { %783 = vst.msk [vmem:[#allocation2 + $0x160] sm:$0xff] %vm368_vm1, %v771_v37 }
 0x206   : > { %733 = vst.msk [vmem:[#allocation3 + $0x128] sm:$0xff] %vm368_vm1, %v722_v38 }
 0x209   : > { %912 = vrot.lane.b32.xlu1 %v5752_v35, %s5419_s13  ;;  %923 = vrot.lane.b32.xlu2 %v5723_v26, %s5424_s15 }
 0x20a   : > { %910 = vrot.lane.b32.xlu0 %v5735_v30, %s5419_s13 }
 0x20b   : > { %v739_v39 = vpop.permute.xlu1 %738  ;;  %v777_v40 = vpop.permute.xlu2 %776 }
 0x20c   : > { %750 = vst.msk [vmem:[#allocation2 + $0x148] sm:$0xff] %vm368_vm1, %v739_v39  ;;  %v737_v41 = vpop.permute.xlu0 %736 }
 0x20d   : > { %786 = vst.msk [vmem:[#allocation2 + $0x178] sm:$0xff] %vm368_vm1, %v777_v40 }
 0x20e   : > { %749 = vst.msk [vmem:[#allocation2 + $0x140] sm:$0xff] %vm368_vm1, %v737_v41 }
 0x211   : > { %927 = vrot.lane.b32.xlu1 %v5735_v30, %s5424_s15  ;;  %929 = vrot.lane.b32.xlu2 %v5752_v35, %s5424_s15 }
 0x212   : > { %925 = vrot.lane.b32.xlu0 %v5739_v31, %s5424_s15 }
 0x213   : > { %v754_v26 = vpop.permute.xlu1 %753  ;;  %v792_v42 = vpop.permute.xlu2 %791 }
 0x214   : > { %766 = vst.msk [vmem:[#allocation3 + $0x140] sm:$0xff] %vm368_vm1, %v754_v26  ;;  %v743_v43 = vpop.permute.xlu0 %742 }
 0x215   : > { %802 = vst.msk [vmem:[#allocation3 + $0x170] sm:$0xff] %vm368_vm1, %v792_v42 }
 0x216   : > { %752 = vst.msk [vmem:[#allocation2 + $0x158] sm:$0xff] %vm368_vm1, %v743_v43 }
 0x21b   : > { %v760_v44 = vpop.permute.xlu1 %759  ;;  %v807_v45 = vpop.permute.xlu2 %806 }
 0x21c   : > { %769 = vst.msk [vmem:[#allocation3 + $0x158] sm:$0xff] %vm368_vm1, %v760_v44  ;;  %v758_v30 = vpop.permute.xlu0 %757 }
 0x21d   : > { %818 = vst.msk [vmem:[#allocation2 + $0x188] sm:$0xff] %vm368_vm1, %v807_v45 }
 0x21e   : > { %768 = vst.msk [vmem:[#allocation3 + $0x150] sm:$0xff] %vm368_vm1, %v758_v30 }
 0x223   : > { %v775_v35 = vpop.permute.xlu1 %774  ;;  %v822_v31 = vpop.permute.xlu2 %821 }
 0x224   : > { %785 = vst.msk [vmem:[#allocation2 + $0x170] sm:$0xff] %vm368_vm1, %v775_v35  ;;  %v773_v46 = vpop.permute.xlu0 %772 }
 0x225   : > { %834 = vst.msk [vmem:[#allocation3 + $0x180] sm:$0xff] %vm368_vm1, %v822_v31 }
 0x226   : > { %784 = vst.msk [vmem:[#allocation2 + $0x168] sm:$0xff] %vm368_vm1, %v773_v46 }
 0x22b   : > { %v790_v47 = vpop.permute.xlu1 %789  ;;  %v828_v48 = vpop.permute.xlu2 %827 }
 0x22c   : > { %801 = vst.msk [vmem:[#allocation3 + $0x168] sm:$0xff] %vm368_vm1, %v790_v47  ;;  %v788_v49 = vpop.permute.xlu0 %787 }
 0x22d   : > { %837 = vst.msk [vmem:[#allocation3 + $0x198] sm:$0xff] %vm368_vm1, %v828_v48 }
 0x22e   : > { %800 = vst.msk [vmem:[#allocation3 + $0x160] sm:$0xff] %vm368_vm1, %v788_v49 }
 0x233   : > { %v805_v50 = vpop.permute.xlu1 %804  ;;  %v843_v51 = vpop.permute.xlu2 %842 }
 0x234   : > { %817 = vst.msk [vmem:[#allocation2 + $0x180] sm:$0xff] %vm368_vm1, %v805_v50  ;;  %v794_v52 = vpop.permute.xlu0 %793 }
 0x235   : > { %853 = vst.msk [vmem:[#allocation2 + $0x1b0] sm:$0xff] %vm368_vm1, %v843_v51 }
 0x236   : > { %803 = vst.msk [vmem:[#allocation3 + $0x178] sm:$0xff] %vm368_vm1, %v794_v52 }
 0x23b   : > { %v811_v53 = vpop.permute.xlu1 %810  ;;  %v858_v54 = vpop.permute.xlu2 %857 }
 0x23c   : > { %820 = vst.msk [vmem:[#allocation2 + $0x198] sm:$0xff] %vm368_vm1, %v811_v53  ;;  %v809_v55 = vpop.permute.xlu0 %808 }
 0x23d   : > { %869 = vst.msk [vmem:[#allocation3 + $0x1a8] sm:$0xff] %vm368_vm1, %v858_v54 }
 0x23e   : > { %819 = vst.msk [vmem:[#allocation2 + $0x190] sm:$0xff] %vm368_vm1, %v809_v55 }
 0x243   : > { %v826_v56 = vpop.permute.xlu1 %825  ;;  %v873_v57 = vpop.permute.xlu2 %872 }
 0x244   : > { %836 = vst.msk [vmem:[#allocation3 + $0x190] sm:$0xff] %vm368_vm1, %v826_v56  ;;  %v824_v58 = vpop.permute.xlu0 %823 }
 0x245   : > { %885 = vst.msk [vmem:[#allocation2 + $0x1c0] sm:$0xff] %vm368_vm1, %v873_v57 }
 0x246   : > { %835 = vst.msk [vmem:[#allocation3 + $0x188] sm:$0xff] %vm368_vm1, %v824_v58 }
 0x24b   : > { %v841_v59 = vpop.permute.xlu1 %840  ;;  %v879_v60 = vpop.permute.xlu2 %878 }
 0x24c   : > { %852 = vst.msk [vmem:[#allocation2 + $0x1a8] sm:$0xff] %vm368_vm1, %v841_v59  ;;  %v839_v61 = vpop.permute.xlu0 %838 }
 0x24d   : > { %888 = vst.msk [vmem:[#allocation2 + $0x1d8] sm:$0xff] %vm368_vm1, %v879_v60 }
 0x24e   : > { %851 = vst.msk [vmem:[#allocation2 + $0x1a0] sm:$0xff] %vm368_vm1, %v839_v61 }
 0x253   : > { %v856_v62 = vpop.permute.xlu1 %855  ;;  %v894_v63 = vpop.permute.xlu2 %893 }
 0x254   : > { %868 = vst.msk [vmem:[#allocation3 + $0x1a0] sm:$0xff] %vm368_vm1, %v856_v62  ;;  %v845_v0 = vpop.permute.xlu0 %844 }
 0x255   : > { %904 = vst.msk [vmem:[#allocation3 + $0x1d0] sm:$0xff] %vm368_vm1, %v894_v63 }
 0x256   : > { %854 = vst.msk [vmem:[#allocation2 + $0x1b8] sm:$0xff] %vm368_vm1, %v845_v0 }
 0x25b   : > { %v862_v1 = vpop.permute.xlu1 %861  ;;  %v909_v2 = vpop.permute.xlu2 %908 }
 0x25c   : > { %871 = vst.msk [vmem:[#allocation3 + $0x1b8] sm:$0xff] %vm368_vm1, %v862_v1  ;;  %v860_v3 = vpop.permute.xlu0 %859 }
 0x25d   : > { %920 = vst.msk [vmem:[#allocation2 + $0x1e8] sm:$0xff] %vm368_vm1, %v909_v2 }
 0x25e   : > { %870 = vst.msk [vmem:[#allocation3 + $0x1b0] sm:$0xff] %vm368_vm1, %v860_v3 }
 0x263   : > { %v877_v4 = vpop.permute.xlu1 %876  ;;  %v924_v5 = vpop.permute.xlu2 %923 }
 0x264   : > { %887 = vst.msk [vmem:[#allocation2 + $0x1d0] sm:$0xff] %vm368_vm1, %v877_v4  ;;  %v875_v6 = vpop.permute.xlu0 %874 }
 0x265   : > { %936 = vst.msk [vmem:[#allocation3 + $0x1e0] sm:$0xff] %vm368_vm1, %v924_v5 }
 0x266   : > { %886 = vst.msk [vmem:[#allocation2 + $0x1c8] sm:$0xff] %vm368_vm1, %v875_v6 }
 0x26b   : > { %v892_v7 = vpop.permute.xlu1 %891  ;;  %v930_v8 = vpop.permute.xlu2 %929 }
 0x26c   : > { %903 = vst.msk [vmem:[#allocation3 + $0x1c8] sm:$0xff] %vm368_vm1, %v892_v7  ;;  %v890_v9 = vpop.permute.xlu0 %889 }
 0x26d   : > { %939 = vst.msk [vmem:[#allocation3 + $0x1f8] sm:$0xff] %vm368_vm1, %v930_v8 }
 0x26e   : > { %902 = vst.msk [vmem:[#allocation3 + $0x1c0] sm:$0xff] %vm368_vm1, %v890_v9 }
 0x273   : > { %v907_v10 = vpop.permute.xlu1 %906 }
 0x274   : > { %919 = vst.msk [vmem:[#allocation2 + $0x1e0] sm:$0xff] %vm368_vm1, %v907_v10  ;;  %v896_v11 = vpop.permute.xlu0 %895 }
 0x275   : > { %905 = vst.msk [vmem:[#allocation3 + $0x1d8] sm:$0xff] %vm368_vm1, %v896_v11 }
 0x27b   : > { %v913_v12 = vpop.permute.xlu1 %912 }
 0x27c   : > { %922 = vst.msk [vmem:[#allocation2 + $0x1f8] sm:$0xff] %vm368_vm1, %v913_v12  ;;  %v911_v13 = vpop.permute.xlu0 %910 }
 0x27d   : > { %921 = vst.msk [vmem:[#allocation2 + $0x1f0] sm:$0xff] %vm368_vm1, %v911_v13 }
 0x283   : > { %v928_v14 = vpop.permute.xlu1 %927 }
 0x284   : > { %938 = vst.msk [vmem:[#allocation3 + $0x1f0] sm:$0xff] %vm368_vm1, %v928_v14  ;;  %v926_v15 = vpop.permute.xlu0 %925 }
 0x285   : > { %937 = vst.msk [vmem:[#allocation3 + $0x1e8] sm:$0xff] %vm368_vm1, %v926_v15 }
 0x286 PF: > { %v953_v16 = vld [vmem:[#allocation7 + $0x38] sm:$0xff]  ;;  %v952_v17 = vld [vmem:[#allocation7 + $0x30] sm:$0xff]  ;;  %v951_v18 = vld [vmem:[#allocation7 + $0x28] sm:$0xff]  ;;  %vm1120_vm2 = vcmask 64512   ;;  %s4431_s8 = sshll.u32 %s5387_s24, 5  ;;  %vm954_vm3 = vcmask 523264  }
 0x287   : > { %975 = vmatpush.msra.mxu0 %v953_v16  ;;  %4655 = vmatpush.msra.mxu2 %v953_v16  ;;  %v950_v19 = vld [vmem:[#allocation7 + $0x20] sm:$0xff]  ;;  %v1059_v20 = vld [vmem:[#allocation2 + $0x18] sm:$0xff]  ;;  %v1058_v22 = vld [vmem:[#allocation2 + $0x10] sm:$0xff]  ;;  %s941_s6 = scalar_lea.vmem %s5628_s18, %s4431_s8 [#allocation4]  ;;  %s5425_s18 = smov 120   ;;  %vm1513_vm4 = vcmask 261120  }
 0x288   : > { %v949_v21 = vld [vmem:[#allocation7 + $0x18] sm:$0xff]  ;;  %4436 = vmatpush.xpose.msk.msra.mxu1 %vm1120_vm2, %v1059_v20  ;;  %4663 = vmatpush.xpose.msk.msra.mxu3 %vm1120_vm2, %v1059_v20  ;;  %v948_v23 = vld [vmem:[#allocation7 + $0x10] sm:$0xff]  ;;  %v947_v24 = vld [vmem:[#allocation7 + $0x8] sm:$0xff]  ;;  %s5426_s7 = smov 112   ;;  %s5427_s10 = smov 104  }
 0x289   : > { %976 = vmatpush.msra.mxu0 %v952_v17  ;;  %4656 = vmatpush.msra.mxu2 %v952_v17  ;;  %v1057_v25 = vld [vmem:[#allocation2 + $0x8] sm:$0xff]  ;;  %v946_v27 = vld [vmem:[#allocation7] sm:$0xff]  ;;  %v944_v29 = vld [vmem:[%s941_s6 + $0x10] sm:$0xff]  ;;  %s5428_s12 = smov 80   ;;  %s5429_s14 = smov 88  }
 0x28a   : > { %v942_v28 = vld [vmem:[%s941_s6] sm:$0xff]  ;;  %v943_v33 = vld [vmem:[%s941_s6 + $0x8] sm:$0xff]  ;;  %v945_v34 = vld [vmem:[%s941_s6 + $0x18] sm:$0xff]  ;;  %s5430_s1 = smov 96   ;;  %s5431_s16 = smov 72  }
 0x28b   : > { %977 = vmatpush.msra.mxu0 %v951_v18  ;;  %4657 = vmatpush.msra.mxu2 %v951_v18  ;;  %v1056_v32 = vld [vmem:[#allocation2] sm:$0xff]  ;;  %v1063_v40 = vld [vmem:[#allocation2 + $0x38] sm:$0xff]  ;;  %v1062_v41 = vld [vmem:[#allocation2 + $0x30] sm:$0xff]  ;;  %s5432_s29 = smov 24   ;;  %s5433_s17 = smov 32  }
 0x28c   : > { %4437 = vmatpush.xpose.msk.msra.mxu1 %vm1120_vm2, %v1058_v22  ;;  %4664 = vmatpush.xpose.msk.msra.mxu3 %vm1120_vm2, %v1058_v22  ;;  %v1061_v26 = vld [vmem:[#allocation2 + $0x28] sm:$0xff]  ;;  %v1067_v42 = vld [vmem:[#allocation2 + $0x58] sm:$0xff]  ;;  %v1060_v43 = vld [vmem:[#allocation2 + $0x20] sm:$0xff]  ;;  %s5434_s13 = smov 8   ;;  %s5435_s2 = smov 16  }
 0x28d   : > { %978 = vmatpush.msra.mxu0 %v950_v19  ;;  %4658 = vmatpush.msra.mxu2 %v950_v19  ;;  %v1066_v44 = vld [vmem:[#allocation2 + $0x50] sm:$0xff]  ;;  %v1071_v45 = vld [vmem:[#allocation2 + $0x78] sm:$0xff]  ;;  %v1065_v30 = vld [vmem:[#allocation2 + $0x48] sm:$0xff]  ;;  %s5436_s21 = smov 56   ;;  %s5437_s26 = smov 48  }
 0x28e   : > { %v1070_v35 = vld [vmem:[#allocation2 + $0x70] sm:$0xff]  ;;  %v1064_v31 = vld [vmem:[#allocation2 + $0x40] sm:$0xff]  ;;  %v1075_v46 = vld [vmem:[#allocation2 + $0x98] sm:$0xff]  ;;  %s5438_s30 = smov 40   ;;  %s4633_s6 = sshll.u32 %s5387_s24, 2 }
 0x28f   : > { %979 = vmatpush.msra.mxu0 %v949_v21  ;;  %4659 = vmatpush.msra.mxu2 %v949_v21  ;;  %v1069_v47 = vld [vmem:[#allocation2 + $0x68] sm:$0xff]  ;;  %v1074_v48 = vld [vmem:[#allocation2 + $0x90] sm:$0xff]  ;;  %v1068_v49 = vld [vmem:[#allocation2 + $0x60] sm:$0xff]  ;;  %s4271_s24 = scalar_lea.sflag [#allocation6], %s306_s5 }
 0x290   : > { %4438 = vmatpush.xpose.msk.msra.mxu1 %vm1120_vm2, %v1057_v25  ;;  %4665 = vmatpush.xpose.msk.msra.mxu3 %vm1120_vm2, %v1057_v25  ;;  %v1073_v51 = vld [vmem:[#allocation2 + $0x88] sm:$0xff]  ;;  %v1079_v52 = vld [vmem:[#allocation2 + $0xb8] sm:$0xff]  ;;  %v1072_v54 = vld [vmem:[#allocation2 + $0x80] sm:$0xff] }
 0x291   : > { %980 = vmatpush.msra.mxu0 %v948_v23  ;;  %4660 = vmatpush.msra.mxu2 %v948_v23  ;;  %v1083_v53 = vld [vmem:[#allocation2 + $0xd8] sm:$0xff]  ;;  %v1078_v56 = vld [vmem:[#allocation2 + $0xb0] sm:$0xff]  ;;  %v1077_v57 = vld [vmem:[#allocation2 + $0xa8] sm:$0xff] }
 0x292   : > { %v1082_v58 = vld [vmem:[#allocation2 + $0xd0] sm:$0xff]  ;;  %v1076_v59 = vld [vmem:[#allocation2 + $0xa0] sm:$0xff]  ;;  %v1081_v62 = vld [vmem:[#allocation2 + $0xc8] sm:$0xff] }
 0x293   : > { %981 = vmatpush.msra.mxu0 %v947_v24  ;;  %4661 = vmatpush.msra.mxu2 %v947_v24  ;;  %v1080_v63 = vld [vmem:[#allocation2 + $0xc0] sm:$0xff]  ;;  %v1087_v3 = vld [vmem:[#allocation2 + $0xf8] sm:$0xff]  ;;  %v1086_v6 = vld [vmem:[#allocation2 + $0xf0] sm:$0xff] }
 0x294   : > { %4439 = vmatpush.xpose.msk.msra.mxu1 %vm1120_vm2, %v1056_v32  ;;  %4666 = vmatpush.xpose.msk.msra.mxu3 %vm1120_vm2, %v1056_v32  ;;  %v1085_v10 = vld [vmem:[#allocation2 + $0xe8] sm:$0xff]  ;;  %v1084_v12 = vld [vmem:[#allocation2 + $0xe0] sm:$0xff] }
 0x295   : > { %982 = vmatpush.msra.mxu0 %v946_v27  ;;  %4662 = vmatpush.msra.mxu2 %v946_v27 }
 0x296   : > { %4432 = vmatmul.msk.f32.vlgmr.msra.gmra.mxu0 %vm954_vm3, %v942_v28  ;;  %4434 = vmatmul.msk.f32.vlgmr.msra.gmra.mxu2 %vm954_vm3, %v944_v29 }
 0x297   : > { %4444 = vmatpush.xpose.msk.msrb.mxu2 %vm1120_vm2, %v1063_v40  ;;  %4460 = vmatpush.xpose.msk.msrb.mxu0 %vm1120_vm2, %v1071_v45  ;;  %v1091_v40 = vld [vmem:[#allocation3 + $0x18] sm:$0xff] }
 0x298   : > { %4452 = vmatpush.xpose.msk.msrb.mxu3 %vm1120_vm2, %v1067_v42  ;;  %4468 = vmatpush.xpose.msk.msrb.mxu1 %vm1120_vm2, %v1075_v46  ;;  %v1088_v42 = vld [vmem:[#allocation3] sm:$0xff] }
 0x29b   : > { %4445 = vmatpush.xpose.msk.msrb.mxu2 %vm1120_vm2, %v1062_v41  ;;  %4461 = vmatpush.xpose.msk.msrb.mxu0 %vm1120_vm2, %v1070_v35  ;;  %v1090_v41 = vld [vmem:[#allocation3 + $0x10] sm:$0xff] }
 0x29c   : > { %4453 = vmatpush.xpose.msk.msrb.mxu3 %vm1120_vm2, %v1066_v44  ;;  %4469 = vmatpush.xpose.msk.msrb.mxu1 %vm1120_vm2, %v1074_v48 }
 0x29e   : > { %4433 = vmatmul.msk.f32.gmra.mxu0 %vm954_vm3, %v943_v33  ;;  %4435 = vmatmul.msk.f32.gmra.mxu2 %vm954_vm3, %v945_v34 }
 0x29f   : > { %4446 = vmatpush.xpose.msk.msrb.mxu2 %vm1120_vm2, %v1061_v26  ;;  %4462 = vmatpush.xpose.msk.msrb.mxu0 %vm1120_vm2, %v1069_v47  ;;  %v1089_v26 = vld [vmem:[#allocation3 + $0x8] sm:$0xff] }
 0x2a0   : > { %4454 = vmatpush.xpose.msk.msrb.mxu3 %vm1120_vm2, %v1065_v30  ;;  %4470 = vmatpush.xpose.msk.msrb.mxu1 %vm1120_vm2, %v1073_v51 }
 0x2a3   : > { %4447 = vmatpush.xpose.msk.msrb.mxu2 %vm1120_vm2, %v1060_v43  ;;  %4463 = vmatpush.xpose.msk.msrb.mxu0 %vm1120_vm2, %v1068_v49 }
 0x2a4   : > { %4455 = vmatpush.xpose.msk.msrb.mxu3 %vm1120_vm2, %v1064_v31  ;;  %4471 = vmatpush.xpose.msk.msrb.mxu1 %vm1120_vm2, %v1072_v54 }
 0x2a7   : > { %4476 = vmatpush.xpose.msk.msra.mxu2 %vm1120_vm2, %v1079_v52  ;;  %4492 = vmatpush.xpose.msk.msra.mxu0 %vm1120_vm2, %v1087_v3 }
 0x2ab   : > { %4477 = vmatpush.xpose.msk.msra.mxu2 %vm1120_vm2, %v1078_v56  ;;  %4493 = vmatpush.xpose.msk.msra.mxu0 %vm1120_vm2, %v1086_v6 }
 0x2af   : > { %4478 = vmatpush.xpose.msk.msra.mxu2 %vm1120_vm2, %v1077_v57  ;;  %4494 = vmatpush.xpose.msk.msra.mxu0 %vm1120_vm2, %v1085_v10 }
 0x2b3   : > { %4479 = vmatpush.xpose.msk.msra.mxu2 %vm1120_vm2, %v1076_v59  ;;  %4495 = vmatpush.xpose.msk.msra.mxu0 %vm1120_vm2, %v1084_v12 }
 0x313   : > { %v6016_v36 = vpop.f32.mrf.mxu0 }
 0x314   : > { %1000 = vrot.lane.b32.xlu0 %v6016_v36, %s5425_s18  ;;  %4440 = vmatmul.msk.f32.vlgmr.msra.gmra.mxu1 %vm1120_vm2, %v6016_v36 }
 0x315   : > { %1986 = vmatpush.msra.mxu1 %v1091_v40 }
 0x317   : > { %1987 = vmatpush.msra.mxu1 %v1090_v41 }
 0x319   : > { %v6021_v37 = vpop.f32.mrf.mxu2  ;;  %1988 = vmatpush.msra.mxu1 %v1089_v26 }
 0x31a   : > { %1004 = vrot.lane.b32.xlu2 %v6021_v37, %s5425_s18  ;;  %4442 = vmatmul.msk.f32.vlgmr.msra.gmra.mxu3 %vm1120_vm2, %v6021_v37 }
 0x31b   : > { %v6026_v38 = vpop.f32.mrf.mxu0  ;;  %4484 = vmatpush.xpose.msk.msra.mxu3 %vm1120_vm2, %v1083_v53  ;;  %1989 = vmatpush.msra.mxu1 %v1088_v42 }
 0x31c   : > { %1008 = vrot.lane.b32.xlu0 %v6016_v36, %s5426_s7  ;;  %1002 = vrot.lane.b32.xlu1 %v6026_v38, %s5425_s18 }
 0x31d   : > { %4441 = vmatmul.msk.f32.gmra.mxu1 %vm1120_vm2, %v6026_v38 }
 0x31f   : > { %4485 = vmatpush.xpose.msk.msra.mxu3 %vm1120_vm2, %v1082_v58 }
 0x321   : > { %v6032_v39 = vpop.f32.mrf.mxu2 }
 0x322   : > { %1012 = vrot.lane.b32.xlu2 %v6021_v37, %s5426_s7  ;;  %4443 = vmatmul.msk.f32.gmra.mxu3 %vm1120_vm2, %v6032_v39 }
 0x323   : > { %4486 = vmatpush.xpose.msk.msra.mxu3 %vm1120_vm2, %v1081_v62 }
 0x324   : > { %1016 = vrot.lane.b32.xlu0 %v6016_v36, %s5427_s10  ;;  %1010 = vrot.lane.b32.xlu1 %v6026_v38, %s5426_s7 }
 0x327   : > { %4487 = vmatpush.xpose.msk.msra.mxu3 %vm1120_vm2, %v1080_v63 }
 0x32a   : > { %1014 = vrot.lane.b32.xlu2 %v6032_v39, %s5426_s7 }
 0x32c   : > { %1018 = vrot.lane.b32.xlu0 %v6026_v38, %s5427_s10  ;;  %1006 = vrot.lane.b32.xlu1 %v6032_v39, %s5425_s18  ;;  %s4634_s18 = sshll.u32 %s5391_s25, 3 }
 0x332   : > { %1040 = vrot.lane.b32.xlu2 %v6016_v36, %s5428_s12 }
 0x334   : > { %1020 = vrot.lane.b32.xlu0 %v6021_v37, %s5427_s10  ;;  %1032 = vrot.lane.b32.xlu1 %v6016_v36, %s5429_s14 }
 0x33a   : > { %1042 = vrot.lane.b32.xlu2 %v6026_v38, %s5428_s12 }
 0x33c   : > { %1022 = vrot.lane.b32.xlu0 %v6032_v39, %s5427_s10  ;;  %1034 = vrot.lane.b32.xlu1 %v6026_v38, %s5429_s14  ;;  %s4282_s10 = sadd.s32 %s4634_s18, %s4633_s6 }
 0x342   : > { %1024 = vrot.lane.b32.xlu2 %v6016_v36, %s5430_s1 }
 0x344   : > { %1044 = vrot.lane.b32.xlu0 %v6021_v37, %s5428_s12  ;;  %1036 = vrot.lane.b32.xlu1 %v6021_v37, %s5429_s14 }
 0x34a   : > { %1038 = vrot.lane.b32.xlu2 %v6032_v39, %s5429_s14 }
 0x34c   : > { %1026 = vrot.lane.b32.xlu0 %v6026_v38, %s5430_s1  ;;  %1048 = vrot.lane.b32.xlu1 %v6016_v36, %s5431_s16 }
 0x352   : > { %1050 = vrot.lane.b32.xlu2 %v6026_v38, %s5431_s16 }
 0x354   : > { %1028 = vrot.lane.b32.xlu0 %v6021_v37, %s5430_s1  ;;  %1046 = vrot.lane.b32.xlu1 %v6032_v39, %s5428_s12  ;;  %s4635_s12 = sshll.u32 %s4282_s10, 3 }
 0x35a   : > { %1030 = vrot.lane.b32.xlu2 %v6032_v39, %s5430_s1 }
 0x35c   : > { %1054 = vrot.lane.b32.xlu0 %v6032_v39, %s5431_s16  ;;  %1052 = vrot.lane.b32.xlu1 %v6021_v37, %s5431_s16  ;;  %s8718_s16 = sld [smem:[#allocation116_spill]] }
 0x362   : > { %s5293_s15 = scalar_lea.hbm %s8718_s16, 128 }
 0x374   : > { %v6073_v50 = vpop.permute.xlu2 %1004 }
 0x37c   : > { %v6080_v55 = vpop.permute.xlu2 %1012 }
 0x384   : > { %v6085_v60 = vpop.permute.xlu2 %1014 }
 0x386   : > { %v6088_v61 = vpop.permute.xlu0 %1000 }
 0x387   : > { %4448 = vmatmul.msk.f32.vlgmr.msrb.gmra.mxu2 %vm1120_vm2, %v6088_v61 }
 0x38c   : > { %v6093_v0 = vpop.permute.xlu2 %1040 }
 0x38e   : > { %v6096_v1 = vpop.permute.xlu0 %1008  ;;  %v6098_v2 = vpop.permute.xlu1 %1002 }
 0x38f   : > { %4449 = vmatmul.msk.f32.gmra.mxu2 %vm1120_vm2, %v6098_v2  ;;  %4456 = vmatmul.msk.f32.vlgmr.msrb.gmra.mxu3 %vm1120_vm2, %v6096_v1 }
 0x391   : > { %v6104_v4 = vpop.f32.mrf.mxu1 }
 0x392   : > { %v1514_v5 = vsel %vm1513_vm4, %v6104_v4, -inf }
 0x393   : > { %1515 = vmax.xlane.f32.xlu1 %v1514_v5 }
 0x394   : > { %v6109_v7 = vpop.permute.xlu2 %1042 }
 0x396   : > { %v6112_v8 = vpop.permute.xlu0 %1016  ;;  %v6114_v9 = vpop.permute.xlu1 %1010 }
 0x397   : > { %4450 = vmatmul.msk.f32.gmra.mxu2 %vm1120_vm2, %v6073_v50  ;;  %4457 = vmatmul.msk.f32.gmra.mxu3 %vm1120_vm2, %v6114_v9 }
 0x398   : > { %4464 = vmatmul.msk.f32.vlgmr.msrb.gmra.mxu0 %vm1120_vm2, %v6112_v8 }
 0x39a   : > { %v6123_v11 = vpop.f32.mrf.mxu1 }
 0x39b   : > { %v1517_v13 = vsel %vm1513_vm4, %v6123_v11, -inf }
 0x39c   : > { %1518 = vmax.xlane.f32.xlu2 %v1517_v13  ;;  %v6127_v14 = vpop.permute.xlu2 %1024 }
 0x39d   : > { %8404 = vst [vmem:[#allocation23_spill] sm:$0xff] %v6127_v14  ;;  %4472 = vmatmul.msk.f32.vlgmr.msrb.gmra.mxu1 %vm1120_vm2, %v6127_v14  ;;  %v6208_v43 = vpop.f32.mrf.mxu3  ;;  %v1100_v14 = vld [vmem:[#allocation3 + $0x60] sm:$0xff] }
 0x39e   : > { %v6132_v15 = vpop.permute.xlu0 %1018  ;;  %v6134_v16 = vpop.permute.xlu1 %1006 }
 0x39f   : > { %4451 = vmatmul.msk.f32.gmra.mxu2 %vm1120_vm2, %v6134_v16  ;;  %4458 = vmatmul.msk.f32.gmra.mxu3 %vm1120_vm2, %v6080_v55 }
 0x3a0   : > { %4465 = vmatmul.msk.f32.gmra.mxu0 %vm1120_vm2, %v6132_v15 }
 0x3a4   : > { %v6170_v23 = vpop.permute.xlu2 %1038 }
 0x3a5   : > { %8407 = vst [vmem:[#allocation26_spill] sm:$0xff] %v6170_v23  ;;  %v6214_v35 = vpop.f32.mrf.mxu3 }
 0x3a6   : > { %v6142_v17 = vpop.permute.xlu0 %1020  ;;  %v6144_v18 = vpop.permute.xlu1 %1032 }
 0x3a7   : > { %4459 = vmatmul.msk.f32.gmra.mxu3 %vm1120_vm2, %v6085_v60  ;;  %4480 = vmatmul.msk.f32.vlgmr.msra.gmra.mxu2 %vm1120_vm2, %v6144_v18 }
 0x3a8   : > { %4466 = vmatmul.msk.f32.gmra.mxu0 %vm1120_vm2, %v6142_v17 }
 0x3ac   : > { %v6184_v27 = vpop.permute.xlu2 %1050 }
 0x3ad   : > { %8409 = vst [vmem:[#allocation28_spill] sm:$0xff] %v6184_v27 }
 0x3ae   : > { %v6152_v19 = vpop.permute.xlu0 %1022  ;;  %v6154_v20 = vpop.permute.xlu1 %1034 }
 0x3af   : > { %4481 = vmatmul.msk.f32.gmra.mxu2 %vm1120_vm2, %v6154_v20  ;;  %4488 = vmatmul.msk.f32.vlgmr.msra.gmra.mxu3 %vm1120_vm2, %v6093_v0 }
 0x3b0   : > { %4467 = vmatmul.msk.f32.gmra.mxu0 %vm1120_vm2, %v6152_v19 }
 0x3b4   : > { %v6196_v32 = vpop.permute.xlu2 %1030 }
 0x3b5   : > { %8412 = vst [vmem:[#allocation31_spill] sm:$0xff] %v6196_v32 }
 0x3b6   : > { %v6162_v21 = vpop.permute.xlu0 %1044  ;;  %v6164_v22 = vpop.permute.xlu1 %1036 }
 0x3b7   : > { %8405 = vst [vmem:[#allocation24_spill] sm:$0xff] %v6162_v21  ;;  %4482 = vmatmul.msk.f32.gmra.mxu2 %vm1120_vm2, %v6164_v22  ;;  %4489 = vmatmul.msk.f32.gmra.mxu3 %vm1120_vm2, %v6109_v7 }
 0x3b8   : > { %8406 = vst [vmem:[#allocation25_spill] sm:$0xff] %v6164_v22  ;;  %v1101_v22 = vld [vmem:[#allocation3 + $0x68] sm:$0xff] }
 0x3be   : > { %v6172_v24 = vpop.permute.xlu0 %1026  ;;  %v6174_v25 = vpop.permute.xlu1 %1048 }
 0x3bf   : > { %8408 = vst [vmem:[#allocation27_spill] sm:$0xff] %v6172_v24  ;;  %4473 = vmatmul.msk.f32.gmra.mxu1 %vm1120_vm2, %v6172_v24  ;;  %4483 = vmatmul.msk.f32.gmra.mxu2 %vm1120_vm2, %v6170_v23 }
 0x3c0   : > { %4490 = vmatmul.msk.f32.gmra.mxu3 %vm1120_vm2, %v6162_v21  ;;  %4496 = vmatmul.msk.f32.vlgmr.msra.gmra.mxu0 %vm1120_vm2, %v6174_v25  ;;  %v1102_v21 = vld [vmem:[#allocation3 + $0x70] sm:$0xff] }
 0x3c6   : > { %v6186_v28 = vpop.permute.xlu0 %1028  ;;  %v6188_v29 = vpop.permute.xlu1 %1046 }
 0x3c7   : > { %8410 = vst [vmem:[#allocation29_spill] sm:$0xff] %v6186_v28  ;;  %4474 = vmatmul.msk.f32.gmra.mxu1 %vm1120_vm2, %v6186_v28 }
 0x3c8   : > { %8411 = vst [vmem:[#allocation30_spill] sm:$0xff] %v6188_v29  ;;  %4491 = vmatmul.msk.f32.gmra.mxu3 %vm1120_vm2, %v6188_v29  ;;  %4497 = vmatmul.msk.f32.gmra.mxu0 %vm1120_vm2, %v6184_v27  ;;  %v1094_v29 = vld [vmem:[#allocation3 + $0x30] sm:$0xff] }
 0x3ce   : > { %v6198_v33 = vpop.permute.xlu1 %1052  ;;  %v6204_v34 = vpop.permute.xlu0 %1054 }
 0x3cf   : > { %8413 = vst [vmem:[#allocation32_spill] sm:$0xff] %v6198_v33  ;;  %4475 = vmatmul.msk.f32.gmra.mxu1 %vm1120_vm2, %v6196_v32 }
 0x3d0   : > { %4498 = vmatmul.msk.f32.gmra.mxu0 %vm1120_vm2, %v6198_v33  ;;  %8414 = vst [vmem:[#allocation33_spill] sm:$0xff] %v6204_v34  ;;  %v1095_v33 = vld [vmem:[#allocation3 + $0x38] sm:$0xff] }
 0x3d1   : > { %2027 = vmatpush.msrb.mxu2 %v1095_v33 }
 0x3d3   : > { %2028 = vmatpush.msrb.mxu2 %v1094_v29  ;;  %v1096_v29 = vld [vmem:[#allocation3 + $0x40] sm:$0xff] }
 0x3d8   : > { %4499 = vmatmul.msk.f32.gmra.mxu0 %vm1120_vm2, %v6204_v34 }
 0x406   : > { %v6210_v44 = vpop.xlane.xlu1 %1515 }
 0x407   : > { %8415 = vst [vmem:[#allocation34_spill] sm:$0xff] %v6210_v44  ;;  %v1706_v45 = vsub.f32 %v6104_v4, %v6210_v44 }
 0x409   : > { %v1738_v30 = vmul.f32 1.442695, %v1706_v45 }
 0x40a   : > { %v6216_v31 = vpop.f32.mrf.mxu2 }
 0x40b   : > { %4833 = vpow2.f32 %v1738_v30  ;;  %v1526_v46 = vsel %vm1513_vm4, %v6216_v31, -inf  ;;  %v1520_v30 = vsel %vm1513_vm4, %v6208_v43, -inf }
 0x40c   : > { %1527 = vmax.xlane.f32.xlu1 %v1526_v46 }
 0x40f   : > { %v6220_v47 = vpop.xlane.xlu2 %1518 }
 0x410   : > { %8416 = vst [vmem:[#allocation35_spill] sm:$0xff] %v6220_v47  ;;  %v1707_v48 = vsub.f32 %v6123_v11, %v6220_v47 }
 0x411   : > { %v6224_v49 = vpop.eup %4833 }
 0x412   : > { %v1740_v51 = vmul.f32 1.442695, %v1707_v48  ;;  %v6226_v52 = vpop.f32.mrf.mxu3  ;;  %4500 = vmatmul.msk.f32.vlgmr.msra.gmra.mxu1 %vm1513_vm4, %v6224_v49  ;;  %v6234_v56 = vpop.f32.mrf.mxu2  ;;  %v1834_v33 = vsel %vm1513_vm4, %v6224_v49, 0.0 }
 0x413   : > { %v1538_v63 = vsel %vm1513_vm4, %v6226_v52, -inf  ;;  %v1529_v6 = vsel %vm1513_vm4, %v6234_v56, -inf }
 0x414   : > { %4835 = vpow2.f32 %v1740_v51 }
 0x415   : > { %v6230_v53 = vpop.f32.mrf.mxu0 }
 0x416   : > { %v1550_v54 = vsel %vm1513_vm4, %v6230_v53, -inf }
 0x417   : > { %1551 = vmax.xlane.f32.xlu2 %v1550_v54 }
 0x41a   : > { %v6236_v57 = vpop.eup %4835  ;;  %v6238_v58 = vpop.f32.mrf.mxu3 }
 0x41b   : > { %4501 = vmatmul.msk.f32.gmra.mxu1 %vm1513_vm4, %v6236_v57  ;;  %v6248_v3 = vpop.f32.mrf.mxu2  ;;  %v1541_v11 = vsel %vm1513_vm4, %v6238_v58, -inf  ;;  %v1837_v27 = vsel %vm1513_vm4, %v6236_v57, 0.0 }
 0x41c   : > { %v1532_v41 = vsel %vm1513_vm4, %v6248_v3, -inf }
 0x41d   : > { %v6242_v59 = vpop.f32.mrf.mxu0 }
 0x41e   : > { %v1553_v62 = vsel %vm1513_vm4, %v6242_v59, -inf }
 0x41f   : > { %1554 = vmax.xlane.f32.xlu0 %v1553_v62  ;;  %1539 = vmax.xlane.f32.xlu2 %v1538_v63  ;;  %v1523_v62 = vsel %vm1513_vm4, %v6214_v35, -inf }
 0x422   : > { %v6250_v4 = vpop.f32.mrf.mxu3 }
 0x423   : > { %v6260_v12 = vpop.f32.mrf.mxu2  ;;  %v1544_v26 = vsel %vm1513_vm4, %v6250_v4, -inf }
 0x424   : > { %v1535_v46 = vsel %vm1513_vm4, %v6260_v12, -inf }
 0x425   : > { %v6252_v5 = vpop.f32.mrf.mxu0 }
 0x426   : > { %v1556_v10 = vsel %vm1513_vm4, %v6252_v5, -inf }
 0x427   : > { %1530 = vmax.xlane.f32.xlu0 %v1529_v6  ;;  %1557 = vmax.xlane.f32.xlu1 %v1556_v10 }
 0x428   : > { %1542 = vmax.xlane.f32.xlu2 %v1541_v11  ;;  %v6292_v11 = vpop.f32.mrf.mxu1 }
 0x42a   : > { %v6264_v40 = vpop.f32.mrf.mxu3 }
 0x42b   : > { %v6272_v45 = vpop.f32.mrf.mxu2  ;;  %v1547_v48 = vsel %vm1513_vm4, %v6264_v40, -inf }
 0x42c   : > { %v1574_v63 = vsel %vm1513_vm4, %v6272_v45, -inf }
 0x42d   : > { %v6262_v13 = vpop.f32.mrf.mxu0 }
 0x42e   : > { %v1559_v42 = vsel %vm1513_vm4, %v6262_v13, -inf }
 0x42f   : > { %1533 = vmax.xlane.f32.xlu0 %v1532_v41  ;;  %1545 = vmax.xlane.f32.xlu1 %v1544_v26 }
 0x430   : > { %1560 = vmax.xlane.f32.xlu2 %v1559_v42 }
 0x432   : > { %v6280_v51 = vpop.f32.mrf.mxu3 }
 0x433   : > { %v1586_v54 = vsel %vm1513_vm4, %v6280_v51, -inf  ;;  %v6288_v6 = vpop.f32.mrf.mxu2 }
 0x434   : > { %v1577_v26 = vsel %vm1513_vm4, %v6288_v6, -inf }
 0x437   : > { %1521 = vmax.xlane.f32.xlu0 %v1520_v30  ;;  %1536 = vmax.xlane.f32.xlu1 %v1535_v46  ;;  %v1562_v30 = vsel %vm1513_vm4, %v6292_v11, -inf }
 0x438   : > { %1548 = vmax.xlane.f32.xlu2 %v1547_v48 }
 0x43a   : > { %v6290_v10 = vpop.f32.mrf.mxu3 }
 0x43b   : > { %v1589_v42 = vsel %vm1513_vm4, %v6290_v10, -inf  ;;  %v6302_v46 = vpop.f32.mrf.mxu2 }
 0x43d   : > { %v6294_v41 = vpop.f32.mrf.mxu0 }
 0x43f   : > { %1587 = vmax.xlane.f32.xlu0 %v1586_v54  ;;  %1524 = vmax.xlane.f32.xlu1 %v1523_v62  ;;  %v1580_v54 = vsel %vm1513_vm4, %v6302_v46, -inf  ;;  %v1598_v62 = vsel %vm1513_vm4, %v6294_v41, -inf }
 0x440   : > { %1575 = vmax.xlane.f32.xlu2 %v1574_v63  ;;  %v6310_v63 = vpop.f32.mrf.mxu1 }
 0x441   : > { %v1565_v44 = vsel %vm1513_vm4, %v6310_v63, -inf }
 0x443   : > { %v6304_v48 = vpop.f32.mrf.mxu3 }
 0x445   : > { %v6312_v47 = vpop.f32.mrf.mxu0 }
 0x447   : > { %1578 = vmax.xlane.f32.xlu0 %v1577_v26  ;;  %1590 = vmax.xlane.f32.xlu1 %v1589_v42  ;;  %v1592_v26 = vsel %vm1513_vm4, %v6304_v48, -inf  ;;  %v6316_v42 = vpop.f32.mrf.mxu2 }
 0x448   : > { %1563 = vmax.xlane.f32.xlu2 %v1562_v30  ;;  %v1601_v30 = vsel %vm1513_vm4, %v6312_v47, -inf  ;;  %v1583_v32 = vsel %vm1513_vm4, %v6316_v42, -inf }
 0x44b   : > { %v6328_v34 = vpop.f32.mrf.mxu3 }
 0x44f   : > { %1581 = vmax.xlane.f32.xlu1 %v1580_v54  ;;  %1599 = vmax.xlane.f32.xlu0 %v1598_v62  ;;  %v6324_v54 = vpop.f32.mrf.mxu1  ;;  %v6326_v62 = vpop.f32.mrf.mxu0 }
 0x450   : > { %1593 = vmax.xlane.f32.xlu2 %v1592_v26  ;;  %v1595_v26 = vsel %vm1513_vm4, %v6328_v34, -inf  ;;  %v1568_v28 = vsel %vm1513_vm4, %v6324_v54, -inf }
 0x457   : > { %1602 = vmax.xlane.f32.xlu1 %v1601_v30  ;;  %1566 = vmax.xlane.f32.xlu0 %v1565_v44  ;;  %v1604_v30 = vsel %vm1513_vm4, %v6326_v62, -inf  ;;  %v6336_v44 = vpop.f32.mrf.mxu1 }
 0x458   : > { %1584 = vmax.xlane.f32.xlu2 %v1583_v32  ;;  %v6338_v32 = vpop.f32.mrf.mxu0  ;;  %v1571_v24 = vsel %vm1513_vm4, %v6336_v44, -inf }
 0x459   : > { %v1607_v23 = vsel %vm1513_vm4, %v6338_v32, -inf }
 0x45f   : > { %1596 = vmax.xlane.f32.xlu0 %v1595_v26  ;;  %1569 = vmax.xlane.f32.xlu1 %v1568_v28  ;;  %v1093_v28 = vld [vmem:[#allocation3 + $0x28] sm:$0xff]  ;;  %v1092_v26 = vld [vmem:[#allocation3 + $0x20] sm:$0xff] }
 0x460   : > { %1605 = vmax.xlane.f32.xlu2 %v1604_v30  ;;  %2029 = vmatpush.msrb.mxu2 %v1093_v28  ;;  %v1103_v30 = vld [vmem:[#allocation3 + $0x78] sm:$0xff] }
 0x461   : > { %2109 = vmatpush.msrb.mxu0 %v1103_v30 }
 0x462   : > { %2030 = vmatpush.msrb.mxu2 %v1092_v26 }
 0x463   : > { %2110 = vmatpush.msrb.mxu0 %v1102_v21 }
 0x465   : > { %2111 = vmatpush.msrb.mxu0 %v1101_v22 }
 0x467   : > { %1608 = vmax.xlane.f32.xlu1 %v1607_v23  ;;  %1572 = vmax.xlane.f32.xlu0 %v1571_v24  ;;  %v1099_v23 = vld [vmem:[#allocation3 + $0x58] sm:$0xff]  ;;  %v1098_v24 = vld [vmem:[#allocation3 + $0x50] sm:$0xff] }
 0x468   : > { %1838 = vadd.xlane.f32.xlu2 %v1837_v27  ;;  %2112 = vmatpush.msrb.mxu0 %v1100_v14  ;;  %v1097_v27 = vld [vmem:[#allocation3 + $0x48] sm:$0xff] }
 0x469   : > { %2068 = vmatpush.msrb.mxu3 %v1099_v23 }
 0x46b   : > { %2069 = vmatpush.msrb.mxu3 %v1098_v24 }
 0x46d   : > { %2070 = vmatpush.msrb.mxu3 %v1097_v27 }
 0x46f   : > { %1835 = vadd.xlane.f32.xlu1 %v1834_v33  ;;  %2071 = vmatpush.msrb.mxu3 %v1096_v29  ;;  %v1107_v33 = vld [vmem:[#allocation3 + $0x98] sm:$0xff] }
 0x470   : > { %2150 = vmatpush.msrb.mxu1 %v1107_v33  ;;  %v1110_v33 = vld [vmem:[#allocation3 + $0xb0] sm:$0xff] }
 0x47f   : > { %v6348_v57 = vpop.xlane.xlu1 %1527 }
 0x480   : > { %v1710_v49 = vsub.f32 %v6216_v31, %v6348_v57 }
 0x482   : > { %v1746_v28 = vmul.f32 1.442695, %v1710_v49 }
 0x484   : > { %4837 = vpow2.f32 %v1746_v28  ;;  %v1111_v28 = vld [vmem:[#allocation3 + $0xb8] sm:$0xff] }
 0x485   : > { %2191 = vmatpush.msra.mxu2 %v1111_v28 }
 0x487   : > { %2192 = vmatpush.msra.mxu2 %v1110_v33  ;;  %v1112_v33 = vld [vmem:[#allocation3 + $0xc0] sm:$0xff] }
 0x48a   : > { %v4838_v21 = vpop.eup %4837  ;;  %v6352_v26 = vpop.xlane.xlu2 %1551 }
 0x48b   : > { %v1718_v14 = vsub.f32 %v6230_v53, %v6352_v26  ;;  %4504 = vmatmul.msk.f32.vlgmr.msrb.gmra.mxu2 %vm1513_vm4, %v4838_v21 }
 0x48d   : > { %v1762_v22 = vmul.f32 1.442695, %v1718_v14  ;;  %v1115_v14 = vld [vmem:[#allocation3 + $0xd8] sm:$0xff] }
 0x48e   : > { %2232 = vmatpush.msra.mxu3 %v1115_v14 }
 0x48f   : > { %4839 = vpow2.f32 %v1762_v22  ;;  %v1106_v22 = vld [vmem:[#allocation3 + $0x90] sm:$0xff] }
 0x490   : > { %2151 = vmatpush.msrb.mxu1 %v1106_v22 }
 0x492   : > { %v6357_v30 = vpop.xlane.xlu0 %1554  ;;  %v6359_v23 = vpop.xlane.xlu2 %1539 }
 0x493   : > { %8417 = vst [vmem:[#allocation36_spill] sm:$0xff] %v6357_v30  ;;  %v1719_v31 = vsub.f32 %v6242_v59, %v6357_v30  ;;  %v1714_v24 = vsub.f32 %v6226_v52, %v6359_v23  ;;  %v1114_v59 = vld [vmem:[#allocation3 + $0xd0] sm:$0xff] }
 0x494   : > { %8418 = vst [vmem:[#allocation37_spill] sm:$0xff] %v6359_v23  ;;  %2233 = vmatpush.msra.mxu3 %v1114_v59 }
 0x495   : > { %v4840_v27 = vpop.eup %4839  ;;  %v1764_v29 = vmul.f32 1.442695, %v1719_v31  ;;  %v1754_v49 = vmul.f32 1.442695, %v1714_v24 }
 0x496   : > { %4512 = vmatmul.msk.f32.vlgmr.msrb.gmra.mxu0 %vm1513_vm4, %v4840_v27  ;;  %v1870_v53 = vsel %vm1513_vm4, %v4840_v27, 0.0 }
 0x497   : > { %4841 = vpow2.f32 %v1764_v29  ;;  %1871 = vadd.xlane.f32.xlu2 %v1870_v53  ;;  %v1113_v53 = vld [vmem:[#allocation3 + $0xc8] sm:$0xff] }
 0x498   : > { %4843 = vpow2.f32 %v1754_v49  ;;  %v1109_v49 = vld [vmem:[#allocation3 + $0xa8] sm:$0xff]  ;;  %2234 = vmatpush.msra.mxu3 %v1113_v53 }
 0x499   : > { %2193 = vmatpush.msra.mxu2 %v1109_v49 }
 0x49a   : > { %v6367_v30 = vpop.xlane.xlu0 %1530  ;;  %v6369_v52 = vpop.xlane.xlu1 %1557  ;;  %2235 = vmatpush.msra.mxu3 %v1112_v33 }
 0x49b   : > { %8419 = vst [vmem:[#allocation38_spill] sm:$0xff] %v6367_v30  ;;  %v1711_v31 = vsub.f32 %v6234_v56, %v6367_v30  ;;  %v1720_v24 = vsub.f32 %v6252_v5, %v6369_v52  ;;  %v6375_v27 = vpop.xlane.xlu2 %1542  ;;  %v1846_v5 = vsel %vm1513_vm4, %v4838_v21, 0.0  ;;  %v1108_v30 = vld [vmem:[#allocation3 + $0xa0] sm:$0xff] }
 0x49c   : > { %8420 = vst [vmem:[#allocation39_spill] sm:$0xff] %v6375_v27  ;;  %v1715_v29 = vsub.f32 %v6238_v58, %v6375_v27  ;;  %2194 = vmatpush.msra.mxu2 %v1108_v30  ;;  %v1105_v58 = vld [vmem:[#allocation3 + $0x88] sm:$0xff] }
 0x49d   : > { %v4842_v28 = vpop.eup %4841  ;;  %v1748_v14 = vmul.f32 1.442695, %v1711_v31  ;;  %v1766_v23 = vmul.f32 1.442695, %v1720_v24  ;;  %2152 = vmatpush.msrb.mxu1 %v1105_v58 }
 0x49e   : > { %v6379_v22 = vpop.eup %4843  ;;  %v1756_v56 = vmul.f32 1.442695, %v1715_v29  ;;  %4513 = vmatmul.msk.f32.gmra.mxu0 %vm1513_vm4, %v4842_v28 }
 0x49f   : > { %4845 = vpow2.f32 %v1748_v14  ;;  %4508 = vmatmul.msk.f32.vlgmr.msrb.gmra.mxu3 %vm1513_vm4, %v6379_v22  ;;  %1847 = vadd.xlane.f32.xlu2 %v1846_v5  ;;  %v1104_v5 = vld [vmem:[#allocation3 + $0x80] sm:$0xff] }
 0x4a0   : > { %4847 = vpow2.f32 %v1766_v23  ;;  %2153 = vmatpush.msrb.mxu1 %v1104_v5  ;;  %v1117_v5 = vld [vmem:[#allocation3 + $0xe8] sm:$0xff] }
 0x4a1   : > { %4849 = vpow2.f32 %v1756_v56 }
 0x4a2   : > { %v6385_v59 = vpop.xlane.xlu0 %1533  ;;  %v6387_v31 = vpop.xlane.xlu1 %1545 }
 0x4a3   : > { %8421 = vst [vmem:[#allocation40_spill] sm:$0xff] %v6385_v59  ;;  %v1712_v21 = vsub.f32 %v6248_v3, %v6385_v59  ;;  %v1716_v24 = vsub.f32 %v6250_v4, %v6387_v31  ;;  %v6393_v29 = vpop.xlane.xlu2 %1560  ;;  %v1873_v3 = vsel %vm1513_vm4, %v4842_v28, 0.0  ;;  %v1119_v4 = vld [vmem:[#allocation3 + $0xf8] sm:$0xff]  ;;  %v1118_v28 = vld [vmem:[#allocation3 + $0xf0] sm:$0xff] }
 0x4a4   : > { %8422 = vst [vmem:[#allocation41_spill] sm:$0xff] %v6387_v31  ;;  %v1721_v23 = vsub.f32 %v6262_v13, %v6393_v29  ;;  %2273 = vmatpush.msra.mxu0 %v1119_v4 }
 0x4a5   : > { %8423 = vst [vmem:[#allocation42_spill] sm:$0xff] %v6393_v29  ;;  %v6397_v30 = vpop.eup %4845  ;;  %v1750_v49 = vmul.f32 1.442695, %v1712_v21  ;;  %v1758_v53 = vmul.f32 1.442695, %v1716_v24 }
 0x4a6   : > { %v6399_v14 = vpop.eup %4847  ;;  %v1768_v56 = vmul.f32 1.442695, %v1721_v23  ;;  %4505 = vmatmul.msk.f32.gmra.mxu2 %vm1513_vm4, %v6397_v30  ;;  %2274 = vmatpush.msra.mxu0 %v1118_v28  ;;  %v2330_v28 = vld [vmem:[#allocation2 + $0x138] sm:$0xff] }
 0x4a7   : > { %v6404_v33 = vpop.eup %4849  ;;  %4851 = vpow2.f32 %v1750_v49  ;;  %4514 = vmatmul.msk.f32.gmra.mxu0 %vm1513_vm4, %v6399_v14  ;;  %1874 = vadd.xlane.f32.xlu2 %v1873_v3 }
 0x4a8   : > { %4853 = vpow2.f32 %v1758_v53  ;;  %4509 = vmatmul.msk.f32.gmra.mxu3 %vm1513_vm4, %v6404_v33  ;;  %2275 = vmatpush.msra.mxu0 %v1117_v5 }
 0x4a9   : > { %4855 = vpow2.f32 %v1768_v56  ;;  %4540 = vmatpush.xpose.msk.msrb.mxu2 %vm1120_vm2, %v2330_v28 }
 0x4aa   : > { %v6410_v13 = vpop.xlane.xlu0 %1521  ;;  %v6412_v58 = vpop.xlane.xlu1 %1536 }
 0x4ab   : > { %8424 = vst [vmem:[#allocation43_spill] sm:$0xff] %v6412_v58  ;;  %v1708_v21 = vsub.f32 %v6208_v43, %v6410_v13  ;;  %v1713_v24 = vsub.f32 %v6260_v12, %v6412_v58  ;;  %v6418_v23 = vpop.xlane.xlu2 %1548  ;;  %v1116_v58 = vld [vmem:[#allocation3 + $0xe0] sm:$0xff] }
 0x4ac   : > { %8425 = vst [vmem:[#allocation44_spill] sm:$0xff] %v6418_v23  ;;  %v1717_v49 = vsub.f32 %v6264_v40, %v6418_v23  ;;  %2276 = vmatpush.msra.mxu0 %v1116_v58  ;;  %v2326_v40 = vld [vmem:[#allocation2 + $0x118] sm:$0xff] }
 0x4ad   : > { %v6422_v53 = vpop.eup %4851  ;;  %v1742_v56 = vmul.f32 1.442695, %v1708_v21  ;;  %v1752_v3 = vmul.f32 1.442695, %v1713_v24  ;;  %4532 = vmatpush.xpose.msk.msra.mxu1 %vm1120_vm2, %v2326_v40 }
 0x4ae   : > { %v4854_v59 = vpop.eup %4853  ;;  %v1760_v4 = vmul.f32 1.442695, %v1717_v49  ;;  %4506 = vmatmul.msk.f32.gmra.mxu2 %vm1513_vm4, %v6422_v53 }
 0x4af   : > { %v6426_v43 = vpop.eup %4855  ;;  %4857 = vpow2.f32 %v1742_v56  ;;  %v1864_v12 = vsel %vm1513_vm4, %v4854_v59, 0.0 }
 0x4b0   : > { %4859 = vpow2.f32 %v1752_v3  ;;  %4510 = vmatmul.msk.f32.gmra.mxu3 %vm1513_vm4, %v4854_v59  ;;  %4515 = vmatmul.msk.f32.gmra.mxu0 %vm1513_vm4, %v6426_v43 }
 0x4b1   : > { %4861 = vpow2.f32 %v1760_v4  ;;  %1865 = vadd.xlane.f32.xlu2 %v1864_v12  ;;  %v2329_v12 = vld [vmem:[#allocation2 + $0x130] sm:$0xff] }
 0x4b2   : > { %v6432_v21 = vpop.xlane.xlu0 %1587  ;;  %v6434_v24 = vpop.xlane.xlu1 %1524  ;;  %4541 = vmatpush.xpose.msk.msrb.mxu2 %vm1120_vm2, %v2329_v12 }
 0x4b3   : > { %8426 = vst [vmem:[#allocation45_spill] sm:$0xff] %v6432_v21  ;;  %v1730_v49 = vsub.f32 %v6280_v51, %v6432_v21  ;;  %v1709_v59 = vsub.f32 %v6214_v35, %v6434_v24  ;;  %v6442_v56 = vpop.xlane.xlu2 %1575  ;;  %v2325_v35 = vld [vmem:[#allocation2 + $0x110] sm:$0xff] }
 0x4b4   : > { %8427 = vst [vmem:[#allocation46_spill] sm:$0xff] %v6434_v24  ;;  %v1726_v58 = vsub.f32 %v6272_v45, %v6442_v56  ;;  %v2328_v45 = vld [vmem:[#allocation2 + $0x128] sm:$0xff]  ;;  %4533 = vmatpush.xpose.msk.msra.mxu1 %vm1120_vm2, %v2325_v35  ;;  %v2327_v35 = vld [vmem:[#allocation2 + $0x120] sm:$0xff] }
 0x4b5   : > { %8428 = vst [vmem:[#allocation47_spill] sm:$0xff] %v6442_v56  ;;  %v4858_v3 = vpop.eup %4857  ;;  %v1786_v5 = vmul.f32 1.442695, %v1730_v49  ;;  %v1744_v4 = vmul.f32 1.442695, %v1709_v59  ;;  %v2334_v49 = vld [vmem:[#allocation2 + $0x158] sm:$0xff] }
 0x4b6   : > { %v6446_v23 = vpop.eup %4859  ;;  %v1778_v40 = vmul.f32 1.442695, %v1726_v58  ;;  %4502 = vmatmul.msk.f32.gmra.mxu1 %vm1513_vm4, %v4858_v3  ;;  %v1840_v28 = vsel %vm1513_vm4, %v4858_v3, 0.0  ;;  %4542 = vmatpush.xpose.msk.msrb.mxu2 %vm1120_vm2, %v2328_v45  ;;  %v2333_v56 = vld [vmem:[#allocation2 + $0x150] sm:$0xff] }
 0x4b7   : > { %v6451_v51 = vpop.eup %4861  ;;  %4863 = vpow2.f32 %v1786_v5  ;;  %4507 = vmatmul.msk.f32.gmra.mxu2 %vm1513_vm4, %v6446_v23  ;;  %1841 = vadd.xlane.f32.xlu0 %v1840_v28 }
 0x4b8   : > { %4865 = vpow2.f32 %v1744_v4  ;;  %4511 = vmatmul.msk.f32.gmra.mxu3 %vm1513_vm4, %v6451_v51 }
 0x4b9   : > { %4867 = vpow2.f32 %v1778_v40  ;;  %4548 = vmatpush.xpose.msk.msrb.mxu3 %vm1120_vm2, %v2334_v49  ;;  %v2332_v49 = vld [vmem:[#allocation2 + $0x148] sm:$0xff] }
 0x4ba   : > { %v6457_v59 = vpop.xlane.xlu0 %1578  ;;  %v6459_v58 = vpop.xlane.xlu1 %1590  ;;  %4543 = vmatpush.xpose.msk.msrb.mxu2 %vm1120_vm2, %v2327_v35 }
 0x4bb   : > { %8429 = vst [vmem:[#allocation48_spill] sm:$0xff] %v6457_v59  ;;  %v1727_v3 = vsub.f32 %v6288_v6, %v6457_v59  ;;  %v1731_v5 = vsub.f32 %v6290_v10, %v6459_v58  ;;  %v6467_v4 = vpop.xlane.xlu2 %1563 }
 0x4bc   : > { %8430 = vst [vmem:[#allocation49_spill] sm:$0xff] %v6459_v58  ;;  %v1722_v12 = vsub.f32 %v6292_v11, %v6467_v4  ;;  %v2324_v11 = vld [vmem:[#allocation2 + $0x108] sm:$0xff] }
 0x4bd   : > { %v6472_v40 = vpop.eup %4863  ;;  %v1780_v28 = vmul.f32 1.442695, %v1727_v3  ;;  %v1788_v21 = vmul.f32 1.442695, %v1731_v5  ;;  %4549 = vmatpush.xpose.msk.msrb.mxu3 %vm1120_vm2, %v2333_v56  ;;  %v2338_v3 = vld [vmem:[#allocation2 + $0x178] sm:$0xff]  ;;  %4534 = vmatpush.xpose.msk.msra.mxu1 %vm1120_vm2, %v2324_v11 }
 0x4be   : > { %v4866_v45 = vpop.eup %4865  ;;  %v1770_v24 = vmul.f32 1.442695, %v1722_v12  ;;  %4556 = vmatpush.xpose.msk.msrb.mxu0 %vm1120_vm2, %v2338_v3 }
 0x4bf   : > { %v6475_v6 = vpop.eup %4867  ;;  %4869 = vpow2.f32 %v1780_v28  ;;  %4503 = vmatmul.msk.f32.gmra.mxu1 %vm1513_vm4, %v4866_v45  ;;  %v1843_v10 = vsel %vm1513_vm4, %v4866_v45, 0.0  ;;  %v2331_v45 = vld [vmem:[#allocation2 + $0x140] sm:$0xff] }
 0x4c0   : > { %4871 = vpow2.f32 %v1788_v21  ;;  %4520 = vmatmul.msk.f32.vlgmr.msra.gmra.mxu2 %vm1513_vm4, %v6475_v6  ;;  %4524 = vmatmul.msk.f32.vlgmr.msra.gmra.mxu3 %vm1513_vm4, %v6472_v40 }
 0x4c1   : > { %4873 = vpow2.f32 %v1770_v24  ;;  %1844 = vadd.xlane.f32.xlu1 %v1843_v10  ;;  %4550 = vmatpush.xpose.msk.msrb.mxu3 %vm1120_vm2, %v2332_v49  ;;  %v2337_v24 = vld [vmem:[#allocation2 + $0x170] sm:$0xff]  ;;  %v2323_v49 = vld [vmem:[#allocation2 + $0x100] sm:$0xff] }
 0x4c2   : > { %v6485_v5 = vpop.xlane.xlu1 %1581  ;;  %v6487_v12 = vpop.xlane.xlu0 %1599  ;;  %4557 = vmatpush.xpose.msk.msrb.mxu0 %vm1120_vm2, %v2337_v24  ;;  %4535 = vmatpush.xpose.msk.msra.mxu1 %vm1120_vm2, %v2323_v49  ;;  %v2335_v49 = vld [vmem:[#allocation2 + $0x160] sm:$0xff] }
 0x4c3   : > { %v1728_v21 = vsub.f32 %v6302_v46, %v6485_v5  ;;  %v1734_v56 = vsub.f32 %v6294_v41, %v6487_v12  ;;  %v6494_v28 = vpop.xlane.xlu2 %1593  ;;  %v1858_v41 = vsel %vm1513_vm4, %v6379_v22, 0.0 }
 0x4c4   : > { %8431 = vst [vmem:[#allocation50_spill] sm:$0xff] %v6494_v28  ;;  %v1732_v35 = vsub.f32 %v6304_v48, %v6494_v28 }
 0x4c5   : > { %v6499_v10 = vpop.eup %4869  ;;  %v1782_v11 = vmul.f32 1.442695, %v1728_v21  ;;  %v1794_v58 = vmul.f32 1.442695, %v1734_v56  ;;  %4551 = vmatpush.xpose.msk.msrb.mxu3 %vm1120_vm2, %v2331_v45  ;;  %v2336_v21 = vld [vmem:[#allocation2 + $0x168] sm:$0xff] }
 0x4c6   : > { %v6501_v3 = vpop.eup %4871  ;;  %v1790_v59 = vmul.f32 1.442695, %v1732_v35  ;;  %4558 = vmatpush.xpose.msk.msrb.mxu0 %vm1120_vm2, %v2336_v21  ;;  %v1849_v21 = vsel %vm1513_vm4, %v6397_v30, 0.0 }
 0x4c7   : > { %v4874_v46 = vpop.eup %4873  ;;  %4875 = vpow2.f32 %v1782_v11 }
 0x4c8   : > { %4877 = vpow2.f32 %v1794_v58  ;;  %4516 = vmatmul.msk.f32.vlgmr.msrb.gmra.mxu1 %vm1513_vm4, %v4874_v46  ;;  %4521 = vmatmul.msk.f32.gmra.mxu2 %vm1513_vm4, %v6499_v10  ;;  %v1882_v48 = vsel %vm1513_vm4, %v4874_v46, 0.0 }
 0x4c9   : > { %4879 = vpow2.f32 %v1790_v59  ;;  %4525 = vmatmul.msk.f32.gmra.mxu3 %vm1513_vm4, %v6501_v3  ;;  %1859 = vadd.xlane.f32.xlu1 %v1858_v41 }
 0x4ca   : > { %1883 = vadd.xlane.f32.xlu0 %v1882_v48  ;;  %v6513_v56 = vpop.xlane.xlu1 %1602  ;;  %v6515_v58 = vpop.xlane.xlu0 %1566  ;;  %4559 = vmatpush.xpose.msk.msrb.mxu0 %vm1120_vm2, %v2335_v49 }
 0x4cb   : > { %v1735_v24 = vsub.f32 %v6312_v47, %v6513_v56  ;;  %v6520_v22 = vpop.xlane.xlu2 %1584  ;;  %v1723_v35 = vsub.f32 %v6310_v63, %v6515_v58  ;;  %v2342_v63 = vld [vmem:[#allocation2 + $0x198] sm:$0xff] }
 0x4cc   : > { %8432 = vst [vmem:[#allocation51_spill] sm:$0xff] %v6520_v22  ;;  %v1729_v59 = vsub.f32 %v6316_v42, %v6520_v22  ;;  %v2346_v42 = vld [vmem:[#allocation2 + $0x1b8] sm:$0xff]  ;;  %4564 = vmatpush.xpose.msk.msrb.mxu1 %vm1120_vm2, %v2342_v63 }
 0x4cd   : > { %v6527_v45 = vpop.eup %4875  ;;  %v1796_v11 = vmul.f32 1.442695, %v1735_v24  ;;  %v1772_v46 = vmul.f32 1.442695, %v1723_v35  ;;  %4572 = vmatpush.xpose.msk.msra.mxu2 %vm1120_vm2, %v2346_v42  ;;  %v2344_v42 = vld [vmem:[#allocation2 + $0x1a8] sm:$0xff] }
 0x4ce   : > { %v4878_v41 = vpop.eup %4877  ;;  %v1784_v48 = vmul.f32 1.442695, %v1729_v59 }
 0x4cf   : > { %v6529_v28 = vpop.eup %4879  ;;  %4881 = vpow2.f32 %v1796_v11  ;;  %4528 = vmatmul.msk.f32.vlgmr.msra.gmra.mxu0 %vm1513_vm4, %v4878_v41  ;;  %v1918_v47 = vsel %vm1513_vm4, %v4878_v41, 0.0  ;;  %v2345_v41 = vld [vmem:[#allocation2 + $0x1b0] sm:$0xff] }
 0x4d0   : > { %4883 = vpow2.f32 %v1784_v48  ;;  %4522 = vmatmul.msk.f32.gmra.mxu2 %vm1513_vm4, %v6527_v45  ;;  %1919 = vadd.xlane.f32.xlu2 %v1918_v47 }
 0x4d1   : > { %4885 = vpow2.f32 %v1772_v46  ;;  %4526 = vmatmul.msk.f32.gmra.mxu3 %vm1513_vm4, %v6529_v28  ;;  %4573 = vmatpush.xpose.msk.msra.mxu2 %vm1120_vm2, %v2345_v41 }
 0x4d2   : > { %1850 = vadd.xlane.f32.xlu0 %v1849_v21  ;;  %v6540_v24 = vpop.xlane.xlu0 %1596  ;;  %v6542_v35 = vpop.xlane.xlu1 %1569 }
 0x4d3   : > { %v6545_v59 = vpop.xlane.xlu2 %1605  ;;  %v1733_v11 = vsub.f32 %v6328_v34, %v6540_v24  ;;  %v1724_v46 = vsub.f32 %v6324_v54, %v6542_v35  ;;  %v1897_v34 = vsel %vm1513_vm4, %v6499_v10, 0.0 }
 0x4d4   : > { %v1736_v30 = vsub.f32 %v6326_v62, %v6545_v59  ;;  %v2341_v62 = vld [vmem:[#allocation2 + $0x190] sm:$0xff] }
 0x4d5   : > { %v6554_v48 = vpop.eup %4881  ;;  %v1792_v49 = vmul.f32 1.442695, %v1733_v11  ;;  %v1774_v47 = vmul.f32 1.442695, %v1724_v46  ;;  %v2350_v11 = vld [vmem:[#allocation2 + $0x1d8] sm:$0xff]  ;;  %v1861_v46 = vsel %vm1513_vm4, %v6404_v33, 0.0  ;;  %4565 = vmatpush.xpose.msk.msrb.mxu1 %vm1120_vm2, %v2341_v62  ;;  %4574 = vmatpush.xpose.msk.msra.mxu2 %vm1120_vm2, %v2344_v42 }
 0x4d6   : > { %v6556_v21 = vpop.eup %4883  ;;  %v1798_v63 = vmul.f32 1.442695, %v1736_v30  ;;  %4580 = vmatpush.xpose.msk.msra.mxu3 %vm1120_vm2, %v2350_v11  ;;  %v1876_v62 = vsel %vm1513_vm4, %v6399_v14, 0.0  ;;  %v2340_v11 = vld [vmem:[#allocation2 + $0x188] sm:$0xff]  ;;  %v2353_v14 = vld [vmem:[#allocation2 + $0x1f0] sm:$0xff] }
 0x4d7   : > { %v4886_v22 = vpop.eup %4885  ;;  %4887 = vpow2.f32 %v1792_v49  ;;  %4529 = vmatmul.msk.f32.gmra.mxu0 %vm1513_vm4, %v6554_v48  ;;  %v2343_v49 = vld [vmem:[#allocation2 + $0x1a0] sm:$0xff] }
 0x4d8   : > { %4889 = vpow2.f32 %v1798_v63  ;;  %4517 = vmatmul.msk.f32.gmra.mxu1 %vm1513_vm4, %v4886_v22  ;;  %4523 = vmatmul.msk.f32.gmra.mxu2 %vm1513_vm4, %v6556_v21  ;;  %v1885_v54 = vsel %vm1513_vm4, %v4886_v22, 0.0 }
 0x4d9   : > { %4891 = vpow2.f32 %v1774_v47  ;;  %1898 = vadd.xlane.f32.xlu2 %v1897_v34  ;;  %1886 = vadd.xlane.f32.xlu1 %v1885_v54 }
 0x4da   : > { %1862 = vadd.xlane.f32.xlu0 %v1861_v46  ;;  %v6569_v30 = vpop.xlane.xlu1 %1608  ;;  %v6571_v41 = vpop.xlane.xlu0 %1572  ;;  %4575 = vmatpush.xpose.msk.msra.mxu2 %vm1120_vm2, %v2343_v49  ;;  %v2354_v46 = vld [vmem:[#allocation2 + $0x1f8] sm:$0xff]  ;;  %v1894_v49 = vsel %vm1513_vm4, %v6475_v6, 0.0  ;;  %v1906_v6 = vsel %vm1513_vm4, %v6472_v40, 0.0 }
 0x4db   : > { %8433 = vst [vmem:[#allocation52_spill] sm:$0xff] %v6569_v30  ;;  %v1737_v10 = vsub.f32 %v6338_v32, %v6569_v30  ;;  %v1725_v22 = vsub.f32 %v6336_v44, %v6571_v41  ;;  %v2349_v44 = vld [vmem:[#allocation2 + $0x1d0] sm:$0xff]  ;;  %4566 = vmatpush.xpose.msk.msrb.mxu1 %vm1120_vm2, %v2340_v11  ;;  %4588 = vmatpush.xpose.msk.msra.mxu0 %vm1120_vm2, %v2354_v46 }
 0x4dc   : > { %8434 = vst [vmem:[#allocation53_spill] sm:$0xff] %v6571_v41  ;;  %4581 = vmatpush.xpose.msk.msra.mxu3 %vm1120_vm2, %v2349_v44 }
 0x4dd   : > { %v6580_v47 = vpop.eup %4887  ;;  %v1800_v33 = vmul.f32 1.442695, %v1737_v10  ;;  %v1776_v63 = vmul.f32 1.442695, %v1725_v22  ;;  %v2348_v10 = vld [vmem:[#allocation2 + $0x1c8] sm:$0xff] }
 0x4de   : > { %v4890_v34 = vpop.eup %4889  ;;  %4527 = vmatmul.msk.f32.gmra.mxu3 %vm1513_vm4, %v6580_v47 }
 0x4df   : > { %v4892_v54 = vpop.eup %4891  ;;  %4893 = vpow2.f32 %v1800_v33  ;;  %4530 = vmatmul.msk.f32.gmra.mxu0 %vm1513_vm4, %v4890_v34  ;;  %v1924_v32 = vsel %vm1513_vm4, %v4890_v34, 0.0  ;;  %v2347_v33 = vld [vmem:[#allocation2 + $0x1c0] sm:$0xff]  ;;  %v2352_v34 = vld [vmem:[#allocation2 + $0x1e8] sm:$0xff] }
 0x4e0   : > { %4895 = vpow2.f32 %v1776_v63  ;;  %4518 = vmatmul.msk.f32.gmra.mxu1 %vm1513_vm4, %v4892_v54  ;;  %4544 = vmatmul.msk.f32.vlgmr.msrb.gmra.mxu2 %vm1120_vm2, %v6088_v61  ;;  %v1888_v42 = vsel %vm1513_vm4, %v4892_v54, 0.0  ;;  %v2339_v63 = vld [vmem:[#allocation2 + $0x180] sm:$0xff] }
 0x4e1   : > { %1925 = vadd.xlane.f32.xlu2 %v1924_v32  ;;  %1877 = vadd.xlane.f32.xlu1 %v1876_v62 }
 0x4e2   : > { %1889 = vadd.xlane.f32.xlu0 %v1888_v42  ;;  %4582 = vmatpush.xpose.msk.msra.mxu3 %vm1120_vm2, %v2348_v10 }
 0x4e3   : > { %4589 = vmatpush.xpose.msk.msra.mxu0 %vm1120_vm2, %v2353_v14  ;;  %4567 = vmatpush.xpose.msk.msrb.mxu1 %vm1120_vm2, %v2339_v63 }
 0x4e5   : > { %v6596_v22 = vpop.eup %4893 }
 0x4e6   : > { %v6598_v61 = vpop.eup %4895  ;;  %4552 = vmatmul.msk.f32.vlgmr.msrb.gmra.mxu3 %vm1120_vm2, %v6096_v1  ;;  %v1852_v1 = vsel %vm1513_vm4, %v6422_v53, 0.0  ;;  %v1909_v53 = vsel %vm1513_vm4, %v6501_v3, 0.0 }
 0x4e7   : > { %4531 = vmatmul.msk.f32.gmra.mxu0 %vm1513_vm4, %v6596_v22  ;;  %4583 = vmatpush.xpose.msk.msra.mxu3 %vm1120_vm2, %v2347_v33 }
 0x4e8   : > { %4519 = vmatmul.msk.f32.gmra.mxu1 %vm1513_vm4, %v6598_v61  ;;  %4545 = vmatmul.msk.f32.gmra.mxu2 %vm1120_vm2, %v6098_v2  ;;  %v2351_v2 = vld [vmem:[#allocation2 + $0x1e0] sm:$0xff] }
 0x4e9   : > { %1895 = vadd.xlane.f32.xlu1 %v1894_v49  ;;  %4590 = vmatpush.xpose.msk.msra.mxu0 %vm1120_vm2, %v2352_v34 }
 0x4ea   : > { %1853 = vadd.xlane.f32.xlu0 %v1852_v1 }
 0x4ed   : > { %4591 = vmatpush.xpose.msk.msra.mxu0 %vm1120_vm2, %v2351_v2 }
 0x4ee   : > { %4553 = vmatmul.msk.f32.gmra.mxu3 %vm1120_vm2, %v6114_v9  ;;  %v8442_v9 = vld [vmem:[#allocation32_spill] sm:$0xff] }
 0x4ef   : > { %4560 = vmatmul.msk.f32.vlgmr.msrb.gmra.mxu0 %vm1120_vm2, %v6112_v8  ;;  %v8440_v8 = vld [vmem:[#allocation26_spill] sm:$0xff] }
 0x4f0   : > { %4536 = vmatmul.msk.f32.vlgmr.msra.gmra.mxu1 %vm1120_vm2, %v6016_v36  ;;  %4546 = vmatmul.msk.f32.gmra.mxu2 %vm1120_vm2, %v6073_v50  ;;  %v1900_v36 = vsel %vm1513_vm4, %v6527_v45, 0.0  ;;  %v1921_v50 = vsel %vm1513_vm4, %v6554_v48, 0.0 }
 0x4f1   : > { %1910 = vadd.xlane.f32.xlu1 %v1909_v53 }
 0x4f2   : > { %1907 = vadd.xlane.f32.xlu0 %v1906_v6 }
 0x4f6   : > { %4554 = vmatmul.msk.f32.gmra.mxu3 %vm1120_vm2, %v6080_v55  ;;  %v8436_v55 = vld [vmem:[#allocation25_spill] sm:$0xff] }
 0x4f7   : > { %4561 = vmatmul.msk.f32.gmra.mxu0 %vm1120_vm2, %v6132_v15  ;;  %v8443_v15 = vld [vmem:[#allocation29_spill] sm:$0xff] }
 0x4f8   : > { %4537 = vmatmul.msk.f32.gmra.mxu1 %vm1120_vm2, %v6026_v38  ;;  %4547 = vmatmul.msk.f32.gmra.mxu2 %vm1120_vm2, %v6134_v16  ;;  %v1912_v38 = vsel %vm1513_vm4, %v6529_v28, 0.0  ;;  %v8444_v16 = vld [vmem:[#allocation33_spill] sm:$0xff] }
 0x4f9   : > { %1901 = vadd.xlane.f32.xlu1 %v1900_v36 }
 0x4fa   : > { %1922 = vadd.xlane.f32.xlu0 %v1921_v50 }
 0x4fe   : > { %4555 = vmatmul.msk.f32.gmra.mxu3 %vm1120_vm2, %v6085_v60  ;;  %v8437_v60 = vld [vmem:[#allocation24_spill] sm:$0xff] }
 0x4ff   : > { %4562 = vmatmul.msk.f32.gmra.mxu0 %vm1120_vm2, %v6142_v17  ;;  %v6684_v17 = vpop.f32.mrf.mxu1 }
 0x500   : > { %4538 = vmatmul.msk.f32.gmra.mxu1 %vm1120_vm2, %v6021_v37  ;;  %4576 = vmatmul.msk.f32.vlgmr.msra.gmra.mxu2 %vm1120_vm2, %v6144_v18  ;;  %v8435_v37 = vld [vmem:[#allocation23_spill] sm:$0xff] }
 0x501   : > { %8445 = vst [vmem:[#allocation23_spill] sm:$0xff] %v6684_v17  ;;  %v8446_v18 = vld [vmem:[#allocation31_spill] sm:$0xff] }
 0x502   : > { %1913 = vadd.xlane.f32.xlu0 %v1912_v38 }
 0x506   : > { %4584 = vmatmul.msk.f32.vlgmr.msra.gmra.mxu3 %vm1120_vm2, %v6093_v0  ;;  %v8438_v0 = vld [vmem:[#allocation28_spill] sm:$0xff] }
 0x507   : > { %4563 = vmatmul.msk.f32.gmra.mxu0 %vm1120_vm2, %v6152_v19  ;;  %v6688_v19 = vpop.f32.mrf.mxu1 }
 0x508   : > { %4539 = vmatmul.msk.f32.gmra.mxu1 %vm1120_vm2, %v6032_v39  ;;  %4577 = vmatmul.msk.f32.gmra.mxu2 %vm1120_vm2, %v6154_v20  ;;  %v8439_v39 = vld [vmem:[#allocation27_spill] sm:$0xff]  ;;  %8447 = vst [vmem:[#allocation25_spill] sm:$0xff] %v6688_v19 }
 0x50e   : > { %4585 = vmatmul.msk.f32.gmra.mxu3 %vm1120_vm2, %v6109_v7  ;;  %v8441_v7 = vld [vmem:[#allocation30_spill] sm:$0xff]  ;;  %v6696_v28 = vpop.f32.mrf.mxu2 }
 0x50f   : > { %4592 = vmatmul.msk.f32.vlgmr.msra.gmra.mxu0 %vm1120_vm2, %v6174_v25 }
 0x510   : > { %4568 = vmatmul.msk.f32.vlgmr.msrb.gmra.mxu1 %vm1120_vm2, %v8435_v37  ;;  %4578 = vmatmul.msk.f32.gmra.mxu2 %vm1120_vm2, %v8436_v55 }
 0x513   : > { %v6690_v20 = vpop.f32.mrf.mxu0 }
 0x516   : > { %4586 = vmatmul.msk.f32.gmra.mxu3 %vm1120_vm2, %v8437_v60 }
 0x517   : > { %4593 = vmatmul.msk.f32.gmra.mxu0 %vm1120_vm2, %v8438_v0 }
 0x518   : > { %4569 = vmatmul.msk.f32.gmra.mxu1 %vm1120_vm2, %v8439_v39  ;;  %4579 = vmatmul.msk.f32.gmra.mxu2 %vm1120_vm2, %v8440_v8 }
 0x51b   : > { %v6694_v40 = vpop.f32.mrf.mxu0 }
 0x51e   : > { %4587 = vmatmul.msk.f32.gmra.mxu3 %vm1120_vm2, %v8441_v7 }
 0x51f   : > { %4594 = vmatmul.msk.f32.gmra.mxu0 %vm1120_vm2, %v8442_v9 }
 0x520   : > { %4570 = vmatmul.msk.f32.gmra.mxu1 %vm1120_vm2, %v8443_v15 }
 0x522   : > { %v6700_v45 = vpop.f32.mrf.mxu3 }
 0x523   : > { %8450 = vst [vmem:[#allocation27_spill] sm:$0xff] %v6700_v45 }
 0x524   : > { %v6702_v48 = vpop.f32.mrf.mxu0 }
 0x525   : > { %8451 = vst [vmem:[#allocation26_spill] sm:$0xff] %v6702_v48 }
 0x527   : > { %4595 = vmatmul.msk.f32.gmra.mxu0 %vm1120_vm2, %v8444_v16 }
 0x528   : > { %4571 = vmatmul.msk.f32.gmra.mxu1 %vm1120_vm2, %v8446_v18 }
 0x529   : > { %v6704_v54 = vpop.f32.mrf.mxu2 }
 0x52a   : > { %8452 = vst [vmem:[#allocation30_spill] sm:$0xff] %v6704_v54 }
 0x52b   : > { %v6708_v44 = vpop.f32.mrf.mxu3 }
 0x52c   : > { %8453 = vst [vmem:[#allocation32_spill] sm:$0xff] %v6708_v44 }
 0x52d   : > { %v6710_v62 = vpop.f32.mrf.mxu0 }
 0x52e   : > { %8454 = vst [vmem:[#allocation29_spill] sm:$0xff] %v6710_v62 }
 0x531   : > { %v6712_v42 = vpop.f32.mrf.mxu2 }
 0x532   : > { %8455 = vst [vmem:[#allocation33_spill] sm:$0xff] %v6712_v42 }
 0x533   : > { %v6692_v25 = vpop.f32.mrf.mxu1  ;;  %v6718_v10 = vpop.f32.mrf.mxu3 }
 0x534   : > { %8448 = vst [vmem:[#allocation24_spill] sm:$0xff] %v6692_v25 }
 0x535   : > { %8458 = vst [vmem:[#allocation55_spill] sm:$0xff] %v6718_v10 }
 0x53a   : > { %v6720_v14 = vpop.f32.mrf.mxu2 }
 0x53b   : > { %8459 = vst [vmem:[#allocation56_spill] sm:$0xff] %v6720_v14  ;;  %v6726_v63 = vpop.f32.mrf.mxu3 }
 0x53c   : > { %v6698_v3 = vpop.f32.mrf.mxu1  ;;  %8462 = vst [vmem:[#allocation59_spill] sm:$0xff] %v6726_v63 }
 0x53d   : > { %8449 = vst [vmem:[#allocation28_spill] sm:$0xff] %v6698_v3 }
 0x543   : > { %v6730_v34 = vpop.f32.mrf.mxu2  ;;  %v6738_v36 = vpop.f32.mrf.mxu3 }
 0x544   : > { %8464 = vst [vmem:[#allocation61_spill] sm:$0xff] %v6730_v34 }
 0x545   : > { %v6706_v32 = vpop.f32.mrf.mxu1  ;;  %8466 = vst [vmem:[#allocation63_spill] sm:$0xff] %v6738_v36 }
 0x54b   : > { %v6740_v50 = vpop.f32.mrf.mxu2 }
 0x54c   : > { %v6716_v46 = vpop.f32.mrf.mxu0  ;;  %8467 = vst [vmem:[#allocation64_spill] sm:$0xff] %v6740_v50  ;;  %v6748_v60 = vpop.f32.mrf.mxu3 }
 0x54d   : > { %8457 = vst [vmem:[#allocation54_spill] sm:$0xff] %v6716_v46 }
 0x54e   : > { %8469 = vst [vmem:[#allocation66_spill] sm:$0xff] %v6748_v60 }
 0x553   : > { %v6750_v0 = vpop.f32.mrf.mxu2 }
 0x554   : > { %v6724_v33 = vpop.f32.mrf.mxu0  ;;  %8470 = vst [vmem:[#allocation67_spill] sm:$0xff] %v6750_v0  ;;  %v6758_v9 = vpop.f32.mrf.mxu3 }
 0x555   : > { %v6714_v11 = vpop.f32.mrf.mxu1  ;;  %8461 = vst [vmem:[#allocation58_spill] sm:$0xff] %v6724_v33 }
 0x556   : > { %8456 = vst [vmem:[#allocation31_spill] sm:$0xff] %v6714_v11  ;;  %v1620_v11 = vsub.f32 -inf, %v6387_v31 }
 0x557   : > { %8471 = vst [vmem:[#allocation68_spill] sm:$0xff] %v6758_v9  ;;  %v6788_v9 = vpop.xlane.xlu1 %1835 }
 0x558   : > { %8474 = vst [vmem:[#allocation71_spill] sm:$0xff] %v6788_v9  ;;  %v6806_v9 = vpop.xlane.xlu2 %1838 }
 0x55b   : > { %v6760_v15 = vpop.f32.mrf.mxu2 }
 0x55c   : > { %v6732_v2 = vpop.f32.mrf.mxu0  ;;  %8472 = vst [vmem:[#allocation69_spill] sm:$0xff] %v6760_v15 }
 0x55d   : > { %v6722_v49 = vpop.f32.mrf.mxu1  ;;  %8465 = vst [vmem:[#allocation62_spill] sm:$0xff] %v6732_v2 }
 0x55e   : > { %8460 = vst [vmem:[#allocation57_spill] sm:$0xff] %v6722_v49 }
 0x55f   : > { %v6808_v50 = vpop.xlane.xlu1 %1844 }
 0x563   : > { %v6778_v17 = vpop.f32.mrf.mxu2 }
 0x564   : > { %v6746_v55 = vpop.f32.mrf.mxu0 }
 0x565   : > { %v6728_v1 = vpop.f32.mrf.mxu1  ;;  %8468 = vst [vmem:[#allocation65_spill] sm:$0xff] %v6746_v55 }
 0x566   : > { %8463 = vst [vmem:[#allocation60_spill] sm:$0xff] %v6728_v1 }
 0x567   : > { %v6826_v30 = vpop.xlane.xlu1 %1859 }
 0x568   : > { %8480 = vst [vmem:[#allocation77_spill] sm:$0xff] %v6826_v30 }
 0x56b   : > { %v6790_v55 = vpop.f32.mrf.mxu2 }
 0x56c   : > { %v6756_v7 = vpop.f32.mrf.mxu0  ;;  %8475 = vst [vmem:[#allocation72_spill] sm:$0xff] %v6790_v55  ;;  %v2731_v14 = vsel %vm1513_vm4, %v6790_v55, -inf }
 0x56d   : > { %v6734_v53 = vpop.f32.mrf.mxu1  ;;  %v2752_v18 = vsel %vm1513_vm4, %v6756_v7, -inf }
 0x56e   : > { %v2716_v6 = vsel %vm1513_vm4, %v6734_v53, -inf }
 0x56f   : > { %2717 = vmax.xlane.f32.xlu1 %v2716_v6  ;;  %v6842_v42 = vpop.xlane.xlu1 %1886 }
 0x570   : > { %8484 = vst [vmem:[#allocation81_spill] sm:$0xff] %v6842_v42  ;;  %v2362_v42 = vld [vmem:[#allocation3 + $0x130] sm:$0xff] }
 0x573   : > { %v6810_v2 = vpop.f32.mrf.mxu2 }
 0x574   : > { %v6770_v3 = vpop.f32.mrf.mxu0  ;;  %8477 = vst [vmem:[#allocation74_spill] sm:$0xff] %v6810_v2  ;;  %v2734_v10 = vsel %vm1513_vm4, %v6810_v2, -inf }
 0x575   : > { %v6742_v38 = vpop.f32.mrf.mxu1  ;;  %v2755_v25 = vsel %vm1513_vm4, %v6770_v3, -inf }
 0x576   : > { %v2719_v37 = vsel %vm1513_vm4, %v6742_v38, -inf }
 0x577   : > { %2720 = vmax.xlane.f32.xlu2 %v2719_v37  ;;  %v6768_v37 = vpop.f32.mrf.mxu3  ;;  %v6862_v41 = vpop.xlane.xlu1 %1877 }
 0x578   : > { %8473 = vst [vmem:[#allocation70_spill] sm:$0xff] %v6768_v37 }
 0x579   : > { %8490 = vst [vmem:[#allocation87_spill] sm:$0xff] %v6862_v41 }
 0x57b   : > { %v6830_v63 = vpop.f32.mrf.mxu2 }
 0x57c   : > { %v6792_v60 = vpop.f32.mrf.mxu0  ;;  %8482 = vst [vmem:[#allocation79_spill] sm:$0xff] %v6830_v63 }
 0x57d   : > { %v6752_v39 = vpop.f32.mrf.mxu1  ;;  %v2758_v0 = vsel %vm1513_vm4, %v6792_v60, -inf }
 0x57e   : > { %v2722_v8 = vsel %vm1513_vm4, %v6752_v39, -inf }
 0x57f   : > { %2723 = vmax.xlane.f32.xlu0 %v2722_v8  ;;  %v6780_v15 = vpop.f32.mrf.mxu3  ;;  %v6880_v2 = vpop.xlane.xlu1 %1895 }
 0x580   : > { %v2740_v33 = vsel %vm1513_vm4, %v6780_v15, -inf  ;;  %8496 = vst [vmem:[#allocation93_spill] sm:$0xff] %v6880_v2  ;;  %v2358_v2 = vld [vmem:[#allocation3 + $0x110] sm:$0xff] }
 0x584   : > { %v6814_v34 = vpop.f32.mrf.mxu0 }
 0x585   : > { %v6762_v16 = vpop.f32.mrf.mxu1  ;;  %8478 = vst [vmem:[#allocation75_spill] sm:$0xff] %v6814_v34  ;;  %v2761_v1 = vsel %vm1513_vm4, %v6814_v34, -inf }
 0x586   : > { %v2725_v6 = vsel %vm1513_vm4, %v6762_v16, -inf }
 0x587   : > { %2753 = vmax.xlane.f32.xlu0 %v2752_v18  ;;  %2726 = vmax.xlane.f32.xlu1 %v2725_v6  ;;  %v2728_v6 = vsel %vm1513_vm4, %v6778_v17, -inf }
 0x58d   : > { %v6772_v8 = vpop.f32.mrf.mxu1 }
 0x58e   : > { %v2764_v19 = vsel %vm1513_vm4, %v6772_v8, -inf }
 0x58f   : > { %2756 = vmax.xlane.f32.xlu1 %v2755_v25  ;;  %2765 = vmax.xlane.f32.xlu2 %v2764_v19  ;;  %v6794_v25 = vpop.xlane.xlu0 %1841 }
 0x595   : > { %v6782_v18 = vpop.f32.mrf.mxu1 }
 0x596   : > { %v2767_v37 = vsel %vm1513_vm4, %v6782_v18, -inf }
 0x597   : > { %2729 = vmax.xlane.f32.xlu2 %v2728_v6  ;;  %2768 = vmax.xlane.f32.xlu0 %v2767_v37  ;;  %v6804_v37 = vpop.f32.mrf.mxu3  ;;  %v6812_v36 = vpop.xlane.xlu0 %1883 }
 0x598   : > { %8476 = vst [vmem:[#allocation73_spill] sm:$0xff] %v6804_v37 }
 0x59d   : > { %v6796_v19 = vpop.f32.mrf.mxu1 }
 0x59e   : > { %v2770_v6 = vsel %vm1513_vm4, %v6796_v19, -inf }
 0x59f   : > { %2759 = vmax.xlane.f32.xlu2 %v2758_v0  ;;  %2741 = vmax.xlane.f32.xlu0 %v2740_v33  ;;  %v2743_v33 = vsel %vm1513_vm4, %v6804_v37, -inf  ;;  %v6822_v0 = vpop.xlane.xlu2 %1871  ;;  %v6828_v46 = vpop.xlane.xlu0 %1850  ;;  %v8512_v37 = vld [vmem:[#allocation37_spill] sm:$0xff] }
 0x5a0   : > { %2771 = vmax.xlane.f32.xlu1 %v2770_v6  ;;  %v6824_v6 = vpop.f32.mrf.mxu3  ;;  %8481 = vst [vmem:[#allocation78_spill] sm:$0xff] %v6828_v46  ;;  %v1618_v41 = vsub.f32 -inf, %v8512_v37 }
 0x5a1   : > { %8479 = vst [vmem:[#allocation76_spill] sm:$0xff] %v6824_v6 }
 0x5a5   : > { %v6846_v46 = vpop.f32.mrf.mxu1 }
 0x5a6   : > { %8486 = vst [vmem:[#allocation83_spill] sm:$0xff] %v6846_v46 }
 0x5a7   : > { %2732 = vmax.xlane.f32.xlu2 %v2731_v14  ;;  %2735 = vmax.xlane.f32.xlu0 %v2734_v10  ;;  %v1879_v10 = vsel %vm1513_vm4, %v6426_v43, 0.0  ;;  %v6836_v14 = vpop.f32.mrf.mxu0  ;;  %v6840_v62 = vpop.xlane.xlu2 %1847  ;;  %v2773_v43 = vsel %vm1513_vm4, %v6846_v46, -inf }
 0x5a8   : > { %2744 = vmax.xlane.f32.xlu1 %v2743_v33  ;;  %8483 = vst [vmem:[#allocation80_spill] sm:$0xff] %v6836_v14  ;;  %v1867_v33 = vsel %vm1513_vm4, %v6451_v51, 0.0  ;;  %v6844_v44 = vpop.f32.mrf.mxu3  ;;  %v6854_v51 = vpop.xlane.xlu0 %1862 }
 0x5a9   : > { %8485 = vst [vmem:[#allocation82_spill] sm:$0xff] %v6844_v44  ;;  %v2749_v54 = vsel %vm1513_vm4, %v6844_v44, -inf }
 0x5aa   : > { %8487 = vst [vmem:[#allocation84_spill] sm:$0xff] %v6854_v51 }
 0x5af   : > { %2762 = vmax.xlane.f32.xlu2 %v2761_v1  ;;  %1880 = vadd.xlane.f32.xlu0 %v1879_v10  ;;  %v2800_v1 = vsel %vm1513_vm4, %v6836_v14, -inf  ;;  %v6856_v10 = vpop.f32.mrf.mxu2  ;;  %v6860_v34 = vpop.xlane.xlu2 %1874  ;;  %v2746_v14 = vsel %vm1513_vm4, %v6824_v6, -inf }
 0x5b0   : > { %1868 = vadd.xlane.f32.xlu1 %v1867_v33  ;;  %8488 = vst [vmem:[#allocation85_spill] sm:$0xff] %v6856_v10  ;;  %v6858_v33 = vpop.f32.mrf.mxu0  ;;  %v6864_v44 = vpop.f32.mrf.mxu3 }
 0x5b1   : > { %8489 = vst [vmem:[#allocation86_spill] sm:$0xff] %v6858_v33 }
 0x5b2   : > { %8491 = vst [vmem:[#allocation88_spill] sm:$0xff] %v6864_v44 }
 0x5b7   : > { %2750 = vmax.xlane.f32.xlu0 %v2749_v54  ;;  %2774 = vmax.xlane.f32.xlu2 %v2773_v43  ;;  %v2776_v54 = vsel %vm1513_vm4, %v6856_v10, -inf  ;;  %v2737_v43 = vsel %vm1513_vm4, %v6830_v63, -inf  ;;  %v6874_v46 = vpop.f32.mrf.mxu2  ;;  %v6878_v30 = vpop.xlane.xlu2 %1865  ;;  %v2359_v63 = vld [vmem:[#allocation3 + $0x118] sm:$0xff] }
 0x5b8   : > { %2801 = vmax.xlane.f32.xlu1 %v2800_v1  ;;  %v6872_v1 = vpop.xlane.xlu0 %1889  ;;  %8493 = vst [vmem:[#allocation90_spill] sm:$0xff] %v6874_v46  ;;  %v6876_v51 = vpop.f32.mrf.mxu0  ;;  %3220 = vmatpush.msra.mxu1 %v2359_v63  ;;  %v2357_v63 = vld [vmem:[#allocation3 + $0x108] sm:$0xff] }
 0x5b9   : > { %8492 = vst [vmem:[#allocation89_spill] sm:$0xff] %v6872_v1  ;;  %v2806_v10 = vsel %vm1513_vm4, %v6876_v51, -inf }
 0x5ba   : > { %8494 = vst [vmem:[#allocation91_spill] sm:$0xff] %v6876_v51  ;;  %3221 = vmatpush.msra.mxu1 %v2358_v2  ;;  %v2356_v51 = vld [vmem:[#allocation3 + $0x100] sm:$0xff] }
 0x5bb   : > { %8495 = vst [vmem:[#allocation92_spill] sm:$0xff] %v6878_v30 }
 0x5bc   : > { %3222 = vmatpush.msra.mxu1 %v2357_v63 }
 0x5be   : > { %3223 = vmatpush.msra.mxu1 %v2356_v51  ;;  %v8507_v51 = vld [vmem:[#allocation34_spill] sm:$0xff] }
 0x5bf   : > { %2777 = vmax.xlane.f32.xlu0 %v2776_v54  ;;  %2747 = vmax.xlane.f32.xlu2 %v2746_v14  ;;  %v1855_v54 = vsel %vm1513_vm4, %v6446_v23, 0.0  ;;  %v2788_v14 = vsel %vm1513_vm4, %v6864_v44, -inf  ;;  %v6892_v30 = vpop.f32.mrf.mxu2  ;;  %v6894_v49 = vpop.xlane.xlu2 %1919  ;;  %v2779_v23 = vsel %vm1513_vm4, %v6874_v46, -inf }
 0x5c0   : > { %2738 = vmax.xlane.f32.xlu1 %v2737_v43  ;;  %v6888_v43 = vpop.f32.mrf.mxu3  ;;  %v6890_v6 = vpop.xlane.xlu0 %1853  ;;  %8499 = vst [vmem:[#allocation96_spill] sm:$0xff] %v6892_v30 }
 0x5c1   : > { %8497 = vst [vmem:[#allocation94_spill] sm:$0xff] %v6888_v43 }
 0x5c2   : > { %8498 = vst [vmem:[#allocation95_spill] sm:$0xff] %v6890_v6 }
 0x5c3   : > { %8500 = vst [vmem:[#allocation97_spill] sm:$0xff] %v6894_v49  ;;  %v6906_v49 = vpop.f32.mrf.mxu0 }
 0x5c4   : > { %8503 = vst [vmem:[#allocation100_spill] sm:$0xff] %v6906_v49  ;;  %v2809_v2 = vsel %vm1513_vm4, %v6906_v49, -inf  ;;  %v1614_v49 = vsub.f32 -inf, %v6348_v57 }
 0x5c7   : > { %2807 = vmax.xlane.f32.xlu0 %v2806_v10  ;;  %1856 = vadd.xlane.f32.xlu2 %v1855_v54  ;;  %v2803_v10 = vsel %vm1513_vm4, %v6858_v33, -inf  ;;  %v2782_v54 = vsel %vm1513_vm4, %v6892_v30, -inf  ;;  %v6939_v45 = vpop.f32.mrf.mxu2 }
 0x5c8   : > { %2789 = vmax.xlane.f32.xlu1 %v2788_v14  ;;  %v6902_v14 = vpop.xlane.xlu1 %1910  ;;  %v6904_v44 = vpop.f32.mrf.mxu3  ;;  %8514 = vst [vmem:[#allocation37_spill] sm:$0xff] %v6939_v45 }
 0x5c9   : > { %8501 = vst [vmem:[#allocation98_spill] sm:$0xff] %v6902_v14  ;;  %v6908_v46 = vpop.xlane.xlu0 %1907  ;;  %v1610_v14 = vsub.f32 -inf, %v8507_v51 }
 0x5ca   : > { %8502 = vst [vmem:[#allocation99_spill] sm:$0xff] %v6904_v44 }
 0x5cb   : > { %8504 = vst [vmem:[#allocation101_spill] sm:$0xff] %v6908_v46  ;;  %v8509_v46 = vld [vmem:[#allocation35_spill] sm:$0xff] }
 0x5cc   : > { %v1611_v33 = vsub.f32 -inf, %v8509_v46 }
 0x5ce   : > { %v1644_v1 = vmul.f32 1.442695, %v1611_v33  ;;  %v1658_v33 = vmul.f32 1.442695, %v1618_v41  ;;  %v1625_v41 = vsub.f32 -inf, %v6393_v29  ;;  %v8522_v29 = vld [vmem:[#allocation46_spill] sm:$0xff] }
 0x5cf   : > { %2780 = vmax.xlane.f32.xlu0 %v2779_v23  ;;  %2804 = vmax.xlane.f32.xlu2 %v2803_v10  ;;  %v2791_v23 = vsel %vm1513_vm4, %v6888_v43, -inf  ;;  %v1927_v10 = vsel %vm1513_vm4, %v6596_v22, 0.0  ;;  %v1891_v22 = vsel %vm1513_vm4, %v6598_v61, 0.0 }
 0x5d0   : > { %2783 = vmax.xlane.f32.xlu1 %v2782_v54  ;;  %v6916_v54 = vpop.xlane.xlu2 %1898  ;;  %v6918_v63 = vpop.xlane.xlu1 %1901 }
 0x5d1   : > { %8505 = vst [vmem:[#allocation102_spill] sm:$0xff] %v6916_v54  ;;  %v6921_v30 = vpop.f32.mrf.mxu3  ;;  %v8510_v54 = vld [vmem:[#allocation36_spill] sm:$0xff]  ;;  %v6933_v6 = vpop.xlane.xlu0 %1922 }
 0x5d2   : > { %8506 = vst [vmem:[#allocation103_spill] sm:$0xff] %v6918_v63  ;;  %v1642_v63 = vmul.f32 1.442695, %v1610_v14  ;;  %v1623_v43 = vsub.f32 -inf, %v8510_v54  ;;  %v2371_v14 = vld [vmem:[#allocation3 + $0x178] sm:$0xff] }
 0x5d3   : > { %8508 = vst [vmem:[#allocation104_spill] sm:$0xff] %v6921_v30  ;;  %3343 = vmatpush.msrb.mxu0 %v2371_v14  ;;  %v2369_v14 = vld [vmem:[#allocation3 + $0x168] sm:$0xff] }
 0x5d4   : > { %8511 = vst [vmem:[#allocation35_spill] sm:$0xff] %v6933_v6  ;;  %4897 = vpow2.f32 %v1642_v63  ;;  %v8516_v6 = vld [vmem:[#allocation38_spill] sm:$0xff] }
 0x5d5   : > { %4899 = vpow2.f32 %v1644_v1 }
 0x5d7   : > { %2810 = vmax.xlane.f32.xlu0 %v2809_v2  ;;  %2792 = vmax.xlane.f32.xlu2 %v2791_v23  ;;  %v2794_v2 = vsel %vm1513_vm4, %v6904_v44, -inf  ;;  %v1622_v23 = vsub.f32 -inf, %v6352_v26  ;;  %v1650_v44 = vmul.f32 1.442695, %v1614_v49  ;;  %v1619_v49 = vsub.f32 -inf, %v6375_v27 }
 0x5d8   : > { %1928 = vadd.xlane.f32.xlu1 %v1927_v10  ;;  %v2797_v10 = vsel %vm1513_vm4, %v6921_v30, -inf  ;;  %v6936_v55 = vpop.xlane.xlu2 %1925  ;;  %v1668_v30 = vmul.f32 1.442695, %v1623_v43  ;;  %v2785_v43 = vsel %vm1513_vm4, %v6939_v45, -inf  ;;  %v1662_v45 = vmul.f32 1.442695, %v1620_v11 }
 0x5d9   : > { %8513 = vst [vmem:[#allocation36_spill] sm:$0xff] %v6936_v55  ;;  %v1666_v48 = vmul.f32 1.442695, %v1622_v23  ;;  %v2370_v55 = vld [vmem:[#allocation3 + $0x170] sm:$0xff]  ;;  %4901 = vpow2.f32 %v1650_v44  ;;  %v8517_v44 = vld [vmem:[#allocation40_spill] sm:$0xff] }
 0x5da   : > { %3344 = vmatpush.msrb.mxu0 %v2370_v55  ;;  %v6955_v31 = vpop.eup %4897  ;;  %v6958_v55 = vpop.xlane.xlu0 %1913 }
 0x5db   : > { %4903 = vpow2.f32 %v1666_v48  ;;  %8518 = vst [vmem:[#allocation106_spill] sm:$0xff] %v6955_v31  ;;  %v1612_v48 = vsub.f32 -inf, %v6410_v13 }
 0x5dc   : > { %4905 = vpow2.f32 %v1668_v30  ;;  %3345 = vmatpush.msrb.mxu0 %v2369_v14  ;;  %8519 = vst [vmem:[#allocation107_spill] sm:$0xff] %v6958_v55  ;;  %v1672_v30 = vmul.f32 1.442695, %v1625_v41  ;;  %v8521_v55 = vld [vmem:[#allocation44_spill] sm:$0xff]  ;;  %v2374_v41 = vld [vmem:[#allocation3 + $0x190] sm:$0xff] }
 0x5dd   : > { %4907 = vpow2.f32 %v1658_v33 }
 0x5df   : > { %2795 = vmax.xlane.f32.xlu0 %v2794_v2  ;;  %1892 = vadd.xlane.f32.xlu2 %v1891_v22  ;;  %v1624_v2 = vsub.f32 -inf, %v6369_v52 }
 0x5e0   : > { %2798 = vmax.xlane.f32.xlu1 %v2797_v10  ;;  %v1615_v10 = vsub.f32 -inf, %v8516_v6 }
 0x5e1   : > { %v1670_v63 = vmul.f32 1.442695, %v1624_v2 }
 0x5e2   : > { %v2718_v61 = vpop.xlane.xlu1 %2717 }
 0x5e3   : > { %v6942_v22 = vmax.f32 %v8507_v51, %v2718_v61  ;;  %v1903_v61 = vsel %vm1513_vm4, %v6556_v21, 0.0  ;;  %v1616_v51 = vsub.f32 -inf, %v8517_v44  ;;  %v2368_v21 = vld [vmem:[#allocation3 + $0x160] sm:$0xff] }
 0x5e4   : > { %3346 = vmatpush.msrb.mxu0 %v2368_v21 }
 0x5e5   : > { %8515 = vst [vmem:[#allocation105_spill] sm:$0xff] %v6942_v22  ;;  %v2940_v23 = vsub.f32 %v6734_v53, %v6942_v22  ;;  %v1652_v53 = vmul.f32 1.442695, %v1615_v10  ;;  %v1660_v22 = vmul.f32 1.442695, %v1619_v49  ;;  %v8520_v49 = vld [vmem:[#allocation43_spill] sm:$0xff] }
 0x5e6   : > { %v1654_v33 = vmul.f32 1.442695, %v1616_v51  ;;  %v1617_v14 = vsub.f32 -inf, %v8520_v49  ;;  %v1915_v51 = vsel %vm1513_vm4, %v6580_v47, 0.0 }
 0x5e7   : > { %v2972_v1 = vmul.f32 1.442695, %v2940_v23  ;;  %1904 = vadd.xlane.f32.xlu0 %v1903_v61  ;;  %2786 = vmax.xlane.f32.xlu2 %v2785_v43  ;;  %v4900_v23 = vpop.eup %4899  ;;  %v2375_v61 = vld [vmem:[#allocation3 + $0x198] sm:$0xff] }
 0x5e8   : > { %v6961_v43 = vpop.eup %4901  ;;  %3384 = vmatpush.msrb.mxu1 %v2375_v61  ;;  %v1656_v27 = vmul.f32 1.442695, %v1617_v14 }
 0x5e9   : > { %4909 = vpow2.f32 %v2972_v1  ;;  %v6964_v11 = vpop.eup %4903  ;;  %v1621_v1 = vsub.f32 -inf, %v8521_v55 }
 0x5ea   : > { %v2721_v2 = vpop.xlane.xlu2 %2720  ;;  %4911 = vpow2.f32 %v1670_v63  ;;  %v6969_v31 = vpop.eup %4905  ;;  %3385 = vmatpush.msrb.mxu1 %v2374_v41 }
 0x5eb   : > { %v2813_v10 = vmax.f32 %v8509_v46, %v2721_v2  ;;  %4913 = vpow2.f32 %v1652_v53  ;;  %v1646_v2 = vmul.f32 1.442695, %v1612_v48  ;;  %v1613_v53 = vsub.f32 -inf, %v8522_v29  ;;  %v6974_v61 = vpop.eup %4907 }
 0x5ec   : > { %4915 = vpow2.f32 %v1660_v22  ;;  %v8523_v22 = vld [vmem:[#allocation47_spill] sm:$0xff]  ;;  %v1664_v6 = vmul.f32 1.442695, %v1621_v1  ;;  %v2363_v1 = vld [vmem:[#allocation3 + $0x138] sm:$0xff] }
 0x5ed   : > { %v2845_v21 = vsub.f32 %v8509_v46, %v2813_v10  ;;  %v2941_v63 = vsub.f32 %v6742_v38, %v2813_v10  ;;  %4917 = vpow2.f32 %v1662_v45  ;;  %v1630_v49 = vsub.f32 -inf, %v8523_v22  ;;  %v2373_v38 = vld [vmem:[#allocation3 + $0x188] sm:$0xff]  ;;  %v8524_v45 = vld [vmem:[#allocation45_spill] sm:$0xff]  ;;  %3261 = vmatpush.msrb.mxu2 %v2363_v1 }
 0x5ee   : > { %4919 = vpow2.f32 %v1672_v30  ;;  %v1634_v48 = vsub.f32 -inf, %v8524_v45  ;;  %3386 = vmatpush.msrb.mxu1 %v2373_v38  ;;  %v2372_v30 = vld [vmem:[#allocation3 + $0x180] sm:$0xff]  ;;  %v1638_v1 = vsub.f32 -inf, %v6487_v12 }
 0x5ef   : > { %v2878_v55 = vmul.f32 1.442695, %v2845_v21  ;;  %v2974_v46 = vmul.f32 1.442695, %v2941_v63  ;;  %1916 = vadd.xlane.f32.xlu2 %v1915_v51  ;;  %v4910_v10 = vpop.eup %4909  ;;  %4921 = vpow2.f32 %v1654_v33  ;;  %v1648_v21 = vmul.f32 1.442695, %v1613_v53  ;;  %3262 = vmatpush.msrb.mxu2 %v2362_v42 }
 0x5f0   : > { %v6978_v44 = vpop.eup %4911  ;;  %4596 = vmatmul.msk.f32.vlgmr.msra.gmra.mxu1 %vm1513_vm4, %v4910_v10  ;;  %v3068_v47 = vsel %vm1513_vm4, %v4910_v10, 0.0  ;;  %v1626_v63 = vsub.f32 -inf, %v6467_v4  ;;  %v1682_v51 = vmul.f32 1.442695, %v1630_v49  ;;  %v6990_v10 = vmul.f32 0.0, %v4900_v23  ;;  %v8526_v53 = vld [vmem:[#allocation48_spill] sm:$0xff] }
 0x5f1   : > { %4923 = vpow2.f32 %v2878_v55  ;;  %v6982_v41 = vpop.eup %4913  ;;  %3069 = vadd.xlane.f32.xlu1 %v3068_v47  ;;  %3387 = vmatpush.msrb.mxu1 %v2372_v30  ;;  %v1690_v45 = vmul.f32 1.442695, %v1634_v48  ;;  %v1631_v22 = vsub.f32 -inf, %v8526_v53  ;;  %v1698_v42 = vmul.f32 1.442695, %v1638_v1 }
 0x5f2   : > { %4925 = vpow2.f32 %v2974_v46  ;;  %v2724_v33 = vpop.xlane.xlu0 %2723  ;;  %v6985_v14 = vpop.eup %4915  ;;  %8525 = vst [vmem:[#allocation46_spill] sm:$0xff] %v6990_v10  ;;  %v1931_v30 = vadd.f32 %v6806_v9, %v6990_v10  ;;  %v1674_v23 = vmul.f32 1.442695, %v1626_v63 }
 0x5f3   : > { %4927 = vpow2.f32 %v1646_v2  ;;  %v2814_v55 = vmax.f32 %v6410_v13, %v2724_v33  ;;  %v6988_v38 = vpop.eup %4917  ;;  %v8527_v33 = vld [vmem:[#allocation49_spill] sm:$0xff] }
 0x5f4   : > { %4929 = vpow2.f32 %v1656_v27  ;;  %v6993_v46 = vpop.eup %4919  ;;  %v1635_v27 = vsub.f32 -inf, %v8527_v33 }
 0x5f5   : > { %4931 = vpow2.f32 %v1664_v6  ;;  %v2846_v47 = vsub.f32 %v6410_v13, %v2814_v55  ;;  %v2942_v2 = vsub.f32 %v6752_v39, %v2814_v55  ;;  %v6997_v49 = vpop.eup %4921  ;;  %v1684_v39 = vmul.f32 1.442695, %v1631_v22 }
 0x5f6   : > { %4933 = vpow2.f32 %v1648_v21  ;;  %v1632_v55 = vsub.f32 -inf, %v6485_v5 }
 0x5f7   : > { %v7002_v48 = vpop.eup %4923  ;;  %4935 = vpow2.f32 %v1682_v51  ;;  %v2880_v53 = vmul.f32 1.442695, %v2846_v47  ;;  %v2976_v6 = vmul.f32 1.442695, %v2942_v2  ;;  %v2361_v51 = vld [vmem:[#allocation3 + $0x128] sm:$0xff] }
 0x5f8   : > { %8528 = vst [vmem:[#allocation108_spill] sm:$0xff] %v7002_v48  ;;  %v4926_v13 = vpop.eup %4925  ;;  %4937 = vpow2.f32 %v1690_v45  ;;  %v7007_v9 = vmul.f32 %v7002_v48, %v1931_v30  ;;  %v1692_v47 = vmul.f32 1.442695, %v1635_v27  ;;  %3263 = vmatpush.msrb.mxu2 %v2361_v51  ;;  %v2360_v48 = vld [vmem:[#allocation3 + $0x120] sm:$0xff]  ;;  %v1686_v33 = vmul.f32 1.442695, %v1632_v55 }
 0x5f9   : > { %v4928_v21 = vpop.eup %4927  ;;  %4939 = vpow2.f32 %v2880_v53  ;;  %4597 = vmatmul.msk.f32.gmra.mxu1 %vm1513_vm4, %v4926_v13  ;;  %v3071_v63 = vsel %vm1513_vm4, %v4926_v13, 0.0  ;;  %v2367_v51 = vld [vmem:[#allocation3 + $0x158] sm:$0xff] }
 0x5fa   : > { %8529 = vst [vmem:[#allocation109_spill] sm:$0xff] %v7007_v9  ;;  %v7011_v10 = vpop.eup %4929  ;;  %4941 = vpow2.f32 %v2976_v6  ;;  %3072 = vadd.xlane.f32.xlu2 %v3071_v63  ;;  %v2727_v45 = vpop.xlane.xlu1 %2726  ;;  %v7017_v13 = vmul.f32 0.0, %v4928_v21  ;;  %3264 = vmatpush.msrb.mxu2 %v2360_v48  ;;  %v1628_v48 = vsub.f32 -inf, %v6542_v35 }
 0x5fb   : > { %v2754_v22 = vpop.xlane.xlu0 %2753  ;;  %v7013_v2 = vpop.eup %4931  ;;  %4943 = vpow2.f32 %v1674_v23  ;;  %v2815_v30 = vmax.f32 %v8522_v29, %v2727_v45  ;;  %3302 = vmatpush.msrb.mxu3 %v2367_v51 }
 0x5fc   : > { %v2824_v53 = vmax.f32 %v6352_v26, %v2754_v22  ;;  %v4934_v9 = vpop.eup %4933  ;;  %8530 = vst [vmem:[#allocation110_spill] sm:$0xff] %v7017_v13  ;;  %4945 = vpow2.f32 %v1684_v39  ;;  %v1932_v21 = vadd.f32 %v6794_v25, %v7017_v13  ;;  %v1627_v39 = vsub.f32 -inf, %v6515_v58 }
 0x5fd   : > { %v7019_v27 = vpop.eup %4935  ;;  %v2847_v6 = vsub.f32 %v8522_v29, %v2815_v30  ;;  %v2943_v63 = vsub.f32 %v6762_v16, %v2815_v30  ;;  %4947 = vpow2.f32 %v1692_v47  ;;  %v2366_v30 = vld [vmem:[#allocation3 + $0x150] sm:$0xff]  ;;  %v7039_v47 = vmul.f32 0.0, %v6961_v43 }
 0x5fe   : > { %v2856_v23 = vsub.f32 %v6352_v26, %v2824_v53  ;;  %v2952_v1 = vsub.f32 %v6756_v7, %v2824_v53  ;;  %v7025_v45 = vpop.eup %4937  ;;  %4949 = vpow2.f32 %v1698_v42  ;;  %3303 = vmatpush.msrb.mxu3 %v2366_v30  ;;  %v2364_v30 = vld [vmem:[#allocation3 + $0x140] sm:$0xff] }
 0x5ff   : > { %v7031_v55 = vpop.eup %4939  ;;  %v2882_v29 = vmul.f32 1.442695, %v2847_v6  ;;  %v2978_v16 = vmul.f32 1.442695, %v2943_v63  ;;  %4951 = vpow2.f32 %v1686_v33  ;;  %v2365_v6 = vld [vmem:[#allocation3 + $0x148] sm:$0xff]  ;;  %v1814_v33 = vmul.f32 0.0, %v6964_v11 }
 0x600   : > { %8531 = vst [vmem:[#allocation111_spill] sm:$0xff] %v7031_v55  ;;  %v2900_v26 = vmul.f32 1.442695, %v2856_v23  ;;  %v4942_v22 = vpop.eup %4941  ;;  %v2996_v7 = vmul.f32 1.442695, %v2952_v1  ;;  %v7034_v53 = vmul.f32 %v7031_v55, %v1932_v21  ;;  %v7047_v23 = vmul.f32 0.0, %v6969_v31  ;;  %3304 = vmatpush.msrb.mxu3 %v2365_v6 }
 0x601   : > { %v7036_v25 = vpop.eup %4943  ;;  %4953 = vpow2.f32 %v2882_v29  ;;  %4598 = vmatmul.msk.f32.gmra.mxu1 %vm1513_vm4, %v4942_v22  ;;  %v3074_v42 = vsel %vm1513_vm4, %v4942_v22, 0.0  ;;  %v1676_v1 = vmul.f32 1.442695, %v1627_v39  ;;  %v1678_v21 = vmul.f32 1.442695, %v1628_v48 }
 0x602   : > { %v7043_v63 = vpop.eup %4945  ;;  %4955 = vpow2.f32 %v2978_v16  ;;  %3075 = vadd.xlane.f32.xlu0 %v3074_v42  ;;  %v2757_v51 = vpop.xlane.xlu1 %2756  ;;  %v7054_v11 = vmul.f32 0.0, %v6974_v61  ;;  %v7057_v31 = vmul.f32 0.0, %v6978_v44  ;;  %v7059_v39 = vmul.f32 0.0, %v4934_v9  ;;  %3305 = vmatpush.msrb.mxu3 %v2364_v30  ;;  %v8532_v9 = vld [vmem:[#allocation50_spill] sm:$0xff] }
 0x603   : > { %v2766_v43 = vpop.xlane.xlu2 %2765  ;;  %4957 = vpow2.f32 %v2900_v26  ;;  %v2825_v29 = vmax.f32 %v8510_v54, %v2757_v51  ;;  %v7051_v55 = vpop.eup %4947  ;;  %v7070_v61 = vmul.f32 0.0, %v6982_v41 }
 0x604   : > { %v2828_v22 = vmax.f32 %v6467_v4, %v2766_v43  ;;  %4959 = vpow2.f32 %v2996_v7  ;;  %v7061_v16 = vpop.eup %4949  ;;  %v1933_v44 = vadd.f32 %v6808_v50, %v7059_v39  ;;  %v1636_v7 = vsub.f32 -inf, %v8532_v9 }
 0x605   : > { %v2857_v48 = vsub.f32 %v8510_v54, %v2825_v29  ;;  %v2953_v26 = vsub.f32 %v6770_v3, %v2825_v29  ;;  %v7067_v51 = vpop.eup %4951  ;;  %4961 = vpow2.f32 %v1676_v1  ;;  %v7083_v50 = vmul.f32 0.0, %v6988_v38 }
 0x606   : > { %v2860_v42 = vsub.f32 %v6467_v4, %v2828_v22  ;;  %v2956_v6 = vsub.f32 %v6772_v8, %v2828_v22  ;;  %4963 = vpow2.f32 %v1678_v21  ;;  %v1942_v8 = vadd.f32 %v6822_v0, %v1814_v33 }
 0x607   : > { %v7075_v43 = vpop.eup %4953  ;;  %v2902_v3 = vmul.f32 1.442695, %v2857_v48  ;;  %v2998_v54 = vmul.f32 1.442695, %v2953_v26  ;;  %v2302_v22 = vadd.f32 %v6690_v20, %v1814_v33  ;;  %v7086_v1 = vmul.f32 0.0, %v6985_v14 }
 0x608   : > { %v2908_v4 = vmul.f32 1.442695, %v2860_v42  ;;  %v4956_v29 = vpop.eup %4955  ;;  %v3004_v30 = vmul.f32 1.442695, %v2956_v6  ;;  %v7080_v41 = vmul.f32 %v7075_v43, %v1933_v44  ;;  %v1694_v0 = vmul.f32 1.442695, %v1636_v7 }
 0x609   : > { %v4958_v13 = vpop.eup %4957  ;;  %4965 = vpow2.f32 %v2902_v3  ;;  %4599 = vmatmul.msk.f32.gmra.mxu1 %vm1513_vm4, %v4956_v29  ;;  %v3077_v21 = vsel %vm1513_vm4, %v4956_v29, 0.0  ;;  %v7095_v38 = vmul.f32 0.0, %v6993_v46  ;;  %v1818_v7 = vmul.f32 0.0, %v7036_v25 }
 0x60a   : > { %v4960_v48 = vpop.eup %4959  ;;  %4967 = vpow2.f32 %v2998_v54  ;;  %3078 = vadd.xlane.f32.xlu0 %v3077_v21  ;;  %v2769_v33 = vpop.xlane.xlu0 %2768  ;;  %v7090_v26 = vmul.f32 %v4958_v13, %v1942_v8  ;;  %v7092_v42 = vmul.f32 %v4958_v13, %v2302_v22  ;;  %v1639_v3 = vsub.f32 -inf, %v6513_v56  ;;  %v8535_v54 = vld [vmem:[#allocation51_spill] sm:$0xff] }
 0x60b   : > { %v2730_v20 = vpop.xlane.xlu2 %2729  ;;  %4969 = vpow2.f32 %v2908_v4  ;;  %4608 = vmatmul.msk.f32.vlgmr.msrb.gmra.mxu0 %vm1513_vm4, %v4960_v48  ;;  %v2829_v6 = vmax.f32 %v6515_v58, %v2769_v33  ;;  %v4962_v44 = vpop.eup %4961  ;;  %v1633_v29 = vsub.f32 -inf, %v8535_v54  ;;  %v1943_v21 = vadd.f32 %v6860_v34, %v7047_v23 }
 0x60c   : > { %8533 = vst [vmem:[#allocation50_spill] sm:$0xff] %v7090_v26  ;;  %v2816_v14 = vmax.f32 %v6348_v57, %v2730_v20  ;;  %4971 = vpow2.f32 %v3004_v30  ;;  %v4964_v13 = vpop.eup %4963  ;;  %v2303_v25 = vadd.f32 %v6694_v40, %v7047_v23  ;;  %v7112_v20 = vmul.f32 0.0, %v6997_v49 }
 0x60d   : > { %8534 = vst [vmem:[#allocation112_spill] sm:$0xff] %v7092_v42  ;;  %v2861_v4 = vsub.f32 %v6515_v58, %v2829_v6  ;;  %v2957_v22 = vsub.f32 %v6782_v18, %v2829_v6  ;;  %4973 = vpow2.f32 %v1694_v0  ;;  %v1946_v33 = vadd.f32 %v6812_v36, %v1818_v7  ;;  %v8548_v0 = vld [vmem:[#allocation89_spill] sm:$0xff] }
 0x60e   : > { %v2848_v8 = vsub.f32 %v6348_v57, %v2816_v14  ;;  %v2944_v46 = vsub.f32 %v6778_v17, %v2816_v14  ;;  %v2306_v58 = vadd.f32 %v6706_v32, %v1818_v7  ;;  %v7120_v40 = vmul.f32 1.442695, %v1639_v3 }
 0x60f   : > { %v4966_v30 = vpop.eup %4965  ;;  %v2910_v17 = vmul.f32 1.442695, %v2861_v4  ;;  %v3006_v18 = vmul.f32 1.442695, %v2957_v22  ;;  %v7122_v49 = vmul.f32 1.442695, %v1633_v29 }
 0x610   : > { %v2884_v57 = vmul.f32 1.442695, %v2848_v8  ;;  %v2980_v42 = vmul.f32 1.442695, %v2944_v46  ;;  %v4968_v14 = vpop.eup %4967  ;;  %v7116_v6 = vmul.f32 %v4966_v30, %v1943_v21  ;;  %v7118_v34 = vmul.f32 %v4966_v30, %v2303_v25  ;;  %v2383_v21 = vld [vmem:[#allocation3 + $0x1d8] sm:$0xff] }
 0x611   : > { %v4970_v26 = vpop.eup %4969  ;;  %v3104_v23 = vsel %vm1513_vm4, %v4960_v48, 0.0  ;;  %v1819_v22 = vmul.f32 0.0, %v4962_v44  ;;  %v1820_v25 = vmul.f32 0.0, %v4964_v13  ;;  %v2294_v13 = vadd.f32 %v6696_v28, %v7039_v47  ;;  %3466 = vmatpush.msra.mxu3 %v2383_v21 }
 0x612   : > { %4975 = vpow2.f32 %v2884_v57  ;;  %v4972_v36 = vpop.eup %4971  ;;  %3105 = vadd.xlane.f32.xlu0 %v3104_v23  ;;  %v2742_v32 = vpop.xlane.xlu0 %2741  ;;  %v7126_v7 = vmul.f32 %v4970_v26, %v1946_v33  ;;  %v7128_v46 = vmul.f32 %v4970_v26, %v2306_v58  ;;  %v1934_v58 = vadd.f32 %v6840_v62, %v7039_v47  ;;  %v2386_v47 = vld [vmem:[#allocation3 + $0x1f0] sm:$0xff] }
 0x613   : > { %4977 = vpow2.f32 %v2980_v42  ;;  %v2760_v8 = vpop.xlane.xlu2 %2759  ;;  %4609 = vmatmul.msk.f32.gmra.mxu0 %vm1513_vm4, %v4968_v14  ;;  %4612 = vmatmul.msk.f32.vlgmr.msrb.gmra.mxu1 %vm1513_vm4, %v4972_v36  ;;  %v3116_v3 = vsel %vm1513_vm4, %v4972_v36, 0.0  ;;  %v2772_v29 = vpop.xlane.xlu1 %2771  ;;  %v2820_v4 = vmax.f32 %v8512_v37, %v2742_v32  ;;  %v3107_v28 = vsel %vm1513_vm4, %v4968_v14, 0.0  ;;  %v8540_v14 = vld [vmem:[#allocation38_spill] sm:$0xff] }
 0x614   : > { %4979 = vpow2.f32 %v2910_v17  ;;  %v2826_v48 = vmax.f32 %v6369_v52, %v2760_v8  ;;  %v7135_v42 = vpop.eup %4973  ;;  %3117 = vadd.xlane.f32.xlu1 %v3116_v3  ;;  %v2830_v26 = vmax.f32 %v6542_v35, %v2772_v29  ;;  %v2387_v17 = vld [vmem:[#allocation3 + $0x1f8] sm:$0xff]  ;;  %v8537_v3 = vld [vmem:[#allocation31_spill] sm:$0xff] }
 0x615   : > { %4981 = vpow2.f32 %v3006_v18  ;;  %v2852_v57 = vsub.f32 %v8512_v37, %v2820_v4  ;;  %v2948_v18 = vsub.f32 %v6780_v15, %v2820_v4  ;;  %3507 = vmatpush.msra.mxu0 %v2387_v17  ;;  %v2385_v17 = vld [vmem:[#allocation3 + $0x1e8] sm:$0xff] }
 0x616   : > { %v2858_v30 = vsub.f32 %v6369_v52, %v2826_v48  ;;  %v2954_v33 = vsub.f32 %v6792_v60, %v2826_v48  ;;  %v2862_v23 = vsub.f32 %v6542_v35, %v2830_v26  ;;  %v2958_v44 = vsub.f32 %v6796_v19, %v2830_v26  ;;  %v8536_v52 = vld [vmem:[#allocation81_spill] sm:$0xff] }
 0x617   : > { %v1947_v8 = vadd.f32 %v8536_v52, %v1819_v22  ;;  %v2307_v48 = vadd.f32 %v8537_v3, %v1819_v22  ;;  %v2892_v15 = vmul.f32 1.442695, %v2852_v57  ;;  %3508 = vmatpush.msra.mxu0 %v2386_v47  ;;  %v8545_v47 = vld [vmem:[#allocation72_spill] sm:$0xff] }
 0x618   : > { %v4976_v36 = vpop.eup %4975  ;;  %v2904_v60 = vmul.f32 1.442695, %v2858_v30  ;;  %v3000_v32 = vmul.f32 1.442695, %v2954_v33  ;;  %v2912_v62 = vmul.f32 1.442695, %v2862_v23 }
 0x619   : > { %v7150_v37 = vpop.eup %4977  ;;  %v3008_v29 = vmul.f32 1.442695, %v2958_v44  ;;  %v7153_v35 = vmul.f32 %v4976_v36, %v1934_v58  ;;  %v7158_v4 = vmul.f32 %v4976_v36, %v2294_v13  ;;  %v2988_v30 = vmul.f32 1.442695, %v2948_v18  ;;  %v8541_v13 = vld [vmem:[#allocation40_spill] sm:$0xff]  ;;  %v8542_v18 = vld [vmem:[#allocation27_spill] sm:$0xff]  ;;  %3509 = vmatpush.msra.mxu0 %v2385_v17 }
 0x61a   : > { %v4980_v19 = vpop.eup %4979  ;;  %4983 = vpow2.f32 %v2904_v60  ;;  %4600 = vmatmul.msk.f32.vlgmr.msrb.gmra.mxu2 %vm1513_vm4, %v7150_v37  ;;  %v2736_v22 = vpop.xlane.xlu0 %2735  ;;  %v2298_v60 = vadd.f32 %v8542_v18, %v7054_v11 }
 0x61b   : > { %8538 = vst [vmem:[#allocation51_spill] sm:$0xff] %v7158_v4  ;;  %v4982_v26 = vpop.eup %4981  ;;  %4985 = vpow2.f32 %v3000_v32  ;;  %v2733_v33 = vpop.xlane.xlu2 %2732  ;;  %v7160_v58 = vmul.f32 %v4980_v19, %v1947_v8  ;;  %v7162_v23 = vmul.f32 %v4980_v19, %v2307_v48  ;;  %v2818_v52 = vmax.f32 %v8541_v13, %v2736_v22  ;;  %v8543_v32 = vld [vmem:[#allocation26_spill] sm:$0xff]  ;;  %v8544_v8 = vld [vmem:[#allocation39_spill] sm:$0xff]  ;;  %v8549_v4 = vld [vmem:[#allocation57_spill] sm:$0xff] }
 0x61c   : > { %4987 = vpow2.f32 %v2912_v62  ;;  %4613 = vmatmul.msk.f32.gmra.mxu1 %vm1513_vm4, %v4982_v26  ;;  %v3119_v57 = vsel %vm1513_vm4, %v4982_v26, 0.0  ;;  %v2817_v44 = vmax.f32 %v8540_v14, %v2733_v33  ;;  %v2745_v36 = vpop.xlane.xlu1 %2744  ;;  %v2304_v3 = vadd.f32 %v8543_v32, %v7057_v31  ;;  %3108 = vadd.xlane.f32.xlu1 %v3107_v28  ;;  %v2384_v62 = vld [vmem:[#allocation3 + $0x1e0] sm:$0xff] }
 0x61d   : > { %8539 = vst [vmem:[#allocation81_spill] sm:$0xff] %v7162_v23  ;;  %4989 = vpow2.f32 %v3008_v29  ;;  %3120 = vadd.xlane.f32.xlu2 %v3119_v57  ;;  %v2821_v48 = vmax.f32 %v8544_v8, %v2745_v36  ;;  %v2850_v33 = vsub.f32 %v8541_v13, %v2818_v52  ;;  %v8546_v22 = vld [vmem:[#allocation87_spill] sm:$0xff]  ;;  %v8547_v29 = vld [vmem:[#allocation73_spill] sm:$0xff]  ;;  %v2379_v57 = vld [vmem:[#allocation3 + $0x1b8] sm:$0xff]  ;;  %3510 = vmatpush.msra.mxu0 %v2384_v62 }
 0x61e   : > { %4991 = vpow2.f32 %v2892_v15  ;;  %v2849_v19 = vsub.f32 %v8540_v14, %v2817_v44  ;;  %v2945_v26 = vsub.f32 %v8545_v47, %v2817_v44  ;;  %v1944_v18 = vadd.f32 %v8546_v22, %v7057_v31  ;;  %3425 = vmatpush.msra.mxu2 %v2379_v57  ;;  %v8550_v31 = vld [vmem:[#allocation74_spill] sm:$0xff]  ;;  %v8552_v62 = vld [vmem:[#allocation77_spill] sm:$0xff] }
 0x61f   : > { %4993 = vpow2.f32 %v2988_v30  ;;  %v2853_v32 = vsub.f32 %v8544_v8, %v2821_v48  ;;  %v2949_v28 = vsub.f32 %v8547_v29, %v2821_v48  ;;  %v1948_v15 = vadd.f32 %v8548_v0, %v1820_v25 }
 0x620   : > { %v4984_v36 = vpop.eup %4983  ;;  %v2308_v14 = vadd.f32 %v8549_v4, %v1820_v25  ;;  %v2886_v23 = vmul.f32 1.442695, %v2849_v19  ;;  %v2982_v44 = vmul.f32 1.442695, %v2945_v26  ;;  %v2946_v30 = vsub.f32 %v8550_v31, %v2818_v52  ;;  %v8557_v31 = vld [vmem:[#allocation75_spill] sm:$0xff] }
 0x621   : > { %v4986_v17 = vpop.eup %4985  ;;  %v2894_v13 = vmul.f32 1.442695, %v2853_v32  ;;  %v2990_v47 = vmul.f32 1.442695, %v2949_v28  ;;  %v7183_v8 = vmul.f32 %v4984_v36, %v1944_v18  ;;  %v2888_v22 = vmul.f32 1.442695, %v2850_v33 }
 0x622   : > { %v4988_v48 = vpop.eup %4987  ;;  %4995 = vpow2.f32 %v2886_v23  ;;  %4610 = vmatmul.msk.f32.gmra.mxu0 %vm1513_vm4, %v4986_v17  ;;  %v3110_v0 = vsel %vm1513_vm4, %v4986_v17, 0.0  ;;  %v7187_v25 = vmul.f32 %v4984_v36, %v2304_v3  ;;  %v1938_v19 = vadd.f32 %v8552_v62, %v7054_v11  ;;  %v7193_v21 = vpop.xlane.xlu0 %1880  ;;  %v8554_v18 = vld [vmem:[#allocation53_spill] sm:$0xff]  ;;  %v8555_v11 = vld [vmem:[#allocation42_spill] sm:$0xff] }
 0x623   : > { %v7189_v4 = vpop.eup %4989  ;;  %4997 = vpow2.f32 %v2982_v44  ;;  %3111 = vadd.xlane.f32.xlu0 %v3110_v0  ;;  %v2763_v52 = vpop.xlane.xlu2 %2762  ;;  %v7195_v26 = vmul.f32 %v4988_v48, %v1948_v15  ;;  %v7197_v23 = vmul.f32 %v4988_v48, %v2308_v14  ;;  %v1629_v32 = vsub.f32 -inf, %v8554_v18  ;;  %v2378_v15 = vld [vmem:[#allocation3 + $0x1b0] sm:$0xff]  ;;  %v8559_v0 = vld [vmem:[#allocation78_spill] sm:$0xff] }
 0x624   : > { %8551 = vst [vmem:[#allocation31_spill] sm:$0xff] %v7187_v25  ;;  %v4992_v33 = vpop.eup %4991  ;;  %4999 = vpow2.f32 %v2894_v13  ;;  %4614 = vmatmul.msk.f32.gmra.mxu1 %vm1513_vm4, %v7189_v4  ;;  %v3080_v3 = vsel %vm1513_vm4, %v7150_v37, 0.0  ;;  %v2827_v29 = vmax.f32 %v8555_v11, %v2763_v52  ;;  %v7205_v28 = vpop.xlane.xlu1 %1868  ;;  %v2984_v36 = vmul.f32 1.442695, %v2946_v30  ;;  %v2382_v14 = vld [vmem:[#allocation3 + $0x1d0] sm:$0xff]  ;;  %3426 = vmatpush.msra.mxu2 %v2378_v15  ;;  %v8561_v52 = vld [vmem:[#allocation32_spill] sm:$0xff] }
 0x625   : > { %8553 = vst [vmem:[#allocation38_spill] sm:$0xff] %v7197_v23  ;;  %v4994_v57 = vpop.eup %4993  ;;  %5001 = vpow2.f32 %v2990_v47  ;;  %3081 = vadd.xlane.f32.xlu2 %v3080_v3  ;;  %v7207_v44 = vmul.f32 %v4992_v33, %v1938_v19  ;;  %v7209_v17 = vmul.f32 %v4992_v33, %v2298_v60  ;;  %v8558_v47 = vld [vmem:[#allocation30_spill] sm:$0xff]  ;;  %v1935_v62 = vadd.f32 %v8559_v0, %v7070_v61  ;;  %v8562_v15 = vld [vmem:[#allocation84_spill] sm:$0xff] }
 0x626   : > { %5003 = vpow2.f32 %v2888_v22  ;;  %4604 = vmatmul.msk.f32.vlgmr.msrb.gmra.mxu3 %vm1513_vm4, %v4994_v57  ;;  %v3092_v13 = vsel %vm1513_vm4, %v4994_v57, 0.0  ;;  %v2859_v37 = vsub.f32 %v8555_v11, %v2827_v29  ;;  %v2955_v48 = vsub.f32 %v8557_v31, %v2827_v29 }
 0x627   : > { %8556 = vst [vmem:[#allocation40_spill] sm:$0xff] %v7209_v17  ;;  %v2295_v30 = vadd.f32 %v8558_v47, %v7070_v61  ;;  %v8560_v19 = vsub.f32 -inf, %v6545_v59  ;;  %5005 = vpow2.f32 %v7120_v40  ;;  %3093 = vadd.xlane.f32.xlu1 %v3092_v13  ;;  %3467 = vmatpush.msra.mxu3 %v2382_v14  ;;  %v2299_v33 = vadd.f32 %v8561_v52, %v7086_v1  ;;  %v8564_v40 = vld [vmem:[#allocation33_spill] sm:$0xff] }
 0x628   : > { %v4996_v22 = vpop.eup %4995  ;;  %v1680_v3 = vmul.f32 1.442695, %v1629_v32  ;;  %v2906_v11 = vmul.f32 1.442695, %v2859_v37  ;;  %v3002_v29 = vmul.f32 1.442695, %v2955_v48  ;;  %v1939_v31 = vadd.f32 %v8562_v15, %v7086_v1 }
 0x629   : > { %v1702_v60 = vmul.f32 1.442695, %v8560_v19  ;;  %v4998_v57 = vpop.eup %4997  ;;  %5007 = vpow2.f32 %v2984_v36  ;;  %v7226_v61 = vmul.f32 %v4996_v22, %v1935_v62  ;;  %v7228_v47 = vmul.f32 %v4996_v22, %v2295_v30  ;;  %v8566_v1 = vld [vmem:[#allocation95_spill] sm:$0xff]  ;;  %v2377_v62 = vld [vmem:[#allocation3 + $0x1a8] sm:$0xff] }
 0x62a   : > { %v5000_v0 = vpop.eup %4999  ;;  %v2296_v14 = vadd.f32 %v8564_v40, %v7112_v20  ;;  %v8565_v13 = vsub.f32 -inf, %v6540_v24  ;;  %5009 = vpow2.f32 %v2906_v11  ;;  %4601 = vmatmul.msk.f32.gmra.mxu2 %vm1513_vm4, %v4998_v57  ;;  %v3083_v32 = vsel %vm1513_vm4, %v4998_v57, 0.0  ;;  %v2751_v30 = vpop.xlane.xlu0 %2750 }
 0x62b   : > { %8563 = vst [vmem:[#allocation27_spill] sm:$0xff] %v7228_v47  ;;  %v5002_v37 = vpop.eup %5001  ;;  %v1936_v36 = vadd.f32 %v8566_v1, %v7112_v20  ;;  %5011 = vpow2.f32 %v3002_v29  ;;  %3084 = vadd.xlane.f32.xlu0 %v3083_v32  ;;  %v2775_v48 = vpop.xlane.xlu2 %2774  ;;  %v7238_v22 = vmul.f32 %v5000_v0, %v1939_v31  ;;  %v7240_v52 = vmul.f32 %v5000_v0, %v2299_v33  ;;  %v2376_v33 = vld [vmem:[#allocation3 + $0x1a0] sm:$0xff] }
 0x62c   : > { %v1696_v19 = vmul.f32 1.442695, %v8565_v13  ;;  %v5004_v15 = vpop.eup %5003  ;;  %5013 = vpow2.f32 %v1680_v3  ;;  %v3095_v11 = vsel %vm1513_vm4, %v5002_v37, 0.0  ;;  %v2802_v40 = vpop.xlane.xlu1 %2801  ;;  %v2831_v57 = vmax.f32 %v8554_v18, %v2775_v48  ;;  %v8568_v13 = vld [vmem:[#allocation44_spill] sm:$0xff]  ;;  %3427 = vmatpush.msra.mxu2 %v2377_v62  ;;  %v8571_v1 = vld [vmem:[#allocation83_spill] sm:$0xff] }
 0x62d   : > { %8567 = vst [vmem:[#allocation26_spill] sm:$0xff] %v7240_v52  ;;  %v7245_v47 = vmax.f32 %v8568_v13, %v2751_v30  ;;  %v7247_v20 = vpop.eup %5005  ;;  %5015 = vpow2.f32 %v7122_v49  ;;  %3096 = vadd.xlane.f32.xlu2 %v3095_v11  ;;  %v2840_v29 = vmax.f32 %v6487_v12, %v2802_v40  ;;  %v7251_v31 = vmul.f32 %v5004_v15, %v1936_v36 }
 0x62e   : > { %v7253_v3 = vmul.f32 %v5004_v15, %v2296_v14  ;;  %4605 = vmatmul.msk.f32.gmra.mxu3 %vm1513_vm4, %v5002_v37  ;;  %v3122_v0 = vsel %vm1513_vm4, %v7189_v4, 0.0  ;;  %v2863_v32 = vsub.f32 %v8554_v18, %v2831_v57  ;;  %v2959_v48 = vsub.f32 %v8571_v1, %v2831_v57  ;;  %v8572_v37 = vld [vmem:[#allocation80_spill] sm:$0xff]  ;;  %3428 = vmatpush.msra.mxu2 %v2376_v33  ;;  %v8573_v18 = vld [vmem:[#allocation29_spill] sm:$0xff] }
 0x62f   : > { %8569 = vst [vmem:[#allocation39_spill] sm:$0xff] %v7251_v31  ;;  %v2855_v49 = vsub.f32 %v8568_v13, %v7245_v47  ;;  %v7262_v30 = vpop.eup %5007  ;;  %5017 = vpow2.f32 %v1702_v60  ;;  %v1945_v36 = vadd.f32 %v7193_v21, %v7095_v38  ;;  %3123 = vadd.xlane.f32.xlu1 %v3122_v0  ;;  %v2872_v14 = vsub.f32 %v6487_v12, %v2840_v29  ;;  %v2381_v4 = vld [vmem:[#allocation3 + $0x1c8] sm:$0xff]  ;;  %v8584_v31 = vld [vmem:[#allocation97_spill] sm:$0xff] }
 0x630   : > { %8570 = vst [vmem:[#allocation72_spill] sm:$0xff] %v7253_v3  ;;  %v2968_v62 = vsub.f32 %v8572_v37, %v2840_v29  ;;  %v5010_v15 = vpop.eup %5009  ;;  %v2305_v11 = vadd.f32 %v8573_v18, %v7095_v38  ;;  %v7271_v40 = vmul.f32 0.0, %v7011_v10  ;;  %5019 = vpow2.f32 %v1696_v19  ;;  %3468 = vmatpush.msra.mxu3 %v2381_v4  ;;  %v8582_v3 = vld [vmem:[#allocation79_spill] sm:$0xff] }
 0x631   : > { %v2914_v57 = vmul.f32 1.442695, %v2863_v32  ;;  %v5012_v60 = vpop.eup %5011  ;;  %v2932_v13 = vmul.f32 1.442695, %v2872_v14  ;;  %v3010_v0 = vmul.f32 1.442695, %v2959_v48  ;;  %v7273_v1 = vmul.f32 %v5010_v15, %v1945_v36 }
 0x632   : > { %v3028_v21 = vmul.f32 1.442695, %v2968_v62  ;;  %v5014_v12 = vpop.eup %5013  ;;  %v2898_v29 = vmul.f32 1.442695, %v2855_v49  ;;  %4602 = vmatmul.msk.f32.gmra.mxu2 %vm1513_vm4, %v7262_v30  ;;  %4611 = vmatmul.msk.f32.gmra.mxu0 %vm1513_vm4, %v5012_v60  ;;  %v3113_v10 = vsel %vm1513_vm4, %v5012_v60, 0.0  ;;  %v7279_v38 = vmul.f32 %v5010_v15, %v2305_v11  ;;  %v2778_v36 = vpop.xlane.xlu0 %2777  ;;  %v8576_v62 = vld [vmem:[#allocation41_spill] sm:$0xff] }
 0x633   : > { %8574 = vst [vmem:[#allocation87_spill] sm:$0xff] %v7273_v1  ;;  %5021 = vpow2.f32 %v2914_v57  ;;  %v7281_v19 = vpop.eup %5015  ;;  %v1813_v33 = vmul.f32 0.0, %v7013_v2  ;;  %v7285_v32 = vmul.f32 0.0, %v7019_v27  ;;  %v7288_v48 = vmul.f32 0.0, %v7025_v45  ;;  %v2748_v49 = vpop.xlane.xlu2 %2747  ;;  %v8577_v15 = vld [vmem:[#allocation47_spill] sm:$0xff] }
 0x634   : > { %8575 = vst [vmem:[#allocation73_spill] sm:$0xff] %v7279_v38  ;;  %5023 = vpow2.f32 %v2932_v13  ;;  %v7291_v14 = vmul.f32 0.0, %v7043_v63  ;;  %v2739_v37 = vpop.xlane.xlu1 %2738  ;;  %v2822_v4 = vmax.f32 %v8576_v62, %v2748_v49  ;;  %v7295_v18 = vmax.f32 %v8577_v15, %v2778_v36  ;;  %v8578_v45 = vld [vmem:[#allocation43_spill] sm:$0xff] }
 0x635   : > { %5025 = vpow2.f32 %v3028_v21  ;;  %v7297_v2 = vpop.eup %5017  ;;  %v1830_v27 = vmul.f32 0.0, %v7061_v16  ;;  %v7300_v11 = vmul.f32 0.0, %v5014_v12  ;;  %3114 = vadd.xlane.f32.xlu2 %v3113_v10  ;;  %v2819_v57 = vmax.f32 %v8578_v45, %v2739_v37  ;;  %v2380_v60 = vld [vmem:[#allocation3 + $0x1c0] sm:$0xff]  ;;  %v8579_v21 = vld [vmem:[#allocation76_spill] sm:$0xff] }
 0x636   : > { %5027 = vpow2.f32 %v3010_v0  ;;  %v7303_v63 = vpop.eup %5019  ;;  %v2854_v13 = vsub.f32 %v8576_v62, %v2822_v4  ;;  %v2950_v49 = vsub.f32 %v8579_v21, %v2822_v4  ;;  %v2864_v36 = vsub.f32 %v8577_v15, %v7295_v18  ;;  %3469 = vmatpush.msra.mxu3 %v2380_v60  ;;  %v8580_v16 = vld [vmem:[#allocation60_spill] sm:$0xff]  ;;  %v8581_v0 = vld [vmem:[#allocation82_spill] sm:$0xff] }
 0x637   : > { %5029 = vpow2.f32 %v2898_v29  ;;  %v2309_v12 = vadd.f32 %v8580_v16, %v7300_v11  ;;  %v2951_v10 = vsub.f32 %v8581_v0, %v7245_v47  ;;  %v2851_v37 = vsub.f32 %v8578_v45, %v2819_v57  ;;  %v8583_v29 = vld [vmem:[#allocation59_spill] sm:$0xff]  ;;  %v8585_v21 = vld [vmem:[#allocation54_spill] sm:$0xff] }
 0x638   : > { %v2947_v38 = vsub.f32 %v8582_v3, %v2819_v57  ;;  %v2301_v62 = vadd.f32 %v8583_v29, %v1813_v33  ;;  %v1958_v4 = vadd.f32 %v8584_v31, %v1830_v27  ;;  %v2318_v1 = vadd.f32 %v8585_v21, %v1830_v27 }
 0x639   : > { %v7315_v52 = vpop.eup %5021  ;;  %v2896_v15 = vmul.f32 1.442695, %v2854_v13  ;;  %v2890_v17 = vmul.f32 1.442695, %v2851_v37  ;;  %v2992_v16 = vmul.f32 1.442695, %v2950_v49  ;;  %v1941_v31 = vadd.f32 %v7205_v28, %v1813_v33 }
 0x63a   : > { %v5024_v60 = vpop.eup %5023  ;;  %v2986_v23 = vmul.f32 1.442695, %v2947_v38  ;;  %v7321_v25 = vmul.f32 %v7315_v52, %v2309_v12  ;;  %v2916_v45 = vmul.f32 1.442695, %v2864_v36  ;;  %v2994_v29 = vmul.f32 1.442695, %v2951_v10  ;;  %v2808_v13 = vpop.xlane.xlu0 %2807 }
 0x63b   : > { %v5026_v47 = vpop.eup %5025  ;;  %5031 = vpow2.f32 %v2896_v15  ;;  %v7323_v3 = vmul.f32 %v5024_v60, %v1958_v4  ;;  %v7325_v57 = vmul.f32 %v5024_v60, %v2318_v1  ;;  %v3086_v38 = vsel %vm1513_vm4, %v7262_v30, 0.0  ;;  %v1857_v27 = vpop.xlane.xlu2 %1856  ;;  %v8586_v36 = vld [vmem:[#allocation85_spill] sm:$0xff]  ;;  %v8590_v15 = vld [vmem:[#allocation92_spill] sm:$0xff] }
 0x63c   : > { %v5028_v0 = vpop.eup %5027  ;;  %5033 = vpow2.f32 %v2890_v17  ;;  %4624 = vmatmul.msk.f32.vlgmr.msra.gmra.mxu0 %vm1513_vm4, %v5026_v47  ;;  %v2960_v12 = vsub.f32 %v8586_v36, %v7295_v18  ;;  %v2790_v37 = vpop.xlane.xlu1 %2789  ;;  %v7336_v28 = vmax.f32 %v6545_v59, %v2808_v13  ;;  %v8587_v17 = vld [vmem:[#allocation45_spill] sm:$0xff]  ;;  %v8589_v18 = vld [vmem:[#allocation52_spill] sm:$0xff]  ;;  %v1940_v60 = vadd.f32 %v8590_v15, %v7083_v50 }
 0x63d   : > { %v5030_v49 = vpop.eup %5029  ;;  %5035 = vpow2.f32 %v2986_v23  ;;  %4615 = vmatmul.msk.f32.gmra.mxu1 %vm1513_vm4, %v5028_v0  ;;  %v3125_v1 = vsel %vm1513_vm4, %v5028_v0, 0.0  ;;  %3087 = vadd.xlane.f32.xlu2 %v3086_v38  ;;  %v2836_v30 = vmax.f32 %v8587_v17, %v2790_v37  ;;  %v7344_v23 = vmul.f32 0.0, %v7051_v55 }
 0x63e   : > { %5037 = vpow2.f32 %v2992_v16  ;;  %3126 = vadd.xlane.f32.xlu0 %v3125_v1  ;;  %v7339_v33 = vmul.f32 %v5030_v49, %v1941_v31  ;;  %v7341_v10 = vmul.f32 %v5030_v49, %v2301_v62  ;;  %v1641_v4 = vsub.f32 -inf, %v8589_v18  ;;  %v8591_v16 = vld [vmem:[#allocation55_spill] sm:$0xff]  ;;  %v8592_v31 = vld [vmem:[#allocation56_spill] sm:$0xff] }
 0x63f   : > { %5039 = vpow2.f32 %v2916_v45  ;;  %v2874_v21 = vsub.f32 %v6545_v59, %v7336_v28  ;;  %v2300_v0 = vadd.f32 %v8591_v16, %v7083_v50  ;;  %v2297_v38 = vadd.f32 %v8592_v31, %v7271_v40  ;;  %v8593_v59 = vld [vmem:[#allocation88_spill] sm:$0xff] }
 0x640   : > { %8588 = vst [vmem:[#allocation89_spill] sm:$0xff] %v7341_v10  ;;  %v2868_v62 = vsub.f32 %v8587_v17, %v2836_v30  ;;  %5041 = vpow2.f32 %v2994_v29  ;;  %v3012_v55 = vmul.f32 1.442695, %v2960_v12  ;;  %v1937_v49 = vadd.f32 %v1857_v27, %v7271_v40  ;;  %v8596_v12 = vld [vmem:[#allocation61_spill] sm:$0xff] }
 0x641   : > { %v5032_v13 = vpop.eup %5031  ;;  %v2936_v45 = vmul.f32 1.442695, %v2874_v21  ;;  %v2964_v37 = vsub.f32 %v8593_v59, %v2836_v30  ;;  %v1704_v16 = vmul.f32 1.442695, %v1641_v4  ;;  %v2310_v40 = vadd.f32 %v8596_v12, %v7285_v32  ;;  %v8597_v27 = vld [vmem:[#allocation93_spill] sm:$0xff]  ;;  %v8601_v12 = vld [vmem:[#allocation86_spill] sm:$0xff] }
 0x642   : > { %v5034_v36 = vpop.eup %5033  ;;  %v2924_v1 = vmul.f32 1.442695, %v2868_v62  ;;  %v7358_v10 = vmul.f32 %v5032_v13, %v1940_v60  ;;  %v7360_v15 = vmul.f32 %v5032_v13, %v2300_v0  ;;  %v1950_v21 = vadd.f32 %v8597_v27, %v7285_v32  ;;  %v2781_v0 = vpop.xlane.xlu0 %2780 }
 0x643   : > { %v5036_v50 = vpop.eup %5035  ;;  %5043 = vpow2.f32 %v2936_v45  ;;  %v7362_v31 = vmul.f32 %v5034_v36, %v1937_v49  ;;  %v7364_v17 = vmul.f32 %v5034_v36, %v2297_v38  ;;  %v3152_v30 = vsel %vm1513_vm4, %v5026_v47, 0.0  ;;  %v2805_v60 = vpop.xlane.xlu2 %2804  ;;  %v8598_v49 = vld [vmem:[#allocation48_spill] sm:$0xff] }
 0x644   : > { %8594 = vst [vmem:[#allocation57_spill] sm:$0xff] %v7360_v15  ;;  %v5038_v29 = vpop.eup %5037  ;;  %5045 = vpow2.f32 %v2924_v1  ;;  %4603 = vmatmul.msk.f32.gmra.mxu2 %vm1513_vm4, %v5036_v50  ;;  %v2784_v62 = vpop.xlane.xlu1 %2783  ;;  %v2841_v13 = vmax.f32 %v6513_v56, %v2805_v60  ;;  %v2833_v45 = vmax.f32 %v8598_v49, %v2781_v0  ;;  %v3020_v36 = vmul.f32 1.442695, %v2964_v37  ;;  %v8602_v37 = vld [vmem:[#allocation63_spill] sm:$0xff]  ;;  %v8603_v0 = vld [vmem:[#allocation90_spill] sm:$0xff] }
 0x645   : > { %8595 = vst [vmem:[#allocation74_spill] sm:$0xff] %v7364_v17  ;;  %v5040_v4 = vpop.eup %5039  ;;  %5047 = vpow2.f32 %v3012_v55  ;;  %4606 = vmatmul.msk.f32.gmra.mxu3 %vm1513_vm4, %v5038_v29  ;;  %v3098_v38 = vsel %vm1513_vm4, %v5038_v29, 0.0  ;;  %v7377_v32 = vmax.f32 %v6485_v5, %v2784_v62  ;;  %v7384_v59 = vmul.f32 0.0, %v7297_v2  ;;  %v8604_v2 = vld [vmem:[#allocation62_spill] sm:$0xff] }
 0x646   : > { %3153 = vadd.xlane.f32.xlu0 %v3152_v30  ;;  %3099 = vadd.xlane.f32.xlu1 %v3098_v38  ;;  %v7379_v47 = vmul.f32 %v5040_v4, %v2310_v40  ;;  %v7381_v1 = vmul.f32 %v5040_v4, %v1950_v21  ;;  %v5042_v55 = vpop.eup %5041  ;;  %v2873_v29 = vsub.f32 %v6513_v56, %v2841_v13  ;;  %5049 = vpow2.f32 %v1704_v16  ;;  %v8605_v56 = vld [vmem:[#allocation101_spill] sm:$0xff] }
 0x647   : > { %v2969_v27 = vsub.f32 %v8601_v12, %v2841_v13  ;;  %v2865_v60 = vsub.f32 %v8598_v49, %v2833_v45  ;;  %v2314_v30 = vadd.f32 %v8602_v37, %v7288_v48  ;;  %v2866_v40 = vsub.f32 %v6485_v5, %v7377_v32  ;;  %v8606_v13 = vld [vmem:[#allocation91_spill] sm:$0xff] }
 0x648   : > { %8599 = vst [vmem:[#allocation77_spill] sm:$0xff] %v7379_v47  ;;  %v2961_v21 = vsub.f32 %v8603_v0, %v2833_v45  ;;  %v2320_v38 = vadd.f32 %v8604_v2, %v7384_v59  ;;  %v1954_v62 = vadd.f32 %v8605_v56, %v7288_v48  ;;  %v2970_v49 = vsub.f32 %v8606_v13, %v7336_v28 }
 0x649   : > { %8600 = vst [vmem:[#allocation53_spill] sm:$0xff] %v7381_v1  ;;  %v7394_v4 = vpop.eup %5043  ;;  %v2934_v12 = vmul.f32 1.442695, %v2873_v29  ;;  %5051 = vpow2.f32 %v3020_v36  ;;  %v2920_v16 = vmul.f32 1.442695, %v2866_v40  ;;  %v7412_v48 = vmul.f32 0.0, %v7067_v51 }
 0x64a   : > { %v5046_v47 = vpop.eup %5045  ;;  %v3030_v37 = vmul.f32 1.442695, %v2969_v27  ;;  %v2918_v1 = vmul.f32 1.442695, %v2865_v60  ;;  %v7409_v2 = vmul.f32 %v7394_v4, %v2320_v38  ;;  %v1831_v28 = vmul.f32 0.0, %v7247_v20  ;;  %v2811_v27 = vpop.xlane.xlu0 %2810  ;;  %v8610_v40 = vld [vmem:[#allocation49_spill] sm:$0xff] }
 0x64b   : > { %v7402_v5 = vpop.eup %5047  ;;  %5053 = vpow2.f32 %v2934_v12  ;;  %v7404_v45 = vmul.f32 %v5046_v47, %v1954_v62  ;;  %v7406_v0 = vmul.f32 %v5046_v47, %v2314_v30  ;;  %v3014_v36 = vmul.f32 1.442695, %v2961_v21  ;;  %v2793_v29 = vpop.xlane.xlu2 %2792  ;;  %v8611_v21 = vld [vmem:[#allocation64_spill] sm:$0xff]  ;;  %v8612_v62 = vld [vmem:[#allocation58_spill] sm:$0xff] }
 0x64c   : > { %8609 = vst [vmem:[#allocation30_spill] sm:$0xff] %v7409_v2  ;;  %5055 = vpow2.f32 %v2920_v16  ;;  %4616 = vmatmul.msk.f32.vlgmr.msra.gmra.mxu2 %vm1513_vm4, %v7402_v5  ;;  %v3089_v47 = vsel %vm1513_vm4, %v5036_v50, 0.0  ;;  %v3101_v60 = vsel %vm1513_vm4, %v5042_v55, 0.0  ;;  %v7420_v30 = vpop.xlane.xlu1 %1928  ;;  %v2837_v51 = vmax.f32 %v8610_v40, %v2793_v29  ;;  %v5050_v20 = vpop.eup %5049 }
 0x64d   : > { %8607 = vst [vmem:[#allocation42_spill] sm:$0xff] %v7404_v45  ;;  %4607 = vmatmul.msk.f32.gmra.mxu3 %vm1513_vm4, %v5042_v55  ;;  %v2843_v38 = vmax.f32 %v8589_v18, %v2811_v27  ;;  %v2311_v56 = vadd.f32 %v8611_v21, %v7291_v14  ;;  %v2319_v13 = vadd.f32 %v8612_v62, %v1831_v28  ;;  %v3032_v12 = vmul.f32 1.442695, %v2970_v49  ;;  %v8613_v55 = vld [vmem:[#allocation94_spill] sm:$0xff]  ;;  %v8615_v45 = vld [vmem:[#allocation96_spill] sm:$0xff] }
 0x64e   : > { %8608 = vst [vmem:[#allocation75_spill] sm:$0xff] %v7406_v0  ;;  %5057 = vpow2.f32 %v3030_v37  ;;  %3090 = vadd.xlane.f32.xlu1 %v3089_v47  ;;  %3102 = vadd.xlane.f32.xlu0 %v3101_v60  ;;  %v2869_v50 = vsub.f32 %v8610_v40, %v2837_v51  ;;  %v2965_v16 = vsub.f32 %v8613_v55, %v2837_v51  ;;  %v8614_v0 = vld [vmem:[#allocation35_spill] sm:$0xff]  ;;  %v8616_v21 = vld [vmem:[#allocation100_spill] sm:$0xff] }
 0x64f   : > { %5059 = vpow2.f32 %v2918_v1  ;;  %v2875_v2 = vsub.f32 %v8589_v18, %v2843_v38  ;;  %v5052_v29 = vpop.eup %5051  ;;  %v1959_v27 = vadd.f32 %v8614_v0, %v1831_v28  ;;  %v2962_v15 = vsub.f32 %v8615_v45, %v7377_v32  ;;  %v8617_v37 = vld [vmem:[#allocation67_spill] sm:$0xff]  ;;  %v8618_v18 = vld [vmem:[#allocation66_spill] sm:$0xff] }
 0x650   : > { %5061 = vpow2.f32 %v3014_v36  ;;  %v2971_v62 = vsub.f32 %v8616_v21, %v2843_v38  ;;  %v2312_v47 = vadd.f32 %v8617_v37, %v7412_v48  ;;  %v2926_v1 = vmul.f32 1.442695, %v2869_v50  ;;  %v8619_v32 = vld [vmem:[#allocation102_spill] sm:$0xff]  ;;  %v8620_v36 = vld [vmem:[#allocation105_spill] sm:$0xff] }
 0x651   : > { %v5054_v49 = vpop.eup %5053  ;;  %v3022_v60 = vmul.f32 1.442695, %v2965_v16  ;;  %v2938_v40 = vmul.f32 1.442695, %v2875_v2  ;;  %v2315_v51 = vadd.f32 %v8618_v18, %v7344_v23  ;;  %5063 = vpow2.f32 %v3032_v12  ;;  %v8621_v38 = vld [vmem:[#allocation34_spill] sm:$0xff] }
 0x652   : > { %v7436_v17 = vpop.eup %5055  ;;  %v7440_v0 = vmul.f32 %v5054_v49, %v1959_v27  ;;  %v7442_v28 = vmul.f32 %v5054_v49, %v2319_v13  ;;  %v1951_v45 = vadd.f32 %v8619_v32, %v7291_v14  ;;  %v2844_v55 = vsub.f32 %v8621_v38, %v8620_v36  ;;  %v2796_v37 = vpop.xlane.xlu0 %2795  ;;  %v8624_v36 = vld [vmem:[#allocation99_spill] sm:$0xff] }
 0x653   : > { %5065 = vpow2.f32 %v2926_v1  ;;  %v7449_v50 = vmul.f32 %v7436_v17, %v2312_v47  ;;  %v3016_v16 = vmul.f32 1.442695, %v2962_v15  ;;  %v3034_v21 = vmul.f32 1.442695, %v2971_v62  ;;  %v1893_v27 = vpop.xlane.xlu2 %1892 }
 0x654   : > { %v5058_v2 = vpop.eup %5057  ;;  %5067 = vpow2.f32 %v3022_v60  ;;  %v3140_v12 = vsel %vm1513_vm4, %v5052_v29, 0.0  ;;  %v2799_v49 = vpop.xlane.xlu1 %2798  ;;  %v1949_v47 = vadd.f32 %v1893_v27, %v7300_v11  ;;  %v2838_v1 = vmax.f32 %v8532_v9, %v2796_v37 }
 0x655   : > { %8622 = vst [vmem:[#allocation78_spill] sm:$0xff] %v7449_v50  ;;  %v5060_v13 = vpop.eup %5059  ;;  %5069 = vpow2.f32 %v2938_v40  ;;  %4620 = vmatmul.msk.f32.vlgmr.msra.gmra.mxu3 %vm1513_vm4, %v5052_v29  ;;  %4625 = vmatmul.msk.f32.gmra.mxu0 %vm1513_vm4, %v5058_v2  ;;  %v3155_v14 = vsel %vm1513_vm4, %v5058_v2, 0.0  ;;  %v1833_v62 = vmul.f32 0.0, %v5050_v20  ;;  %v2839_v60 = vmax.f32 %v6540_v24, %v2799_v49  ;;  %v8623_v29 = vld [vmem:[#allocation98_spill] sm:$0xff] }
 0x656   : > { %v7457_v15 = vpop.eup %5061  ;;  %3141 = vadd.xlane.f32.xlu1 %v3140_v12  ;;  %3156 = vadd.xlane.f32.xlu2 %v3155_v14  ;;  %v7460_v18 = vmul.f32 %v5060_v13, %v2311_v56  ;;  %v7462_v40 = vmul.f32 %v5060_v13, %v1951_v45  ;;  %v1955_v32 = vadd.f32 %v8623_v29, %v7344_v23  ;;  %v8625_v12 = vld [vmem:[#allocation65_spill] sm:$0xff]  ;;  %v2876_v56 = vmul.f32 1.442695, %v2844_v55  ;;  %v8626_v13 = vld [vmem:[#allocation104_spill] sm:$0xff] }
 0x657   : > { %4617 = vmatmul.msk.f32.gmra.mxu2 %vm1513_vm4, %v7457_v15  ;;  %v2870_v11 = vsub.f32 %v8532_v9, %v2838_v1  ;;  %v2966_v38 = vsub.f32 %v8624_v36, %v2838_v1  ;;  %v7471_v20 = vmul.f32 %v7315_v52, %v1949_v47  ;;  %v5064_v2 = vpop.eup %5063  ;;  %v2321_v27 = vadd.f32 %v8625_v12, %v1833_v62 }
 0x658   : > { %5071 = vpow2.f32 %v3016_v16  ;;  %v2871_v45 = vsub.f32 %v6540_v24, %v2839_v60  ;;  %v1961_v23 = vadd.f32 %v7420_v30, %v1833_v62  ;;  %v2967_v14 = vsub.f32 %v8626_v13, %v2839_v60 }
 0x659   : > { %v5066_v37 = vpop.eup %5065  ;;  %5073 = vpow2.f32 %v3034_v21  ;;  %v2928_v49 = vmul.f32 1.442695, %v2870_v11  ;;  %v3024_v1 = vmul.f32 1.442695, %v2966_v38  ;;  %v3158_v21 = vsel %vm1513_vm4, %v5064_v2, 0.0 }
 0x65a   : > { %v5068_v9 = vpop.eup %5067  ;;  %v2930_v29 = vmul.f32 1.442695, %v2871_v45  ;;  %v7477_v36 = vmul.f32 %v5066_v37, %v1955_v32  ;;  %v7479_v52 = vmul.f32 %v5066_v37, %v2315_v51  ;;  %v3128_v51 = vsel %vm1513_vm4, %v7402_v5, 0.0  ;;  %v8627_v5 = vld [vmem:[#allocation37_spill] sm:$0xff] }
 0x65b   : > { %v5070_v47 = vpop.eup %5069  ;;  %5075 = vpow2.f32 %v2928_v49  ;;  %v3143_v55 = vsel %vm1513_vm4, %v5068_v9, 0.0  ;;  %v2787_v24 = vpop.xlane.xlu2 %2786  ;;  %v7493_v32 = vmul.f32 0.0, %v7135_v42  ;;  %v3026_v11 = vmul.f32 1.442695, %v2967_v14  ;;  %v8629_v42 = vld [vmem:[#allocation70_spill] sm:$0xff] }
 0x65c   : > { %5077 = vpow2.f32 %v2930_v29  ;;  %3144 = vadd.xlane.f32.xlu0 %v3143_v55  ;;  %v7482_v16 = vmul.f32 %v5070_v47, %v1961_v23  ;;  %v7484_v30 = vmul.f32 %v5070_v47, %v2321_v27  ;;  %v2835_v62 = vmax.f32 %v8535_v54, %v2787_v24  ;;  %v8632_v24 = vld [vmem:[#allocation71_spill] sm:$0xff] }
 0x65d   : > { %5079 = vpow2.f32 %v2876_v56  ;;  %4621 = vmatmul.msk.f32.gmra.mxu3 %vm1513_vm4, %v5068_v9  ;;  %4626 = vmatmul.msk.f32.gmra.mxu0 %vm1513_vm4, %v5064_v2  ;;  %v1829_v12 = vmul.f32 0.0, %v7303_v63  ;;  %v8628_v2 = vld [vmem:[#allocation68_spill] sm:$0xff]  ;;  %v8630_v9 = vld [vmem:[#allocation106_spill] sm:$0xff] }
 0x65e   : > { %v5072_v60 = vpop.eup %5071  ;;  %5081 = vpow2.f32 %v3024_v1  ;;  %3129 = vadd.xlane.f32.xlu2 %v3128_v51  ;;  %3159 = vadd.xlane.f32.xlu1 %v3158_v21  ;;  %v2867_v27 = vsub.f32 %v8535_v54, %v2835_v62  ;;  %v2963_v56 = vsub.f32 %v8627_v5, %v2835_v62  ;;  %v2316_v45 = vadd.f32 %v8628_v2, %v7493_v32  ;;  %v1905_v5 = vpop.xlane.xlu0 %1904 }
 0x65f   : > { %v5074_v38 = vpop.eup %5073  ;;  %4618 = vmatmul.msk.f32.gmra.mxu2 %vm1513_vm4, %v5072_v60  ;;  %v2317_v23 = vadd.f32 %v8629_v42, %v1829_v12  ;;  %v1802_v29 = vmul.f32 0.0, %v8630_v9  ;;  %5083 = vpow2.f32 %v3026_v11  ;;  %v3131_v62 = vsel %vm1513_vm4, %v7457_v15, 0.0  ;;  %v8633_v9 = vld [vmem:[#allocation69_spill] sm:$0xff] }
 0x660   : > { %v2922_v13 = vmul.f32 1.442695, %v2867_v27  ;;  %v3018_v14 = vmul.f32 1.442695, %v2963_v56  ;;  %v3161_v54 = vsel %vm1513_vm4, %v5074_v38, 0.0  ;;  %v1825_v2 = vmul.f32 0.0, %v7281_v19 }
 0x661   : > { %v7501_v37 = vpop.eup %5075  ;;  %v1930_v51 = vadd.f32 %v8632_v24, %v1802_v29 }
 0x662   : > { %v5078_v49 = vpop.eup %5077  ;;  %v7506_v63 = vmul.f32 %v7501_v37, %v2316_v45  ;;  %5085 = vpow2.f32 %v2922_v13 }
 0x663   : > { %v5080_v1 = vpop.eup %5079  ;;  %v7509_v47 = vmul.f32 %v5078_v49, %v2317_v23  ;;  %5087 = vpow2.f32 %v3018_v14  ;;  %v1917_v21 = vpop.xlane.xlu2 %1916 }
 0x664   : > { %v5082_v55 = vpop.eup %5081  ;;  %3162 = vadd.xlane.f32.xlu0 %v3161_v54  ;;  %v1957_v27 = vadd.f32 %v1917_v21, %v1829_v12  ;;  %v3036_v56 = vmul.f32 %v5080_v1, %v1930_v51  ;;  %v3070_v45 = vpop.xlane.xlu1 %3069  ;;  %v1953_v54 = vadd.f32 %v1905_v5, %v1825_v2  ;;  %v3134_v12 = vsel %vm1513_vm4, %v5072_v60, 0.0  ;;  %v8636_v5 = vld [vmem:[#allocation109_spill] sm:$0xff] }
 0x665   : > { %8631 = vst [vmem:[#allocation32_spill] sm:$0xff] %v7509_v47  ;;  %4622 = vmatmul.msk.f32.gmra.mxu3 %vm1513_vm4, %v5082_v55  ;;  %4627 = vmatmul.msk.f32.gmra.mxu0 %vm1513_vm4, %v5074_v38  ;;  %v3146_v11 = vsel %vm1513_vm4, %v5082_v55, 0.0  ;;  %v5084_v23 = vpop.eup %5083  ;;  %v2313_v38 = vadd.f32 %v8633_v9, %v1825_v2 }
 0x666   : > { %3132 = vadd.xlane.f32.xlu1 %v3131_v62  ;;  %3147 = vadd.xlane.f32.xlu2 %v3146_v11  ;;  %v7518_v42 = vmul.f32 %v5078_v49, %v1957_v27  ;;  %v3164_v13 = vadd.f32 %v3070_v45, %v3036_v56  ;;  %v8635_v49 = vld [vmem:[#allocation23_spill] sm:$0xff]  ;;  %v3149_v21 = vsel %vm1513_vm4, %v5084_v23, 0.0 }
 0x667   : > { %v2290_v51 = vadd.f32 %v8635_v49, %v1802_v29  ;;  %v8639_v49 = vld [vmem:[#allocation108_spill] sm:$0xff] }
 0x668   : > { %v5086_v14 = vpop.eup %5085  ;;  %5089 = vrcp.f32 %v3164_v13  ;;  %v3599_v9 = vand.u32 2147483648, %v3164_v13  ;;  %vm3593_vm6 = vweird.f32 %v3164_v13 }
 0x669   : > { %v5088_v24 = vpop.eup %5087  ;;  %v7524_v55 = vmul.f32 %v5086_v14, %v1953_v54  ;;  %v7526_v19 = vmul.f32 %v5086_v14, %v2313_v38  ;;  %v3524_v11 = vmul.f32 %v5080_v1, %v2290_v51  ;;  %v8637_v38 = vld [vmem:[#allocation46_spill] sm:$0xff]  ;;  %v8638_v54 = vld [vmem:[#allocation25_spill] sm:$0xff] }
 0x66a   : > { %4619 = vmatmul.msk.f32.gmra.mxu2 %vm1513_vm4, %v5088_v24  ;;  %v3137_v15 = vsel %vm1513_vm4, %v5088_v24, 0.0  ;;  %v2291_v29 = vadd.f32 %v8638_v54, %v8637_v38 }
 0x66b   : > { %8634 = vst [vmem:[#allocation84_spill] sm:$0xff] %v7526_v19 }
 0x66c   : > { %3135 = vadd.xlane.f32.xlu0 %v3134_v12  ;;  %v3597_v12 = vand.u32 2147483647, %v3164_v13  ;;  %v3525_v1 = vmul.f32 %v8639_v49, %v2291_v29 }
 0x66d   : > { %4623 = vmatmul.msk.f32.gmra.mxu3 %vm1513_vm4, %v5084_v23  ;;  %v3073_v62 = vpop.xlane.xlu2 %3072  ;;  %v3225_v2 = vpop.f32.mrf.mxu1 }
 0x66e   : > { %3138 = vadd.xlane.f32.xlu1 %v3137_v15  ;;  %3150 = vadd.xlane.f32.xlu2 %v3149_v21  ;;  %v5090_v27 = vpop.eup %5089  ;;  %v3165_v56 = vadd.f32 %v3073_v62, %v8636_v5  ;;  %v3556_v45 = vadd.f32 %v3524_v11, %v3225_v2  ;;  %v3600_v21 = vor.u32 1.1754944e-38, %v3599_v9  ;;  %vm3598_vm8 = vcmp.eq.f32.partialorder %v3597_v12, 8.507059e+37 }
 0x66f   : > { %v3589_v60 = vmul.f32 %v5090_v27, %v3164_v13  ;;  %vm3594_vm5 = vweird.f32 %v5090_v27  ;;  %v8640_v13 = vld [vmem:[#allocation110_spill] sm:$0xff] }
 0x670   : > { %5091 = vrcp.f32 %v3165_v56  ;;  %vm3595_vm7 = vmor %vm3593_vm6, %vm3594_vm5  ;;  %v3613_v54 = vand.u32 2147483648, %v3165_v56  ;;  %v3611_v49 = vand.u32 2147483647, %v3165_v56  ;;  %vm3607_vm10 = vweird.f32 %v3165_v56 }
 0x671   : > { %v3590_v14 = vsub.f32 1.0, %v3589_v60 }
 0x672   : > { %v3614_v12 = vor.u32 1.1754944e-38, %v3613_v54  ;;  %vm3612_vm12 = vcmp.eq.f32.partialorder %v3611_v49, 8.507059e+37  ;;  %v8644_v49 = vld [vmem:[#allocation50_spill] sm:$0xff] }
 0x673   : > { %v3591_v24 = vmul.f32 %v5090_v27, %v3590_v14 }
 0x675   : > { %v3592_v23 = vadd.f32 %v5090_v27, %v3591_v24  ;;  %v3076_v15 = vpop.xlane.xlu0 %3075  ;;  %v8641_v24 = vld [vmem:[#allocation24_spill] sm:$0xff] }
 0x676   : > { %v5092_v51 = vpop.eup %5091  ;;  %v3166_v62 = vadd.f32 %v3076_v15, %v7034_v53  ;;  %v3228_v11 = vpop.f32.mrf.mxu1  ;;  %v2292_v50 = vadd.f32 %v8641_v24, %v8640_v13  ;;  %v8642_v15 = vld [vmem:[#allocation111_spill] sm:$0xff] }
 0x677   : > { %v3603_v5 = vmul.f32 %v5092_v51, %v3165_v56  ;;  %v3596_v2 = vsel %vm3595_vm7, %v5090_v27, %v3592_v23  ;;  %v3557_v60 = vadd.f32 %v3525_v1, %v3228_v11  ;;  %vm3608_vm9 = vweird.f32 %v5092_v51  ;;  %v8643_v56 = vld [vmem:[#allocation28_spill] sm:$0xff] }
 0x678   : > { %v3601_v47 = vsel %vm3598_vm8, %v3600_v21, %v3596_v2  ;;  %5093 = vrcp.f32 %v3166_v62  ;;  %v3526_v19 = vmul.f32 %v8642_v15, %v2292_v50  ;;  %vm3609_vm11 = vmor %vm3607_vm10, %vm3608_vm9  ;;  %v2293_v13 = vadd.f32 %v8643_v56, %v7059_v39 }
 0x679   : > { %v3604_v14 = vsub.f32 1.0, %v3603_v5  ;;  %v7536_v38 = vmul.f32 %v3601_v47, %v3556_v45  ;;  %v3625_v24 = vand.u32 2147483647, %v3166_v62  ;;  %vm3621_vm14 = vweird.f32 %v3166_v62 }
 0x67b   : > { %v3605_v29 = vmul.f32 %v5092_v51, %v3604_v14  ;;  %v3627_v14 = vand.u32 2147483648, %v3166_v62  ;;  %vm3626_vm0 = vcmp.eq.f32.partialorder %v3625_v24, 8.507059e+37 }
 0x67d   : > { %v3606_v9 = vadd.f32 %v5092_v51, %v3605_v29  ;;  %v3079_v53 = vpop.xlane.xlu0 %3078  ;;  %v3527_v29 = vmul.f32 %v7075_v43, %v2293_v13 }
 0x67e   : > { %v5094_v27 = vpop.eup %5093  ;;  %v3167_v23 = vadd.f32 %v3079_v53, %v7080_v41  ;;  %v3231_v1 = vpop.f32.mrf.mxu1 }
 0x67f   : > { %v3617_v47 = vmul.f32 %v5094_v27, %v3166_v62  ;;  %v3610_v45 = vsel %vm3609_vm11, %v5092_v51, %v3606_v9  ;;  %v3558_v21 = vadd.f32 %v3526_v19, %v3231_v1  ;;  %vm3622_vm13 = vweird.f32 %v5094_v27 }
 0x680   : > { %v3615_v11 = vsel %vm3612_vm12, %v3614_v12, %v3610_v45  ;;  %5095 = vrcp.f32 %v3167_v23  ;;  %vm3623_vm15 = vmor %vm3621_vm14, %vm3622_vm13  ;;  %v3628_v19 = vor.u32 1.1754944e-38, %v3627_v14  ;;  %vm3635_vm5 = vweird.f32 %v3167_v23 }
 0x681   : > { %v3618_v5 = vsub.f32 1.0, %v3617_v47  ;;  %v7542_v2 = vmul.f32 %v3615_v11, %v3557_v60  ;;  %v3639_v11 = vand.u32 2147483647, %v3167_v23 }
 0x683   : > { %v3619_v50 = vmul.f32 %v5094_v27, %v3618_v5  ;;  %v3641_v5 = vand.u32 2147483648, %v3167_v23  ;;  %vm3640_vm7 = vcmp.eq.f32.partialorder %v3639_v11, 8.507059e+37 }
 0x685   : > { %v3620_v54 = vadd.f32 %v5094_v27, %v3619_v50  ;;  %v3106_v41 = vpop.xlane.xlu0 %3105  ;;  %v3642_v13 = vor.u32 1.1754944e-38, %v3641_v5 }
 0x686   : > { %v5096_v51 = vpop.eup %5095  ;;  %v3176_v9 = vadd.f32 %v3106_v41, %v8644_v49  ;;  %v3234_v53 = vpop.f32.mrf.mxu1 }
 0x687   : > { %v3631_v60 = vmul.f32 %v5096_v51, %v3167_v23  ;;  %v3624_v15 = vsel %vm3623_vm15, %v5094_v27, %v3620_v54  ;;  %v3118_v12 = vpop.xlane.xlu1 %3117  ;;  %v3559_v1 = vadd.f32 %v3527_v29, %v3234_v53  ;;  %vm3636_vm1 = vweird.f32 %v5096_v51 }
 0x688   : > { %v3629_v39 = vsel %vm3626_vm0, %v3628_v19, %v3624_v15  ;;  %v7549_v47 = vadd.f32 %v3118_v12, %v7126_v7  ;;  %5097 = vrcp.f32 %v3176_v9  ;;  %v3348_v43 = vpop.f32.mrf.mxu0  ;;  %vm3637_vm6 = vmor %vm3635_vm5, %vm3636_vm1  ;;  %v3765_v24 = vand.u32 2147483647, %v3176_v9 }
 0x689   : > { %v3632_v62 = vsub.f32 1.0, %v3631_v60  ;;  %v7551_v45 = vmul.f32 %v3629_v39, %v3558_v21  ;;  %v3767_v54 = vand.u32 2147483648, %v3176_v9  ;;  %v8645_v39 = vld [vmem:[#allocation112_spill] sm:$0xff]  ;;  %vm3761_vm8 = vweird.f32 %v3176_v9 }
 0x68a   : > { %5099 = vrcp.f32 %v7549_v47  ;;  %v3821_v23 = vand.u32 2147483647, %v7549_v47  ;;  %v3823_v11 = vand.u32 2147483648, %v7549_v47  ;;  %vm7568_vm10 = vcmp.eq.f32.partialorder %v3765_v24, 8.507059e+37 }
 0x68b   : > { %v3633_v14 = vmul.f32 %v5096_v51, %v3632_v62  ;;  %v3568_v62 = vadd.f32 %v8645_v39, %v3348_v43  ;;  %vm3817_vm11 = vweird.f32 %v7549_v47 }
 0x68c   : > { %vm7573_vm12 = vcmp.eq.f32.partialorder %v3821_v23, 8.507059e+37 }
 0x68d   : > { %v3634_v56 = vadd.f32 %v5096_v51, %v3633_v14 }
 0x68e   : > { %v5098_v27 = vpop.eup %5097 }
 0x68f   : > { %v3757_v50 = vmul.f32 %v5098_v27, %v3176_v9  ;;  %v3638_v7 = vsel %vm3637_vm6, %v5096_v51, %v3634_v56  ;;  %v3109_v41 = vpop.xlane.xlu1 %3108  ;;  %vm3762_vm9 = vweird.f32 %v5098_v27 }
 0x690   : > { %v3121_v21 = vpop.xlane.xlu2 %3120  ;;  %v5100_v29 = vpop.eup %5099  ;;  %v3643_v19 = vsel %vm3640_vm7, %v3642_v13, %v3638_v7  ;;  %v7555_v49 = vadd.f32 %v3109_v41, %v7116_v6  ;;  %vm3763_vm14 = vmor %vm3761_vm8, %vm3762_vm9 }
 0x691   : > { %v7558_v53 = vadd.f32 %v3121_v21, %v7160_v58  ;;  %v3813_v60 = vmul.f32 %v5100_v29, %v7549_v47  ;;  %v3758_v15 = vsub.f32 1.0, %v3757_v50  ;;  %v7562_v12 = vmul.f32 %v3643_v19, %v3559_v1  ;;  %v3389_v51 = vpop.f32.mrf.mxu1  ;;  %v3351_v58 = vpop.f32.mrf.mxu0 }
 0x692   : > { %5101 = vrcp.f32 %v7555_v49  ;;  %v3768_v1 = vor.u32 1.1754944e-38, %v3767_v54  ;;  %v3779_v13 = vand.u32 2147483647, %v7555_v49  ;;  %vm3818_vm13 = vweird.f32 %v5100_v29 }
 0x693   : > { %v3814_v6 = vsub.f32 1.0, %v3813_v60  ;;  %v3759_v5 = vmul.f32 %v5098_v27, %v3758_v15  ;;  %5103 = vrcp.f32 %v7558_v53  ;;  %v7580_v24 = vadd.f32 %v7118_v34, %v3351_v58  ;;  %vm3819_vm0 = vmor %vm3817_vm11, %vm3818_vm13 }
 0x694   : > { %v3781_v41 = vand.u32 2147483648, %v7555_v49  ;;  %v3824_v54 = vor.u32 1.1754944e-38, %v3823_v11  ;;  %vm3775_vm15 = vweird.f32 %v7555_v49  ;;  %v3572_v23 = vadd.f32 %v7128_v46, %v3389_v51 }
 0x695   : > { %v3760_v56 = vadd.f32 %v5098_v27, %v3759_v5  ;;  %v3815_v50 = vmul.f32 %v5100_v29, %v3814_v6  ;;  %v3835_v39 = vand.u32 2147483647, %v7558_v53  ;;  %v3837_v46 = vand.u32 2147483648, %v7558_v53 }
 0x696   : > { %v3112_v7 = vpop.xlane.xlu0 %3111  ;;  %vm7605_vm1 = vcmp.eq.f32.partialorder %v3779_v13, 8.507059e+37  ;;  %vm3831_vm5 = vweird.f32 %v7558_v53 }
 0x697   : > { %v7584_v21 = vadd.f32 %v3112_v7, %v7183_v8  ;;  %v3764_v19 = vsel %vm3763_vm14, %v5098_v27, %v3760_v56  ;;  %v3816_v60 = vadd.f32 %v5100_v29, %v3815_v50  ;;  %vm7620_vm6 = vcmp.eq.f32.partialorder %v3835_v39, 8.507059e+37 }
 0x698   : > { %v3082_v15 = vpop.xlane.xlu2 %3081  ;;  %v7589_v9 = vpop.eup %5101  ;;  %v3769_v34 = vsel %vm7568_vm10, %v3768_v1, %v3764_v19  ;;  %v3782_v1 = vor.u32 1.1754944e-38, %v3781_v41  ;;  %v3838_v50 = vor.u32 1.1754944e-38, %v3837_v46 }
 0x699   : > { %v7597_v8 = vadd.f32 %v3082_v15, %v7153_v35  ;;  %5105 = vrcp.f32 %v7584_v21  ;;  %v7601_v27 = vpop.eup %5103  ;;  %v4048_v51 = vmul.f32 %v3769_v34, %v3568_v62  ;;  %v3771_v11 = vmul.f32 %v7589_v9, %v7555_v49  ;;  %v3392_v13 = vpop.f32.mrf.mxu1 }
 0x69a   : > { %v3820_v5 = vsel %vm3819_vm0, %v5100_v29, %v3816_v60  ;;  %v3094_v47 = vpop.xlane.xlu1 %3093  ;;  %v3827_v35 = vmul.f32 %v7601_v27, %v7558_v53  ;;  %vm3776_vm7 = vweird.f32 %v7589_v9  ;;  %v8654_v60 = vld [vmem:[#allocation81_spill] sm:$0xff]  ;;  %vm3832_vm8 = vweird.f32 %v7601_v27 }
 0x69b   : > { %v3825_v58 = vsel %vm7573_vm12, %v3824_v54, %v3820_v5  ;;  %5107 = vrcp.f32 %v7597_v8  ;;  %v7615_v14 = vadd.f32 %v3094_v47, %v7207_v44  ;;  %v3772_v62 = vsub.f32 1.0, %v3771_v11  ;;  %4104 = vrot.lane.b32.xlu0 %v4048_v51, %s5432_s29  ;;  %v8655_v11 = vld [vmem:[#allocation51_spill] sm:$0xff]  ;;  %vm3777_vm11 = vmor %vm3775_vm15, %vm3776_vm7 }
 0x69c   : > { %v4052_v56 = vmul.f32 %v3825_v58, %v3572_v23  ;;  %v3828_v29 = vsub.f32 1.0, %v3827_v35  ;;  %v3653_v41 = vand.u32 2147483647, %v7597_v8  ;;  %v3655_v54 = vand.u32 2147483648, %v7597_v8  ;;  %vm3833_vm12 = vmor %vm3831_vm5, %vm3832_vm8 }
 0x69d   : > { %5109 = vrcp.f32 %v7615_v14  ;;  %v3266_v7 = vpop.f32.mrf.mxu2  ;;  %v3773_v44 = vmul.f32 %v7589_v9, %v3772_v62  ;;  %v3573_v15 = vadd.f32 %v8654_v60, %v3392_v13  ;;  %vm3789_vm9 = vweird.f32 %v7584_v21 }
 0x69e   : > { %4120 = vrot.lane.b32.xlu1 %v4052_v56, %s5433_s17  ;;  %v3085_v19 = vpop.xlane.xlu0 %3084  ;;  %v3829_v39 = vmul.f32 %v7601_v27, %v3828_v29  ;;  %v7642_v5 = vadd.f32 %v8655_v11, %v3266_v7  ;;  %vm3649_vm10 = vweird.f32 %v7597_v8  ;;  %v3793_v35 = vand.u32 2147483647, %v7584_v21 }
 0x69f   : > { %v7629_v23 = vpop.eup %5105  ;;  %v7635_v34 = vadd.f32 %v3085_v19, %v7226_v61  ;;  %v3774_v46 = vadd.f32 %v7589_v9, %v3773_v44  ;;  %v3795_v56 = vand.u32 2147483648, %v7584_v21  ;;  %vm7662_vm13 = vcmp.eq.f32.partialorder %v3653_v41, 8.507059e+37  ;;  %v3354_v53 = vpop.f32.mrf.mxu0 }
 0x6a0   : > { %v3785_v51 = vmul.f32 %v7629_v23, %v7584_v21  ;;  %v3097_v47 = vpop.xlane.xlu2 %3096  ;;  %v3830_v61 = vadd.f32 %v7601_v27, %v3829_v39  ;;  %vm3790_vm14 = vweird.f32 %v7629_v23  ;;  %vm7688_vm0 = vcmp.eq.f32.partialorder %v3793_v35, 8.507059e+37 }
 0x6a1   : > { %v5108_v58 = vpop.eup %5107  ;;  %v7652_v62 = vadd.f32 %v3097_v47, %v7238_v22  ;;  %5111 = vrcp.f32 %v7635_v34  ;;  %v3778_v13 = vsel %vm3777_vm11, %v7589_v9, %v3774_v46  ;;  %v3656_v22 = vor.u32 1.1754944e-38, %v3655_v54 }
 0x6a2   : > { %v3645_v29 = vmul.f32 %v5108_v58, %v7597_v8  ;;  %v3786_v7 = vsub.f32 1.0, %v3785_v51  ;;  %v3124_v44 = vpop.xlane.xlu1 %3123  ;;  %v3783_v60 = vsel %vm7605_vm1, %v3782_v1, %v3778_v13  ;;  %v3834_v9 = vsel %vm3833_vm12, %v7601_v27, %v3830_v61  ;;  %v8658_v1 = vld [vmem:[#allocation31_spill] sm:$0xff]  ;;  %vm3791_vm1 = vmor %vm3789_vm9, %vm3790_vm14 }
 0x6a3   : > { %v7666_v19 = vpop.eup %5109  ;;  %5113 = vrcp.f32 %v7652_v62  ;;  %v7673_v39 = vadd.f32 %v3124_v44, %v7195_v26  ;;  %v4049_v41 = vmul.f32 %v3783_v60, %v7580_v24  ;;  %v3839_v51 = vsel %vm7620_vm6, %v3838_v50, %v3834_v9  ;;  %v3395_v24 = vpop.f32.mrf.mxu1  ;;  %v8664_v50 = vld [vmem:[#allocation40_spill] sm:$0xff] }
 0x6a4   : > { %v3646_v46 = vsub.f32 1.0, %v3645_v29  ;;  %v3701_v54 = vmul.f32 %v7666_v19, %v7615_v14  ;;  %v4053_v11 = vmul.f32 %v3839_v51, %v3573_v15  ;;  %v3787_v27 = vmul.f32 %v7629_v23, %v3786_v7 }
 0x6a5   : > { %5115 = vrcp.f32 %v7673_v39  ;;  %vm3650_vm15 = vweird.f32 %v5108_v58  ;;  %v3570_v47 = vadd.f32 %v8658_v1, %v3354_v53  ;;  %4106 = vrot.lane.b32.xlu0 %v4049_v41, %s5432_s29  ;;  %v3796_v15 = vor.u32 1.1754944e-38, %v3795_v56  ;;  %v8661_v53 = vld [vmem:[#allocation38_spill] sm:$0xff] }
 0x6a6   : > { %v3702_v6 = vsub.f32 1.0, %v3701_v54  ;;  %v3647_v26 = vmul.f32 %v5108_v58, %v3646_v46  ;;  %v3788_v43 = vadd.f32 %v7629_v23, %v3787_v27  ;;  %v3851_v13 = vand.u32 2147483648, %v7673_v39  ;;  %4122 = vrot.lane.b32.xlu2 %v4053_v11, %s5433_s17  ;;  %vm3651_vm5 = vmor %vm3649_vm10, %vm3650_vm15 }
 0x6a7   : > { %v7685_v61 = vpop.eup %5111  ;;  %v3849_v44 = vand.u32 2147483647, %v7673_v39  ;;  %v7709_v41 = vadd.f32 %v8661_v53, %v3395_v24  ;;  %vm3705_vm6 = vweird.f32 %v7615_v14  ;;  %vm3706_vm7 = vweird.f32 %v7666_v19 }
 0x6a8   : > { %v3648_v29 = vadd.f32 %v5108_v58, %v3647_v26  ;;  %v3659_v7 = vmul.f32 %v7685_v61, %v7635_v34  ;;  %v3703_v35 = vmul.f32 %v7666_v19, %v3702_v6  ;;  %v3115_v60 = vpop.xlane.xlu2 %3114  ;;  %v3792_v56 = vsel %vm3791_vm1, %v7629_v23, %v3788_v43  ;;  %vm7734_vm11 = vmor %vm3705_vm6, %vm3706_vm7 }
 0x6a9   : > { %v7702_v9 = vpop.eup %5113  ;;  %v3307_v46 = vpop.f32.mrf.mxu3  ;;  %v3797_v11 = vsel %vm7688_vm0, %v3796_v15, %v3792_v56  ;;  %vm3845_vm8 = vweird.f32 %v7673_v39  ;;  %v3852_v6 = vor.u32 1.1754944e-38, %v3851_v13  ;;  %vm7725_vm9 = vcmp.eq.f32.partialorder %v3849_v44, 8.507059e+37 }
 0x6aa   : > { %v3652_v21 = vsel %vm3651_vm5, %v5108_v58, %v3648_v29  ;;  %v3715_v54 = vmul.f32 %v7702_v9, %v7652_v62  ;;  %v3660_v51 = vsub.f32 1.0, %v3659_v7  ;;  %v7720_v27 = vmul.f32 %v3797_v11, %v3570_v47  ;;  %v8667_v47 = vld [vmem:[#allocation87_spill] sm:$0xff] }
 0x6ab   : > { %v5116_v8 = vpop.eup %5115  ;;  %v3657_v23 = vsel %vm7662_vm13, %v3656_v22, %v3652_v21  ;;  %v3704_v26 = vadd.f32 %v7666_v19, %v3703_v35  ;;  %v3564_v15 = vadd.f32 %v8664_v50, %v3307_v46  ;;  %v3711_v22 = vand.u32 2147483648, %v7615_v14 }
 0x6ac   : > { %v4040_v58 = vmul.f32 %v3657_v23, %v7642_v5  ;;  %v3716_v1 = vsub.f32 1.0, %v3715_v54  ;;  %v3841_v24 = vmul.f32 %v5116_v8, %v7673_v39  ;;  %vm3846_vm10 = vweird.f32 %v5116_v8  ;;  %v8668_v54 = vld [vmem:[#allocation27_spill] sm:$0xff] }
 0x6ad   : > { %v3709_v5 = vand.u32 2147483647, %v7615_v14  ;;  %v7741_v13 = vadd.f32 %v3115_v60, %v8667_v47  ;;  %v3708_v7 = vsel %vm7734_vm11, %v7666_v19, %v3704_v26  ;;  %v3269_v44 = vpop.f32.mrf.mxu2  ;;  %v3661_v35 = vmul.f32 %v7685_v61, %v3660_v51  ;;  %vm7768_vm5 = vmor %vm3845_vm8, %vm3846_vm10  ;;  %v8678_v51 = vld [vmem:[#allocation107_spill] sm:$0xff] }
 0x6ae   : > { %v3842_v29 = vsub.f32 1.0, %v3841_v24  ;;  %4072 = vrot.lane.b32.xlu1 %v4040_v58, %s5434_s13  ;;  %vm3663_vm12 = vweird.f32 %v7635_v34  ;;  %v3712_v56 = vor.u32 1.1754944e-38, %v3711_v22  ;;  %vm3664_vm14 = vweird.f32 %v7685_v61 }
 0x6af   : > { %vm3710_vm13 = vcmp.eq.f32.partialorder %v3709_v5, 8.507059e+37  ;;  %5117 = vrcp.f32 %v7741_v13  ;;  %v3662_v60 = vadd.f32 %v7685_v61, %v3661_v35  ;;  %v3667_v53 = vand.u32 2147483647, %v7635_v34  ;;  %vm7755_vm15 = vmor %vm3663_vm12, %vm3664_vm14 }
 0x6b0   : > { %v3843_v14 = vmul.f32 %v5116_v8, %v3842_v29  ;;  %v3669_v19 = vand.u32 2147483648, %v7635_v34  ;;  %v3713_v21 = vsel %vm3710_vm13, %v3712_v56, %v3708_v7  ;;  %v3561_v11 = vadd.f32 %v8668_v54, %v3269_v44  ;;  %v3088_v26 = vpop.xlane.xlu2 %3087  ;;  %v8675_v29 = vld [vmem:[#allocation39_spill] sm:$0xff] }
 0x6b1   : > { %v3127_v46 = vpop.xlane.xlu0 %3126  ;;  %v3717_v23 = vmul.f32 %v7702_v9, %v3716_v1  ;;  %vm3720_vm0 = vweird.f32 %v7702_v9  ;;  %v4044_v24 = vmul.f32 %v3713_v21, %v3564_v15  ;;  %v3666_v50 = vsel %vm7755_vm15, %v7685_v61, %v3662_v60  ;;  %v3357_v15 = vpop.f32.mrf.mxu0  ;;  %v8676_v21 = vld [vmem:[#allocation36_spill] sm:$0xff] }
 0x6b2   : > { %v3844_v58 = vadd.f32 %v5116_v8, %v3843_v14  ;;  %vm3719_vm1 = vweird.f32 %v7652_v62  ;;  %vm3668_vm6 = vcmp.eq.f32.partialorder %v3667_v53, 8.507059e+37  ;;  %v3670_v1 = vor.u32 1.1754944e-38, %v3669_v19  ;;  %v3310_v61 = vpop.f32.mrf.mxu3 }
 0x6b3   : > { %v3718_v49 = vadd.f32 %v7702_v9, %v3717_v23  ;;  %v3723_v5 = vand.u32 2147483647, %v7652_v62  ;;  %4088 = vrot.lane.b32.xlu2 %v4044_v24, %s5435_s2  ;;  %vm7779_vm7 = vmor %vm3719_vm1, %vm3720_vm0  ;;  %v3725_v47 = vand.u32 2147483648, %v7652_v62  ;;  %v7785_v7 = vadd.f32 %v3088_v26, %v8675_v29 }
 0x6b4   : > { %v3848_v22 = vsel %vm7768_vm5, %v5116_v8, %v3844_v58  ;;  %v7788_v44 = vadd.f32 %v3127_v46, %v7471_v20  ;;  %v3671_v56 = vsel %vm3668_vm6, %v3670_v1, %v3666_v50  ;;  %v1960_v20 = vadd.f32 %v8676_v21, %v7384_v59  ;;  %v8677_v46 = vld [vmem:[#allocation26_spill] sm:$0xff] }
 0x6b5   : > { %v5118_v35 = vpop.eup %5117  ;;  %v3853_v8 = vsel %vm7725_vm9, %v3852_v6, %v3848_v22  ;;  %v3722_v14 = vsel %vm7779_vm7, %v7702_v9, %v3718_v49  ;;  %v7797_v62 = vmul.f32 %v3671_v56, %v3561_v11  ;;  %v3726_v19 = vor.u32 1.1754944e-38, %v3725_v47  ;;  %v3272_v58 = vpop.f32.mrf.mxu2  ;;  %v8682_v47 = vld [vmem:[#allocation72_spill] sm:$0xff] }
 0x6b6   : > { %v4054_v60 = vmul.f32 %v3853_v8, %v7709_v41  ;;  %v3799_v53 = vmul.f32 %v5118_v35, %v7741_v13  ;;  %v3565_v54 = vadd.f32 %v8677_v46, %v3310_v61  ;;  %vm3724_vm8 = vcmp.eq.f32.partialorder %v3723_v5, 8.507059e+37  ;;  %v8679_v5 = vld [vmem:[#allocation73_spill] sm:$0xff] }
 0x6b7   : > { %5119 = vrcp.f32 %v7785_v7  ;;  %v3727_v43 = vsel %vm3724_vm8, %v3726_v19, %v3722_v14  ;;  %v3807_v9 = vand.u32 2147483647, %v7741_v13  ;;  %v7808_v23 = vadd.f32 %v8678_v51, %v7493_v32 }
 0x6b8   : > { %v3800_v6 = vsub.f32 1.0, %v3799_v53  ;;  %5121 = vrcp.f32 %v7788_v44  ;;  %4124 = vrot.lane.b32.xlu1 %v4054_v60, %s5433_s17  ;;  %v4045_v59 = vmul.f32 %v3727_v43, %v3565_v54  ;;  %v3809_v26 = vand.u32 2147483648, %v7741_v13  ;;  %v8689_v53 = vld [vmem:[#allocation74_spill] sm:$0xff] }
 0x6b9   : > { %v3100_v41 = vpop.xlane.xlu1 %3099  ;;  %v3154_v11 = vpop.xlane.xlu0 %3153  ;;  %v7812_v24 = vmul.f32 %v7394_v4, %v1960_v20  ;;  %vm3804_vm9 = vweird.f32 %v5118_v35  ;;  %v3681_v34 = vand.u32 2147483647, %v7785_v7  ;;  %v3683_v1 = vand.u32 2147483648, %v7785_v7 }
 0x6ba   : > { %v3801_v50 = vmul.f32 %v5118_v35, %v3800_v6  ;;  %v3398_v49 = vpop.f32.mrf.mxu1  ;;  %v3571_v22 = vadd.f32 %v8679_v5, %v3357_v15  ;;  %vm3803_vm10 = vweird.f32 %v7741_v13  ;;  %v7819_v32 = vadd.f32 %v3100_v41, %v7358_v10  ;;  %v3512_v8 = vpop.f32.mrf.mxu0 }
 0x6bb   : > { %v7822_v61 = vadd.f32 %v3154_v11, %v7323_v3  ;;  %vm7824_vm11 = vcmp.eq.f32.partialorder %v3807_v9, 8.507059e+37  ;;  %4108 = vrot.lane.b32.xlu2 %v7720_v27, %s5432_s29  ;;  %v3562_v29 = vadd.f32 %v8682_v47, %v3272_v58  ;;  %vm3677_vm12 = vweird.f32 %v7785_v7  ;;  %vm3805_vm13 = vmor %vm3803_vm10, %vm3804_vm9 }
 0x6bc   : > { %v3802_v39 = vadd.f32 %v5118_v35, %v3801_v50  ;;  %v3810_v13 = vor.u32 1.1754944e-38, %v3809_v26  ;;  %v3684_v10 = vor.u32 1.1754944e-38, %v3683_v1  ;;  %5123 = vrcp.f32 %v7819_v32 }
 0x6bd   : > { %v5120_v15 = vpop.eup %5119  ;;  %v3575_v3 = vadd.f32 %v7321_v25, %v3398_v49  ;;  %vm7835_vm14 = vcmp.eq.f32.partialorder %v3681_v34, 8.507059e+37  ;;  %5125 = vrcp.f32 %v7822_v61  ;;  %v3863_v27 = vand.u32 2147483647, %v7788_v44 }
 0x6be   : > { %v5122_v56 = vpop.eup %5121  ;;  %v3673_v14 = vmul.f32 %v5120_v15, %v7785_v7  ;;  %v3806_v60 = vsel %vm3805_vm13, %v5118_v35, %v3802_v39  ;;  %vm3859_vm15 = vweird.f32 %v7788_v44  ;;  %v3865_v25 = vand.u32 2147483648, %v7788_v44 }
 0x6bf   : > { %v3855_v19 = vmul.f32 %v5122_v56, %v7788_v44  ;;  %v3811_v21 = vsel %vm7824_vm11, %v3810_v13, %v3806_v60  ;;  %vm3678_vm0 = vweird.f32 %v5120_v15  ;;  %v7849_v35 = vadd.f32 %v7325_v57, %v3512_v8 }
 0x6c0   : > { %v3674_v20 = vsub.f32 1.0, %v3673_v14  ;;  %v7846_v46 = vmul.f32 %v3811_v21, %v3571_v22  ;;  %4090 = vrot.lane.b32.xlu1 %v4045_v59, %s5435_s2  ;;  %vm3860_vm1 = vweird.f32 %v5122_v56  ;;  %v3989_v9 = vand.u32 2147483647, %v7822_v61  ;;  %vm3679_vm8 = vmor %vm3677_vm12, %vm3678_vm0 }
 0x6c1   : > { %v3091_v54 = vpop.xlane.xlu1 %3090  ;;  %v3103_v6 = vpop.xlane.xlu0 %3102  ;;  %v3856_v43 = vsub.f32 1.0, %v3855_v19  ;;  %vm7856_vm5 = vcmp.eq.f32.partialorder %v3863_v27, 8.507059e+37  ;;  %v3991_v26 = vand.u32 2147483648, %v7822_v61  ;;  %v3866_v50 = vor.u32 1.1754944e-38, %v3865_v25  ;;  %vm3861_vm10 = vmor %vm3859_vm15, %vm3860_vm1 }
 0x6c2   : > { %v7854_v41 = vadd.f32 %v3091_v54, %v7362_v31  ;;  %v3675_v11 = vmul.f32 %v5120_v15, %v3674_v20  ;;  %v7862_v57 = vadd.f32 %v3103_v6, %v7339_v33  ;;  %v7864_v59 = vpop.eup %5123  ;;  %vm3985_vm6 = vweird.f32 %v7822_v61 }
 0x6c3   : > { %v3857_v58 = vmul.f32 %v5122_v56, %v3856_v43  ;;  %v5126_v31 = vpop.eup %5125  ;;  %v3729_v1 = vmul.f32 %v7864_v59, %v7819_v32  ;;  %4074 = vrot.lane.b32.xlu2 %v7797_v62, %s5434_s13  ;;  %vm3733_vm7 = vweird.f32 %v7819_v32  ;;  %vm7878_vm9 = vcmp.eq.f32.partialorder %v3989_v9, 8.507059e+37  ;;  %v8692_v9 = vld [vmem:[#allocation57_spill] sm:$0xff] }
 0x6c4   : > { %5127 = vrcp.f32 %v7854_v41  ;;  %v3676_v34 = vadd.f32 %v5120_v15, %v3675_v11  ;;  %v3981_v33 = vmul.f32 %v5126_v31, %v7822_v61  ;;  %v3737_v22 = vand.u32 2147483647, %v7819_v32 }
 0x6c5   : > { %5129 = vrcp.f32 %v7862_v57  ;;  %v3858_v49 = vadd.f32 %v5122_v56, %v3857_v58  ;;  %v3730_v4 = vsub.f32 1.0, %v3729_v1  ;;  %v3992_v62 = vor.u32 1.1754944e-38, %v3991_v26 }
 0x6c6   : > { %v3680_v39 = vsel %vm3679_vm8, %v5120_v15, %v3676_v34  ;;  %v3695_v7 = vand.u32 2147483647, %v7854_v41  ;;  %v3982_v8 = vsub.f32 1.0, %v3981_v33  ;;  %vm3986_vm11 = vweird.f32 %v5126_v31 }
 0x6c7   : > { %v3275_v47 = vpop.f32.mrf.mxu2  ;;  %v3685_v13 = vsel %vm7835_vm14, %v3684_v10, %v3680_v39  ;;  %v3862_v14 = vsel %vm3861_vm10, %v5122_v56, %v3858_v49  ;;  %vm3691_vm12 = vweird.f32 %v7854_v41  ;;  %v3697_v44 = vand.u32 2147483648, %v7854_v41  ;;  %vm3987_vm0 = vmor %vm3985_vm6, %vm3986_vm11 }
 0x6c8   : > { %v3313_v60 = vpop.f32.mrf.mxu3  ;;  %v4042_v27 = vmul.f32 %v3685_v13, %v3562_v29  ;;  %v3867_v15 = vsel %vm7856_vm5, %v3866_v50, %v3862_v14  ;;  %vm3734_vm13 = vweird.f32 %v7864_v59  ;;  %v3983_v10 = vmul.f32 %v5126_v31, %v3982_v8  ;;  %v8693_v50 = vld [vmem:[#allocation42_spill] sm:$0xff] }
 0x6c9   : > { %v3142_v19 = vpop.xlane.xlu1 %3141  ;;  %v3157_v21 = vpop.xlane.xlu2 %3156  ;;  %v7894_v20 = vmul.f32 %v3867_v15, %v3575_v3  ;;  %v3563_v56 = vadd.f32 %v8689_v53, %v3275_v47  ;;  %v3731_v54 = vmul.f32 %v7864_v59, %v3730_v4  ;;  %vm7900_vm15 = vcmp.eq.f32.partialorder %v3695_v7, 8.507059e+37  ;;  %vm3735_vm1 = vmor %vm3733_vm7, %vm3734_vm13 }
 0x6ca   : > { %v5128_v25 = vpop.eup %5127  ;;  %4076 = vrot.lane.b32.xlu1 %v4042_v27, %s5434_s13  ;;  %v3566_v11 = vadd.f32 %v8692_v9, %v3313_v60  ;;  %v3739_v3 = vand.u32 2147483648, %v7819_v32  ;;  %v3984_v51 = vadd.f32 %v5126_v31, %v3983_v10  ;;  %v7912_v34 = vadd.f32 %v3142_v19, %v8693_v50  ;;  %v8695_v10 = vld [vmem:[#allocation89_spill] sm:$0xff] }
 0x6cb   : > { %v5130_v29 = vpop.eup %5129  ;;  %v3687_v6 = vmul.f32 %v5128_v25, %v7854_v41  ;;  %vm3692_vm14 = vweird.f32 %v5128_v25  ;;  %v3732_v58 = vadd.f32 %v7864_v59, %v3731_v54  ;;  %vm3738_vm5 = vcmp.eq.f32.partialorder %v3737_v22, 8.507059e+37 }
 0x6cc   : > { %v3743_v26 = vmul.f32 %v5130_v29, %v7862_v57  ;;  %v3740_v33 = vor.u32 1.1754944e-38, %v3739_v3  ;;  %v7919_v49 = vadd.f32 %v3157_v21, %v7440_v0  ;;  %v3988_v61 = vsel %vm3987_vm0, %v5126_v31, %v3984_v51  ;;  %vm3693_vm7 = vmor %vm3691_vm12, %vm3692_vm14 }
 0x6cd   : > { %v3688_v1 = vsub.f32 1.0, %v3687_v6  ;;  %v3736_v4 = vsel %vm3735_vm1, %v7864_v59, %v3732_v58  ;;  %5131 = vrcp.f32 %v7912_v34  ;;  %v3993_v47 = vsel %vm7878_vm9, %v3992_v62, %v3988_v61  ;;  %v8694_v62 = vld [vmem:[#allocation53_spill] sm:$0xff] }
 0x6ce   : > { %v3744_v39 = vsub.f32 1.0, %v3743_v26  ;;  %v3741_v13 = vsel %vm3738_vm5, %v3740_v33, %v3736_v4  ;;  %5133 = vrcp.f32 %v7919_v49  ;;  %v4064_v32 = vmul.f32 %v3993_v47, %v7849_v35 }
 0x6cf   : > { %v3689_v7 = vmul.f32 %v5128_v25, %v3688_v1  ;;  %v4046_v22 = vmul.f32 %v3741_v13, %v3566_v11  ;;  %vm3748_vm6 = vweird.f32 %v5130_v29  ;;  %v3145_v0 = vpop.xlane.xlu0 %3144  ;;  %v3698_v60 = vor.u32 1.1754944e-38, %v3697_v44  ;;  %v3430_v11 = vpop.f32.mrf.mxu2 }
 0x6d0   : > { %v3316_v8 = vpop.f32.mrf.mxu3  ;;  %v3745_v14 = vmul.f32 %v5130_v29, %v3744_v39  ;;  %v3751_v59 = vand.u32 2147483647, %v7862_v57  ;;  %v3753_v27 = vand.u32 2147483648, %v7862_v57  ;;  %vm3747_vm8 = vweird.f32 %v7862_v57 }
 0x6d1   : > { %v3690_v31 = vadd.f32 %v5128_v25, %v3689_v7  ;;  %v3130_v15 = vpop.xlane.xlu2 %3129  ;;  %v3160_v5 = vpop.xlane.xlu1 %3159  ;;  %4092 = vrot.lane.b32.xlu0 %v4046_v22, %s5435_s2  ;;  %v3567_v53 = vadd.f32 %v8695_v10, %v3316_v8  ;;  %vm3749_vm9 = vmor %vm3747_vm8, %vm3748_vm6  ;;  %v7943_v41 = vadd.f32 %v3145_v0, %v7477_v36  ;;  %vm3999_vm11 = vweird.f32 %v7919_v49  ;;  %v8699_v22 = vld [vmem:[#allocation75_spill] sm:$0xff] }
 0x6d2   : > { %v3746_v35 = vadd.f32 %v5130_v29, %v3745_v14  ;;  %v7935_v19 = vadd.f32 %v3130_v15, %v8694_v62  ;;  %v7938_v44 = vadd.f32 %v3160_v5, %v7812_v24  ;;  %v3754_v54 = vor.u32 1.1754944e-38, %v3753_v27  ;;  %v3515_v24 = vpop.f32.mrf.mxu0 }
 0x6d3   : > { %v3694_v21 = vsel %vm3693_vm7, %v5128_v25, %v3690_v31  ;;  %v5132_v6 = vpop.eup %5131  ;;  %vm3752_vm10 = vcmp.eq.f32.partialorder %v3751_v59, 8.507059e+37  ;;  %v8696_v25 = vld [vmem:[#allocation103_spill] sm:$0xff]  ;;  %v3585_v33 = vadd.f32 %v7442_v28, %v3515_v24  ;;  %v4005_v61 = vand.u32 2147483648, %v7919_v49 }
 0x6d4   : > { %v3699_v9 = vsel %vm7900_vm15, %v3698_v60, %v3694_v21  ;;  %v3750_v57 = vsel %vm3749_vm9, %v5130_v29, %v3746_v35  ;;  %5135 = vrcp.f32 %v7935_v19  ;;  %v5134_v3 = vpop.eup %5133  ;;  %v1952_v51 = vadd.f32 %v8696_v25, %v7412_v48 }
 0x6d5   : > { %v7950_v26 = vmul.f32 %v3699_v9, %v3563_v56  ;;  %v3925_v58 = vmul.f32 %v5132_v6, %v7912_v34  ;;  %v3755_v36 = vsel %vm3752_vm10, %v3754_v54, %v3750_v57  ;;  %v3995_v50 = vmul.f32 %v5134_v3, %v7919_v49 }
 0x6d6   : > { %v7954_v1 = vmul.f32 %v3755_v36, %v3567_v53  ;;  %5137 = vrcp.f32 %v7938_v44  ;;  %v3062_v29 = vmul.f32 %v7501_v37, %v7808_v23  ;;  %vm4000_vm12 = vweird.f32 %v5134_v3 }
 0x6d7   : > { %v3926_v43 = vsub.f32 1.0, %v3925_v58  ;;  %5139 = vrcp.f32 %v7943_v41  ;;  %v3996_v48 = vsub.f32 1.0, %v3995_v50  ;;  %v4003_v56 = vand.u32 2147483647, %v7919_v49  ;;  %v3163_v0 = vpop.xlane.xlu0 %3162  ;;  %vm4001_vm5 = vmor %vm3999_vm11, %vm4000_vm12 }
 0x6d8   : > { %v3471_v39 = vpop.f32.mrf.mxu3  ;;  %vm3929_vm13 = vweird.f32 %v7912_v34  ;;  %vm3930_vm14 = vweird.f32 %v5132_v6  ;;  %v3933_v37 = vand.u32 2147483647, %v7912_v34  ;;  %v3935_v14 = vand.u32 2147483648, %v7912_v34 }
 0x6d9   : > { %v3927_v4 = vmul.f32 %v5132_v6, %v3926_v43  ;;  %v3133_v23 = vpop.xlane.xlu1 %3132  ;;  %v3148_v47 = vpop.xlane.xlu2 %3147  ;;  %v3997_v28 = vmul.f32 %v5134_v3, %v3996_v48  ;;  %vm7968_vm15 = vcmp.eq.f32.partialorder %v4003_v56, 8.507059e+37  ;;  %4168 = vrot.lane.b32.xlu0 %v4064_v32, %s5436_s21  ;;  %v3580_v8 = vadd.f32 %v8699_v22, %v3471_v39  ;;  %vm3931_vm1 = vmor %vm3929_vm13, %vm3930_vm14 }
 0x6da   : > { %v7966_v7 = vpop.eup %5135  ;;  %v4006_v60 = vor.u32 1.1754944e-38, %v4005_v61  ;;  %vm7977_vm0 = vcmp.eq.f32.partialorder %v3933_v37, 8.507059e+37  ;;  %v3936_v32 = vor.u32 1.1754944e-38, %v3935_v14  ;;  %v7985_v35 = vadd.f32 %v3133_v23, %v7462_v40  ;;  %v3433_v57 = vpop.f32.mrf.mxu2 }
 0x6db   : > { %v3869_v31 = vmul.f32 %v7966_v7, %v7935_v19  ;;  %v3928_v59 = vadd.f32 %v5132_v6, %v3927_v4  ;;  %v3998_v5 = vadd.f32 %v5134_v3, %v3997_v28  ;;  %v7987_v62 = vadd.f32 %v3148_v47, %v3062_v29  ;;  %v3518_v25 = vpop.f32.mrf.mxu0 }
 0x6dc   : > { %v5138_v15 = vpop.eup %5137  ;;  %v7996_v9 = vadd.f32 %v3163_v0, %v7482_v16  ;;  %5141 = vrcp.f32 %v7985_v35  ;;  %v8702_v16 = vld [vmem:[#allocation77_spill] sm:$0xff]  ;;  %v3879_v29 = vand.u32 2147483648, %v7935_v19  ;;  %v8014_v56 = vadd.f32 %v7460_v18, %v3433_v57 }
 0x6dd   : > { %v7989_v21 = vpop.eup %5139  ;;  %v3870_v10 = vsub.f32 1.0, %v3869_v31  ;;  %v4009_v53 = vmul.f32 %v5138_v15, %v7938_v44  ;;  %v3932_v54 = vsel %vm3931_vm1, %v5132_v6, %v3928_v59  ;;  %v4002_v40 = vsel %vm4001_vm5, %v5134_v3, %v3998_v5 }
 0x6de   : > { %v3939_v34 = vmul.f32 %v7989_v21, %v7943_v41  ;;  %v3937_v24 = vsel %vm7977_vm0, %v3936_v32, %v3932_v54  ;;  %v4007_v49 = vsel %vm7968_vm15, %v4006_v60, %v4002_v40  ;;  %v3058_v6 = vmul.f32 %v7436_v17, %v1952_v51  ;;  %v8703_v51 = vld [vmem:[#allocation30_spill] sm:$0xff] }
 0x6df   : > { %v4010_v58 = vsub.f32 1.0, %v4009_v53  ;;  %v4060_v36 = vmul.f32 %v3937_v24, %v3580_v8  ;;  %v8007_v50 = vadd.f32 %v8702_v16, %v3430_v11  ;;  %v4065_v43 = vmul.f32 %v4007_v49, %v3585_v33  ;;  %v3136_v8 = vpop.xlane.xlu0 %3135 }
 0x6e0   : > { %v3940_v3 = vsub.f32 1.0, %v3939_v34  ;;  %v8011_v48 = vmul.f32 %v7966_v7, %v3870_v10  ;;  %5143 = vrcp.f32 %v7987_v62  ;;  %vm4014_vm6 = vweird.f32 %v5138_v15  ;;  %v3474_v18 = vpop.f32.mrf.mxu3 }
 0x6e1   : > { %v4011_v61 = vmul.f32 %v5138_v15, %v4010_v58  ;;  %4152 = vrot.lane.b32.xlu1 %v4060_v36, %s5437_s26  ;;  %5145 = vrcp.f32 %v7996_v9  ;;  %v4017_v17 = vand.u32 2147483647, %v7938_v44  ;;  %v4019_v11 = vand.u32 2147483648, %v7938_v44  ;;  %4170 = vrot.lane.b32.xlu2 %v4065_v43, %s5436_s21  ;;  %v3139_v37 = vpop.xlane.xlu1 %3138  ;;  %v3151_v23 = vpop.xlane.xlu2 %3150 }
 0x6e2   : > { %4078 = vrot.lane.b32.xlu0 %v7950_v26, %s5434_s13  ;;  %v3586_v33 = vadd.f32 %v8703_v51, %v3518_v25  ;;  %vm4013_vm7 = vweird.f32 %v7938_v44  ;;  %v3941_v4 = vmul.f32 %v7989_v21, %v3940_v3  ;;  %v8027_v47 = vpop.eup %5141  ;;  %vm3943_vm10 = vweird.f32 %v7943_v41 }
 0x6e3   : > { %v4012_v39 = vadd.f32 %v5138_v15, %v4011_v61  ;;  %vm4015_vm8 = vmor %vm4013_vm7, %vm4014_vm6  ;;  %vm4018_vm9 = vcmp.eq.f32.partialorder %v4017_v17, 8.507059e+37  ;;  %v4020_v28 = vor.u32 1.1754944e-38, %v4019_v11  ;;  %vm3944_vm11 = vweird.f32 %v7989_v21  ;;  %v3521_v54 = vpop.f32.mrf.mxu0  ;;  %v8078_v17 = vpop.f32.mrf.mxu2 }
 0x6e4   : > { %vm3873_vm12 = vweird.f32 %v7935_v19  ;;  %v3883_v26 = vmul.f32 %v8027_v47, %v7985_v35  ;;  %v3942_v44 = vadd.f32 %v7989_v21, %v3941_v4  ;;  %v3947_v22 = vand.u32 2147483647, %v7943_v41  ;;  %vm8036_vm13 = vmor %vm3943_vm10, %vm3944_vm11 }
 0x6e5   : > { %v4016_v13 = vsel %vm4015_vm8, %v5138_v15, %v4012_v39  ;;  %v3949_v31 = vand.u32 2147483648, %v7943_v41  ;;  %v8042_v60 = vadd.f32 %v3139_v37, %v7524_v55  ;;  %v8045_v59 = vadd.f32 %v3151_v23, %v7518_v42 }
 0x6e6   : > { %v4021_v14 = vsel %vm4018_vm9, %v4020_v28, %v4016_v13  ;;  %v8047_v27 = vpop.eup %5143  ;;  %v3884_v15 = vsub.f32 1.0, %v3883_v26  ;;  %v3893_v5 = vand.u32 2147483648, %v7985_v35  ;;  %v3946_v10 = vsel %vm8036_vm13, %v7989_v21, %v3942_v44 }
 0x6e7   : > { %v8050_v32 = vmul.f32 %v4021_v14, %v3586_v33  ;;  %v5146_v53 = vpop.eup %5145  ;;  %v3953_v41 = vmul.f32 %v8047_v27, %v7987_v62  ;;  %v3950_v55 = vor.u32 1.1754944e-38, %v3949_v31  ;;  %5147 = vrcp.f32 %v8042_v60 }
 0x6e8   : > { %v8058_v42 = vadd.f32 %v3136_v8, %v3058_v6  ;;  %v4023_v34 = vmul.f32 %v5146_v53, %v7996_v9  ;;  %v3581_v40 = vadd.f32 %v7479_v52, %v3474_v18  ;;  %vm3948_vm14 = vcmp.eq.f32.partialorder %v3947_v22, 8.507059e+37 }
 0x6e9   : > { %5149 = vrcp.f32 %v8045_v59  ;;  %v3885_v57 = vmul.f32 %v8027_v47, %v3884_v15  ;;  %v3954_v21 = vsub.f32 1.0, %v3953_v41  ;;  %v3951_v24 = vsel %vm3948_vm14, %v3950_v55, %v3946_v10 }
 0x6ea   : > { %5151 = vrcp.f32 %v8058_v42  ;;  %v4024_v25 = vsub.f32 1.0, %v4023_v34  ;;  %v4061_v58 = vmul.f32 %v3951_v24, %v3581_v40  ;;  %v3907_v49 = vand.u32 2147483648, %v8058_v42 }
 0x6eb   : > { %v3587_v36 = vadd.f32 %v7484_v30, %v3521_v54  ;;  %vm3887_vm15 = vweird.f32 %v7985_v35  ;;  %vm4027_vm0 = vweird.f32 %v7996_v9  ;;  %v4031_v52 = vand.u32 2147483647, %v7996_v9  ;;  %v3477_v30 = vpop.f32.mrf.mxu3 }
 0x6ec   : > { %v4033_v6 = vand.u32 2147483648, %v7996_v9  ;;  %v3872_v16 = vadd.f32 %v7966_v7, %v8011_v48  ;;  %v4025_v3 = vmul.f32 %v5146_v53, %v4024_v25  ;;  %vm4028_vm1 = vweird.f32 %v5146_v53  ;;  %4154 = vrot.lane.b32.xlu0 %v4061_v58, %s5437_s26 }
 0x6ed   : > { %vm3874_vm5 = vweird.f32 %v7966_v7  ;;  %v3877_v43 = vand.u32 2147483647, %v7935_v19  ;;  %v8076_v61 = vpop.eup %5147  ;;  %vm8080_vm6 = vcmp.eq.f32.partialorder %v4031_v52, 8.507059e+37  ;;  %v3880_v48 = vor.u32 1.1754944e-38, %v3879_v29  ;;  %vm4029_vm9 = vmor %vm4027_vm0, %vm4028_vm1  ;;  %v3439_v34 = vpop.f32.mrf.mxu2 }
 0x6ee   : > { %v4034_v18 = vor.u32 1.1754944e-38, %v4033_v6  ;;  %vm3875_vm7 = vmor %vm3873_vm12, %vm3874_vm5  ;;  %v3955_v51 = vmul.f32 %v8047_v27, %v3954_v21  ;;  %v3911_v39 = vmul.f32 %v8076_v61, %v8042_v60  ;;  %v4026_v4 = vadd.f32 %v5146_v53, %v4025_v3 }
 0x6ef   : > { %v8089_v33 = vpop.eup %5149  ;;  %v3876_v37 = vsel %vm3875_vm7, %v7966_v7, %v3872_v16  ;;  %vm3878_vm8 = vcmp.eq.f32.partialorder %v3877_v43, 8.507059e+37  ;;  %v3582_v29 = vadd.f32 %v7506_v63, %v3477_v30  ;;  %vm3957_vm10 = vweird.f32 %v7987_v62 }
 0x6f0   : > { %v8094_v23 = vpop.eup %5151  ;;  %v3967_v28 = vmul.f32 %v8089_v33, %v8045_v59  ;;  %v3881_v19 = vsel %vm3878_vm8, %v3880_v48, %v3876_v37  ;;  %v3956_v26 = vadd.f32 %v8047_v27, %v3955_v51  ;;  %v4030_v44 = vsel %vm4029_vm9, %v5146_v53, %v4026_v4  ;;  %v8715_v4 = vld [vmem:[#allocation78_spill] sm:$0xff] }
 0x6f1   : > { %v3897_v13 = vmul.f32 %v8094_v23, %v8058_v42  ;;  %v4056_v7 = vmul.f32 %v3881_v19, %v8007_v50  ;;  %v3912_v22 = vsub.f32 1.0, %v3911_v39  ;;  %v4035_v8 = vsel %vm8080_vm6, %v4034_v18, %v4030_v44 }
 0x6f2   : > { %vm3958_vm11 = vweird.f32 %v8047_v27  ;;  %v3961_v9 = vand.u32 2147483647, %v7987_v62  ;;  %vm3901_vm12 = vweird.f32 %v8058_v42  ;;  %v8112_v63 = vmul.f32 %v4035_v8, %v3587_v36  ;;  %v4219_v8 = vld [vmem:[#allocation10 + $0x30] sm:$0xff] }
 0x6f3   : > { %v3898_v14 = vsub.f32 1.0, %v3897_v13  ;;  %4136 = vrot.lane.b32.xlu2 %v4056_v7, %s5438_s30  ;;  %vm8115_vm13 = vmor %vm3957_vm10, %vm3958_vm11  ;;  %v3963_v0 = vand.u32 2147483648, %v7987_v62  ;;  %v3886_v31 = vadd.f32 %v8027_v47, %v3885_v57  ;;  %v3968_v15 = vsub.f32 1.0, %v3967_v28  ;;  %v3480_v16 = vpop.f32.mrf.mxu3  ;;  %v8716_v28 = vld [vmem:[#allocation32_spill] sm:$0xff] }
 0x6f4   : > { %v3960_v10 = vsel %vm8115_vm13, %v8047_v27, %v3956_v26  ;;  %vm3888_vm14 = vweird.f32 %v8027_v47  ;;  %v3891_v53 = vand.u32 2147483647, %v7985_v35  ;;  %vm3962_vm0 = vcmp.eq.f32.partialorder %v3961_v9, 8.507059e+37  ;;  %v4218_v9 = vld [vmem:[#allocation10 + $0x28] sm:$0xff] }
 0x6f5   : > { %v3899_v41 = vmul.f32 %v8094_v23, %v3898_v14  ;;  %v3964_v55 = vor.u32 1.1754944e-38, %v3963_v0  ;;  %vm3889_vm1 = vmor %vm3887_vm15, %vm3888_vm14  ;;  %v3894_v62 = vor.u32 1.1754944e-38, %v3893_v5  ;;  %v3913_v27 = vmul.f32 %v8076_v61, %v3912_v22  ;;  %v4220_v22 = vld [vmem:[#allocation10 + $0x38] sm:$0xff] }
 0x6f6   : > { %v3890_v54 = vsel %vm3889_vm1, %v8027_v47, %v3886_v31  ;;  %vm3892_vm5 = vcmp.eq.f32.partialorder %v3891_v53, 8.507059e+37  ;;  %vm3915_vm6 = vweird.f32 %v8042_v60  ;;  %vm3916_vm7 = vweird.f32 %v8076_v61  ;;  %v8710_v47 = vld [vmem:[#allocation84_spill] sm:$0xff]  ;;  %4245 = vmatpush.msra.mxu1 %v4220_v22  ;;  %v4217_v31 = vld [vmem:[#allocation10 + $0x20] sm:$0xff]  ;;  %v4215_v53 = vld [vmem:[#allocation10 + $0x10] sm:$0xff] }
 0x6f7   : > { %v3965_v40 = vsel %vm3962_vm0, %v3964_v55, %v3960_v10  ;;  %v3895_v57 = vsel %vm3892_vm5, %v3894_v62, %v3890_v54  ;;  %v3919_v21 = vand.u32 2147483647, %v8042_v60  ;;  %v3914_v35 = vadd.f32 %v8076_v61, %v3913_v27  ;;  %vm8140_vm15 = vmor %vm3915_vm6, %vm3916_vm7 }
 0x6f8   : > { %v4062_v24 = vmul.f32 %v3965_v40, %v3582_v29  ;;  %v4057_v25 = vmul.f32 %v3895_v57, %v8014_v56  ;;  %v3921_v5 = vand.u32 2147483648, %v8042_v60  ;;  %v3579_v58 = vadd.f32 %v8710_v47, %v3439_v34  ;;  %4246 = vmatpush.msra.mxu1 %v4219_v8 }
 0x6f9   : > { %vm3920_vm8 = vcmp.eq.f32.partialorder %v3919_v21, 8.507059e+37  ;;  %v3969_v52 = vmul.f32 %v8089_v33, %v3968_v15  ;;  %vm3971_vm9 = vweird.f32 %v8045_v59  ;;  %v3918_v56 = vsel %vm8140_vm15, %v8076_v61, %v3914_v35  ;;  %v4216_v15 = vld [vmem:[#allocation10 + $0x18] sm:$0xff] }
 0x6fa   : > { %4138 = vrot.lane.b32.xlu1 %v4057_v25, %s5438_s30  ;;  %v3922_v6 = vor.u32 1.1754944e-38, %v3921_v5  ;;  %vm3972_vm10 = vweird.f32 %v8089_v33  ;;  %v3975_v60 = vand.u32 2147483647, %v8045_v59  ;;  %v3977_v30 = vand.u32 2147483648, %v8045_v59  ;;  %4247 = vmatpush.msra.mxu1 %v4218_v9 }
 0x6fb   : > { %4094 = vrot.lane.b32.xlu2 %v7954_v1, %s5435_s2  ;;  %v3970_v3 = vadd.f32 %v8089_v33, %v3969_v52  ;;  %vm8155_vm11 = vmor %vm3971_vm9, %vm3972_vm10  ;;  %v3900_v11 = vadd.f32 %v8094_v23, %v3899_v41  ;;  %vm3902_vm13 = vweird.f32 %v8094_v23  ;;  %v3905_v18 = vand.u32 2147483647, %v8058_v42  ;;  %v4214_v41 = vld [vmem:[#allocation10 + $0x8] sm:$0xff] }
 0x6fc   : > { %v3923_v61 = vsel %vm3920_vm8, %v3922_v6, %v3918_v56  ;;  %vm3903_vm14 = vmor %vm3901_vm12, %vm3902_vm13  ;;  %v3908_v1 = vor.u32 1.1754944e-38, %v3907_v49  ;;  %v3978_v39 = vor.u32 1.1754944e-38, %v3977_v30  ;;  %v3578_v37 = vadd.f32 %v8715_v4, %v8078_v17  ;;  %4248 = vmatpush.msra.mxu1 %v4217_v31 }
 0x6fd   : > { %v4059_v48 = vmul.f32 %v3923_v61, %v3579_v58  ;;  %v3974_v51 = vsel %vm8155_vm11, %v8089_v33, %v3970_v3  ;;  %v3904_v59 = vsel %vm3903_vm14, %v8094_v23, %v3900_v11  ;;  %v3583_v19 = vadd.f32 %v8716_v28, %v3480_v16 }
 0x6fe   : > { %vm3976_vm0 = vcmp.eq.f32.partialorder %v3975_v60, 8.507059e+37  ;;  %vm3906_vm12 = vcmp.eq.f32.partialorder %v3905_v18, 8.507059e+37  ;;  %vm4184_vm1 = vcmask 130048   ;;  %vm4189_vm5 = vcmask 195584   ;;  %4249 = vmatpush.msra.mxu1 %v4216_v15 }
 0x6ff   : > { %v3979_v29 = vsel %vm3976_vm0, %v3978_v39, %v3974_v51  ;;  %v3909_v26 = vsel %vm3906_vm12, %v3908_v1, %v3904_v59  ;;  %vm4198_vm6 = vcmask 326656   ;;  %vm4203_vm7 = vcmask 392192  }
 0x700   : > { %v4063_v13 = vmul.f32 %v3979_v29, %v3583_v19  ;;  %v4058_v42 = vmul.f32 %v3909_v26, %v3578_v37  ;;  %v4123_v49 = vpop.permute.xlu2 %4122  ;;  %4250 = vmatpush.msra.mxu1 %v4215_v53  ;;  %vm4208_vm15 = vcmask 457728  }
 0x702   : > { %4172 = vrot.lane.b32.xlu1 %v8050_v32, %s5436_s21  ;;  %4140 = vrot.lane.b32.xlu0 %v4058_v42, %s5438_s30 }
 0x703   : > { %4156 = vrot.lane.b32.xlu2 %v4062_v24, %s5437_s26  ;;  %4251 = vmatpush.msra.mxu1 %v4214_v41 }
 0x70a   : > { %4110 = vrot.lane.b32.xlu1 %v7846_v46, %s5432_s29  ;;  %4126 = vrot.lane.b32.xlu0 %v7894_v20, %s5433_s17  ;;  %s4284_s29 = scalar_lea.hbm %s8718_s16, %s4635_s12  ;;  %s4285_s17 = sshll.u32 %s5645_s9, 4  ;;  %s4286_s17 = int_to_ptr.vmem [resolvable:$true] %s4285_s17 }
 0x70b   : > { %4142 = vrot.lane.b32.xlu2 %v4059_v48, %s5438_s30  ;;  %s4287_s2 = sshll.u32 %s4284_s29, 4  ;;  %s4288_s2 = int_to_ptr.hbm [resolvable:$true] %s4287_s2 }
 0x70c   : > { %s5287_s25 = sshra.s32 %s4288_s2, 4  ;;  %s5288_s25 = int_to_ptr.hbm [resolvable:$true] %s5287_s25 }
 0x70d   : > { %v4089_v32 = vpop.permute.xlu2 %4088  ;;  %v4105_v44 = vpop.permute.xlu0 %4104  ;;  %p5294_p2 = scmp.lt.s32.totalorder %s5288_s25, %s8718_s16 }
 0x710   : > { %v4121_v17 = vpop.permute.xlu1 %4120 }
 0x712   : > { %4158 = vrot.lane.b32.xlu1 %v4063_v13, %s5437_s26  ;;  %4174 = vrot.lane.b32.xlu0 %v8112_v63, %s5436_s21  ;;  %s5289_s21 = scalar_lea.hbm %s5288_s25, 32 }
 0x713   : > { %p5290_p1 = scmp.ne.s32.totalorder %s5288_s25, %s5289_s21  ;;  %p5295_p3 = scmp.lt.s32.totalorder %s5293_s15, %s5289_s21 }
 0x715   : > { %v4109_v23 = vpop.permute.xlu2 %4108  ;;  %p5291_p11 = pnand %p5290_p1, %p5540_p6  ;;  %p5296_p5 = por %p5295_p3, %p5294_p2 }
 0x717   : > { %v4107_v50 = vpop.permute.xlu0 %4106  ;;  %p5292_p0 = pneg %p5291_p11 }
 0x719   : > { %p5297_p7 = pnand %p5296_p5, %p5292_p0 }
 0x71d   : > { %v4075_v46 = vpop.permute.xlu2 %4074 }
 0x71e   : > { %v4181_v20 = vsel %vm1120_vm2, %v7542_v2, %v4075_v46  ;;  %v4213_v2 = vld [vmem:[#allocation10] sm:$0xff] }
 0x71f   : > { %4252 = vmatpush.msra.mxu1 %v4213_v2 }
 0x720   : > { %v4073_v33 = vpop.permute.xlu1 %4072 }
 0x721   : > { %v4180_v62 = vsel %vm1120_vm2, %v7536_v38, %v4073_v33 }
 0x722   : > { %v4185_v27 = vsel %vm4184_vm1, %v4180_v62, %v4089_v32 }
 0x723   : > { %v4190_v40 = vsel %vm4189_vm5, %v4185_v27, %v4105_v44 }
 0x724   : > { %v4194_v21 = vsel %vm1513_vm4, %v4190_v40, %v4121_v17 }
 0x72a   : > { %v4125_v7 = vpop.permute.xlu1 %4124 }
 0x732   : > { %v4091_v14 = vpop.permute.xlu1 %4090 }
 0x733   : > { %v4186_v63 = vsel %vm4184_vm1, %v4181_v20, %v4091_v14 }
 0x734   : > { %v4191_v0 = vsel %vm4189_vm5, %v4186_v63, %v4107_v50 }
 0x735   : > { %v4195_v10 = vsel %vm1513_vm4, %v4191_v0, %v4123_v49  ;;  %v4832_v49 = vld [vmem:[%s8293_s4] ss:$0 sm:$0xff] }
 0x73b   : > { %v4171_v55 = vpop.permute.xlu2 %4170 }
 0x73c   : > { %v4077_v34 = vpop.permute.xlu1 %4076 }
 0x73d   : > { %v4182_v56 = vsel %vm1120_vm2, %v7551_v45, %v4077_v34 }
 0x743   : > { %v4093_v54 = vpop.permute.xlu0 %4092 }
 0x744   : > { %v4187_v60 = vsel %vm4184_vm1, %v4182_v56, %v4093_v54 }
 0x745   : > { %v4192_v43 = vsel %vm4189_vm5, %v4187_v60, %v4109_v23 }
 0x746   : > { %v4196_v11 = vsel %vm1513_vm4, %v4192_v43, %v4125_v7 }
 0x74b   : > { %v4169_v35 = vpop.permute.xlu0 %4168 }
 0x74d   : > { %v4137_v57 = vpop.permute.xlu2 %4136 }
 0x74e   : > { %v4199_v24 = vsel %vm4198_vm6, %v4194_v21, %v4137_v57 }
 0x753   : > { %v4153_v25 = vpop.permute.xlu1 %4152 }
 0x754   : > { %v4204_v5 = vsel %vm4203_vm7, %v4199_v24, %v4153_v25  ;;  %v4079_v47 = vpop.permute.xlu0 %4078 }
 0x755   : > { %v4209_v38 = vsel %vm4208_vm15, %v4204_v5, %v4169_v35  ;;  %v4095_v58 = vpop.permute.xlu2 %4094  ;;  %v4183_v51 = vsel %vm1120_vm2, %v7562_v12, %v4079_v47 }
 0x756   : > { %4628 = vmatmul.msk.f32.vlgmr.msra.gmra.mxu1 %vm954_vm3, %v4209_v38  ;;  %v4188_v4 = vsel %vm4184_vm1, %v4183_v51, %v4095_v58 }
 0x75d   : > { %v4157_v18 = vpop.permute.xlu2 %4156 }
 0x75e   : > { %v4155_v36 = vpop.permute.xlu0 %4154 }
 0x765   : > { %v4143_v19 = vpop.permute.xlu2 %4142 }
 0x76c   : > { %v4139_v52 = vpop.permute.xlu1 %4138 }
 0x76d   : > { %v4200_v6 = vsel %vm4198_vm6, %v4195_v10, %v4139_v52 }
 0x76e   : > { %v4205_v16 = vsel %vm4203_vm7, %v4200_v6, %v4155_v36 }
 0x76f   : > { %v4210_v3 = vsel %vm4208_vm15, %v4205_v16, %v4171_v55 }
 0x770   : > { %4629 = vmatmul.msk.f32.gmra.mxu1 %vm954_vm3, %v4210_v3 }
 0x774   : > { %v4173_v30 = vpop.permute.xlu1 %4172  ;;  %v4141_v61 = vpop.permute.xlu0 %4140 }
 0x775   : > { %v4201_v1 = vsel %vm4198_vm6, %v4196_v11, %v4141_v61 }
 0x776   : > { %v4206_v45 = vsel %vm4203_vm7, %v4201_v1, %v4157_v18 }
 0x777   : > { %v4211_v48 = vsel %vm4208_vm15, %v4206_v45, %v4173_v30 }
 0x778   : > { %4630 = vmatmul.msk.f32.gmra.mxu1 %vm954_vm3, %v4211_v48 }
 0x77c   : > { %v4111_v39 = vpop.permute.xlu1 %4110  ;;  %v4127_v59 = vpop.permute.xlu0 %4126 }
 0x77d   : > { %v4193_v37 = vsel %vm4189_vm5, %v4188_v4, %v4111_v39 }
 0x77e   : > { %v4197_v28 = vsel %vm1513_vm4, %v4193_v37, %v4127_v59 }
 0x77f   : > { %v4202_v26 = vsel %vm4198_vm6, %v4197_v28, %v4143_v19 }
 0x784   : > { %v4159_v29 = vpop.permute.xlu1 %4158  ;;  %v4175_v13 = vpop.permute.xlu0 %4174 }
 0x785   : > { %v4207_v12 = vsel %vm4203_vm7, %v4202_v26, %v4159_v29 }
 0x786   : > { %v4212_v42 = vsel %vm4208_vm15, %v4207_v12, %v4175_v13 }
 0x787   : > { %4631 = vmatmul.msk.f32.gmra.mxu1 %vm954_vm3, %v4212_v42 }
 0x7d3   : > { %v4254_v17 = vpop.f32.mrf.mxu1 }
 0x7d4   : > { %v4255_v32 = vadd.f32 %v4832_v49, %v4254_v17 }
 0x7d6   : > { %4266 = vst.msk [vmem:[%s5645_s9] sm:$0xff] %vm954_vm3, %v4255_v32 }
 0x7ed   : > { %v4257_v33 = vpop.f32.mrf.mxu1 }
 0x7ee   : > { %v4258_v23 = vadd.f32 %v4832_v49, %v4257_v33 }
 0x7f0   : > { %4267 = vst.msk [vmem:[%s5645_s9 + $0x8] sm:$0xff] %vm954_vm3, %v4258_v23 }
 0x7f5   : > { %v4260_v44 = vpop.f32.mrf.mxu1 }
 0x7f6   : > { %v4261_v7 = vadd.f32 %v4832_v49, %v4260_v44 }
 0x7f8   : > { %4268 = vst.msk [vmem:[%s5645_s9 + $0x10] sm:$0xff] %vm954_vm3, %v4261_v7 }
 0x804   : > { %v4263_v22 = vpop.f32.mrf.mxu1 }
 0x805   : > { %v4264_v8 = vadd.f32 %v4832_v49, %v4263_v22 }
 0x807   : > { %4269 = vst.msk [vmem:[%s5645_s9 + $0x18] sm:$0xff] %vm954_vm3, %v4264_v8 }
 0x808   : > { %5300 = shalt.err (!%p5297_p7)
}
 0x809   : > { %s5439_s5 = smov 128  }
 0x80a   : > { %4681 = dma.vmem_to_hbm [thread:$0]  (%p5540_p6), %s4286_s17, 512, %s4288_s2, %s4271_s24, %s5439_s5, %s5439_s5, %s5434_s13  }
 0x80b PF: > { %s8719_s9 = sld [smem:[#allocation17_spill]]  ;;  %p4708_p8 = scmp.ge.s32.totalorder %s5403_s28, 2 }
 0x80d   : > { %p4698_p9 = pnand %p4708_p8, %p5546_p10 }
 0x80f   : > { %p4699_p12 = pneg %p4698_p9 }
 0x811   : > { %s4302_s10 = sand.u32 1, %s8719_s9  }
 0x812   : > { %s4303_s12 = scalar_lea.sflag [#allocation6], %s4302_s10 }
 0x813   : > { %5358 = dma.done.wait (%p4699_p12), %s4303_s12, 512  }
 0x814   : > { %5360 = vsyncadd (%p4699_p12), %s4303_s12, 4294966784  ;;  %s23_s28 = sadd.s32 1, %s5403_s28   ;;  %s8721_s24 = sld [smem:[#allocation18_spill]] }
 0x815   : > { %p20_p13 = scmp.ge.s32.totalorder %s23_s28, 6   ;;  %s8722_s26 = sld [smem:[#allocation21_spill]] }
 0x816   : > { %s8723_s13 = sld [smem:[#allocation22_spill]]  ;;  %s8724_s18 = smov %s5367_s19 }
 0x817   : > { %s8725_s19 = smov %s5371_s20  ;;  %s8726_s20 = smov %s5613_s3 }
 0x818   : > { %s8727_s21 = smov %s5379_s22  ;;  %s8728_s22 = smov %s5383_s23 }
 0x819   : > { %s8729_s23 = smov %s5610_s11  ;;  %s8730_s25 = smov %s5399_s27 }
 0x81a   :  { %22 = sbr.rel (!%p20_p13) target bundleno = 16 (0x10), region = 134 }
 0x81c   : > { %s8731_s27 = smov %s8723_s13 }
 0x81f   :  { %4309 = vsyncpa [#allocation5], 1 }
 0x820   :  { %4311 = vsyncpa [#allocation5 + $0x1], 1 }
 0x821   :  { %4312 = vsyncpa [#allocation8], 1 }
 0x822   :  { %4313 = vsyncpa [#allocation11], 1 }
 0x823   :  { %4314 = vsyncpa [#allocation6], 1 }
 0x824   :  { %4316 = vsyncpa [#allocation6 + $0x1], 1 }

</bundles_post_ra>
